<compile_context>
chip_gen: v5e
topology: v5e:2x2
jax: 0.10.0
libtpu: 0.0.40
codegen_flags: <defaults>
</compile_context>

<pallas_src>
import functools

import jax
import jax.numpy as jnp
from jax.experimental import pallas as pl
from jax.experimental.pallas import tpu as pltpu


# ----------------------------------------------------------------------------
# Pallas kernels
# ----------------------------------------------------------------------------
def _matmul_affine_kernel(a_ref, b_ref, s_ref, bias_ref, o_ref, *, relu):
    # bf16 x bf16 -> f32 on the MXU; affine (folded BN) + ReLU in f32.
    acc = jnp.dot(a_ref[...], b_ref[...], preferred_element_type=jnp.float32)
    acc = acc * s_ref[...] + bias_ref[...]
    if relu:
        acc = jnp.maximum(acc, 0.0)
    o_ref[...] = acc.astype(o_ref.dtype)


def _matmul_affine_res_kernel(a_ref, b_ref, s_ref, bias_ref, r_ref, o_ref):
    acc = jnp.dot(a_ref[...], b_ref[...], preferred_element_type=jnp.float32)
    acc = acc * s_ref[...] + bias_ref[...] + r_ref[...].astype(jnp.float32)
    o_ref[...] = jnp.maximum(acc, 0.0).astype(o_ref.dtype)


def _max_window_kernel(x_ref, o_ref):
    # x block: (tg, W, C) channels-last -> max over the pooling window (sublane axis).
    o_ref[...] = jnp.max(x_ref[...], axis=1)


# ----------------------------------------------------------------------------
# Pallas wrappers
# ----------------------------------------------------------------------------
_VMEM_BUDGET = 36 * 1024 * 1024   # live-tile budget for tile picking
_VMEM_LIMIT = 40 * 1024 * 1024    # scoped VMEM request (safe on v7x's 64 MiB/TC)


def _pick_tile_m(M, K, tn, has_residual):
    """Largest M-tile whose live VMEM (double-buffered A/out/res + resident B) fits."""
    itemsize = 2  # bf16 operands / activations
    fixed = K * tn * itemsize * 2 + 2 * tn * 4 * 2            # B (dbl-buf) + scale/bias
    per_row = (2 * K + 2 * tn + (2 * tn if has_residual else 0)) * itemsize
    cap = 2048
    if M <= cap and fixed + M * per_row <= _VMEM_BUDGET:
        return M
    for tm in (2048, 1536, 1024, 768, 512, 384, 256, 192, 128, 96, 64, 32, 16, 8):
        if M % tm == 0 and fixed + tm * per_row <= _VMEM_BUDGET:
            return tm
    return M  # fallback; fine for the shapes used here


def fused_matmul(a, b, scale, bias, residual=None, relu=True, out_dtype=jnp.bfloat16):
    """out = act((a @ b) * scale + bias [+ residual]).  a:(M,K) b:(K,N), bf16 MXU GEMM."""
    M, K = a.shape
    K2, N = b.shape
    assert K == K2
    a = a.astype(jnp.bfloat16)
    b = b.astype(jnp.bfloat16)
    scale = scale.reshape(1, N).astype(jnp.float32)
    bias = bias.reshape(1, N).astype(jnp.float32)

    # Tile N when it is wide: shrinks tiles and gives >=2 parallel steps for megacore.
    tn = 512 if (N > 512 and N % 512 == 0) else N
    has_res = residual is not None
    tm = _pick_tile_m(M, K, tn, has_res)
    grid = (M // tm, N // tn)

    in_specs = [
        pl.BlockSpec((tm, K), lambda i, j: (i, 0)),
        pl.BlockSpec((K, tn), lambda i, j: (0, j)),
        pl.BlockSpec((1, tn), lambda i, j: (0, j)),
        pl.BlockSpec((1, tn), lambda i, j: (0, j)),
    ]
    args = [a, b, scale, bias]
    if residual is None:
        kernel = functools.partial(_matmul_affine_kernel, relu=relu)
    else:
        kernel = _matmul_affine_res_kernel
        in_specs.append(pl.BlockSpec((tm, tn), lambda i, j: (i, j)))
        args.append(residual.astype(jnp.bfloat16))

    return pl.pallas_call(
        kernel,
        out_shape=jax.ShapeDtypeStruct((M, N), out_dtype),
        grid_spec=pltpu.PrefetchScalarGridSpec(
            num_scalar_prefetch=0,
            grid=grid,
            in_specs=in_specs,
            out_specs=pl.BlockSpec((tm, tn), lambda i, j: (i, j)),
        ),
        compiler_params=pltpu.CompilerParams(
            dimension_semantics=("parallel", "parallel"),
            vmem_limit_bytes=_VMEM_LIMIT,
        ),
    )(*args)


def _pick_pool_tile(G, W, C, itemsize):
    budget = 12 * 1024 * 1024
    per_row = W * C * itemsize * 2 + C * itemsize * 2   # dbl-buffered input + output rows
    if G * per_row <= budget:
        return G
    for tg in (4096, 3072, 2048, 1536, 1024, 768, 512, 384, 256, 128, 64, 32, 16, 8):
        if G % tg == 0 and tg * per_row <= budget:
            return tg
    return G


def pallas_max_over_window(x):
    """x: (G, W, C) channels-last -> (G, C): max over the pooling-window axis."""
    G, W, C = x.shape
    tg = _pick_pool_tile(G, W, C, x.dtype.itemsize)
    return pl.pallas_call(
        _max_window_kernel,
        out_shape=jax.ShapeDtypeStruct((G, C), x.dtype),
        grid_spec=pltpu.PrefetchScalarGridSpec(
            num_scalar_prefetch=0,
            grid=(G // tg,),
            in_specs=[pl.BlockSpec((tg, W, C), lambda i: (i, 0, 0))],
            out_specs=pl.BlockSpec((tg, C), lambda i: (i, 0)),
        ),
        compiler_params=pltpu.CompilerParams(dimension_semantics=("parallel",)),
    )(x)


# ----------------------------------------------------------------------------
# Glue: im2col patch extraction (NHWC, C innermost) and conv/bn/relu on the GEMM kernel
# ----------------------------------------------------------------------------
def _extract_patches(x, kh, kw, stride, pad):
    """x: NHWC -> patches (N, Ho, Wo, kh*kw, C), C innermost (lane-dense)."""
    N, H, W, C = x.shape
    if pad > 0:
        x = jnp.pad(x, ((0, 0), (pad, pad), (pad, pad), (0, 0)))
    Hp, Wp = x.shape[1], x.shape[2]
    Ho = (Hp - kh) // stride + 1
    Wo = (Wp - kw) // stride + 1
    cols = []
    for dh in range(kh):
        for dw in range(kw):
            cols.append(
                x[:, dh:dh + stride * (Ho - 1) + 1:stride,
                     dw:dw + stride * (Wo - 1) + 1:stride, :]
            )
    patches = jnp.stack(cols, axis=3)  # (N, Ho, Wo, kh*kw, C)
    return patches, Ho, Wo


def conv_bn(x, p, stride=1, relu=True, residual=None):
    """Conv2d(bias=False) + folded BatchNorm (+ReLU, + optional residual add). x: NHWC bf16."""
    w, kh, kw, pad = p["w"], p["kh"], p["kw"], p["pad"]
    N, H, W, C = x.shape
    if kh == 1 and kw == 1 and pad == 0:
        if stride > 1:
            x = x[:, ::stride, ::stride, :]
        Ho, Wo = x.shape[1], x.shape[2]
        a = x.reshape(N * Ho * Wo, C)
    else:
        patches, Ho, Wo = _extract_patches(x, kh, kw, stride, pad)
        a = patches.reshape(N * Ho * Wo, kh * kw * C)
    res2d = None if residual is None else residual.reshape(N * Ho * Wo, -1)
    out = fused_matmul(a, w, p["scale"], p["bias"], residual=res2d, relu=relu)
    return out.reshape(N, Ho, Wo, -1)


def stem_maxpool(x):
    """MaxPool2d(3, stride=2, padding=1) on post-ReLU NHWC features (0-padding is exact)."""
    N, H, W, C = x.shape
    patches, Ho, Wo = _extract_patches(x, 3, 3, 2, 1)       # (N,Ho,Wo,9,C)
    g = patches.reshape(N * Ho * Wo, 9, C)
    out = pallas_max_over_window(g)                          # (N*Ho*Wo, C)
    return out.reshape(N, Ho, Wo, C)


def global_max_pool(p):
    """MaxPool2d(kernel=(H,W)) -> (N, C)."""
    n, h, w, c = p.shape
    return pallas_max_over_window(p.reshape(n, h * w, c))


def part_max_pool(p, ph):
    """MaxPool2d(kernel=(ph, W)) with stride==kernel -> (N, H//ph, C)."""
    n, h, w, c = p.shape
    parts = h // ph
    g = p.reshape(n * parts, ph * w, c)
    out = pallas_max_over_window(g)                          # (N*parts, C)
    return out.reshape(n, parts, c)


# ----------------------------------------------------------------------------
# Parameter construction (deterministic; stands in for the pretrained checkpoint)
# ----------------------------------------------------------------------------
def _conv_bn_params(key, cin, cout, k):
    pad = (k - 1) // 2
    k1, k2, k3 = jax.random.split(key, 3)
    fan_in = cin * k * k
    w = jax.random.normal(k1, (cout, cin, k, k), jnp.float32) * (2.0 / fan_in) ** 0.5
    # K-order (kh, kw, Cin) to match the lane-dense (C innermost) im2col patch layout.
    w = w.transpose(2, 3, 1, 0).reshape(k * k * cin, cout).astype(jnp.bfloat16)
    gamma = 1.0 + 0.02 * jax.random.normal(k2, (cout,), jnp.float32)
    beta = 0.02 * jax.random.normal(k3, (cout,), jnp.float32)
    eps = 1e-5
    scale = gamma / jnp.sqrt(1.0 + eps)                      # running_var = 1
    bias = beta                                              # running_mean = 0
    return {"w": w, "kh": k, "kw": k, "pad": pad, "scale": scale, "bias": bias}


def _bottleneck_params(key, inplanes, planes, downsample):
    ks = jax.random.split(key, 4)
    p = {
        "conv1": _conv_bn_params(ks[0], inplanes, planes, 1),
        "conv2": _conv_bn_params(ks[1], planes, planes, 3),
        "conv3": _conv_bn_params(ks[2], planes, planes * 4, 1),
    }
    if downsample:
        p["downsample"] = _conv_bn_params(ks[3], inplanes, planes * 4, 1)
    return p


def _layer_params(key, inplanes, planes, blocks):
    ks = jax.random.split(key, blocks)
    params = [_bottleneck_params(ks[0], inplanes, planes, True)]
    for i in range(1, blocks):
        params.append(_bottleneck_params(ks[i], planes * 4, planes, False))
    return params


def init_mgn_params(key, num_classes):
    ks = jax.random.split(key, 8)
    P = {}
    P["conv1"] = _conv_bn_params(ks[0], 3, 64, 7)
    P["layer1"] = _layer_params(ks[1], 64, 64, 3)
    P["layer2"] = _layer_params(ks[2], 256, 128, 4)
    P["layer3"] = _layer_params(ks[3], 512, 256, 6)
    # layer4 weights are shared between the g-branch (stride 2) and the p-branches
    # (stride 1), because res_p_conv5.load_state_dict(resnet.layer4.state_dict()).
    P["layer4"] = _layer_params(ks[4], 1024, 512, 3)
    # reduction_0..7 are deepcopies of one initialized module -> identical weights.
    P["reduction"] = _conv_bn_params(ks[5], 2048, 256, 1)

    fc_keys = jax.random.split(ks[6], 8)

    def _fc(k, din):
        return {
            "w": 0.001 * jax.random.normal(k, (din, num_classes), jnp.float32),
            "b": jnp.zeros((num_classes,), jnp.float32),
        }

    P["fc_2048"] = [_fc(fc_keys[i], 2048) for i in range(3)]
    P["fc_256"] = [_fc(fc_keys[3 + i], 256) for i in range(5)]
    return P


# ----------------------------------------------------------------------------
# Network structure
# ----------------------------------------------------------------------------
def bottleneck(x, p, stride=1):
    identity = x
    out = conv_bn(x, p["conv1"], stride=1, relu=True)
    out = conv_bn(out, p["conv2"], stride=stride, relu=True)
    if "downsample" in p:
        identity = conv_bn(x, p["downsample"], stride=stride, relu=False)
    return conv_bn(out, p["conv3"], stride=1, residual=identity)   # relu(out + identity)


def run_layer(x, layer_params, first_stride):
    x = bottleneck(x, layer_params[0], stride=first_stride)
    for p in layer_params[1:]:
        x = bottleneck(x, p, stride=1)
    return x


def mgn_forward(params, x_nchw):
    x = jnp.transpose(x_nchw, (0, 2, 3, 1)).astype(jnp.bfloat16)   # NCHW -> NHWC bf16

    # backbone: conv1/bn1/relu/maxpool, layer1, layer2, layer3[0]
    x = conv_bn(x, params["conv1"], stride=2, relu=True)
    x = stem_maxpool(x)
    x = run_layer(x, params["layer1"], 1)
    x = run_layer(x, params["layer2"], 2)
    x = bottleneck(x, params["layer3"][0], stride=2)               # (N, 24, 8, 1024)

    # shared conv4 trunk computed ONCE (p1/p2/p3 use identical deepcopied weights)
    x4 = x
    for p in params["layer3"][1:]:
        x4 = bottleneck(x4, p, stride=1)

    def conv5(y, stride):
        y = bottleneck(y, params["layer4"][0], stride=stride)
        y = bottleneck(y, params["layer4"][1], stride=1)
        y = bottleneck(y, params["layer4"][2], stride=1)
        return y

    p1 = conv5(x4, 2)                # (N, 12, 4, 2048)
    p2 = conv5(x4, 1)                # (N, 24, 8, 2048)
    # p3 is a deepcopy of p2's weights -> identical output; reuse p2 everywhere.

    # MGN pooling head (channels-last Pallas max-pools)
    zg_p1 = global_max_pool(p1)      # MaxPool2d((12, 4))  -> (N, 2048)
    zg_p2 = global_max_pool(p2)      # MaxPool2d((24, 8))  -> (N, 2048)
    zg_p3 = zg_p2                    # identical to zg_p2 by construction
    zp2 = part_max_pool(p2, 12)      # MaxPool2d((12, 8))  -> (N, 2, 2048)
    zp3 = part_max_pool(p2, 8)       # MaxPool2d((8, 8))   -> (N, 3, 2048)
    z0_p2, z1_p2 = zp2[:, 0, :], zp2[:, 1, :]
    z0_p3, z1_p3, z2_p3 = zp3[:, 0, :], zp3[:, 1, :], zp3[:, 2, :]

    # reduction: 1x1 conv 2048->256 + BN + ReLU -- all 8 calls share identical weights,
    # so run them as ONE batched GEMM (M = 7*N unique feature rows) and slice.
    red = params["reduction"]
    n = zg_p1.shape[0]
    feats = jnp.concatenate([zg_p1, zg_p2, z0_p2, z1_p2, z0_p3, z1_p3, z2_p3], axis=0)
    red_out = fused_matmul(feats, red["w"], red["scale"], red["bias"],
                           relu=True, out_dtype=jnp.float32)       # (7*N, 256)
    fg_p1 = red_out[0 * n:1 * n]
    fg_p2 = red_out[1 * n:2 * n]
    fg_p3 = fg_p2                    # reduction_2 is a deepcopy; zg_p3 == zg_p2
    f0_p2 = red_out[2 * n:3 * n]
    f1_p2 = red_out[3 * n:4 * n]
    f0_p3 = red_out[4 * n:5 * n]
    f1_p3 = red_out[5 * n:6 * n]
    f2_p3 = red_out[6 * n:7 * n]

    # Tiny classifier FCs (M=batch, N=num_classes): plain XLA dot -- not worth pallas_call.
    def linear(feat, fc):
        return jnp.dot(feat.astype(jnp.float32), fc["w"]) + fc["b"]

    l_p1 = linear(zg_p1, params["fc_2048"][0])
    l_p2 = linear(zg_p2, params["fc_2048"][1])
    l_p3 = linear(zg_p3, params["fc_2048"][2])
    l0_p2 = linear(f0_p2, params["fc_256"][0])
    l1_p2 = linear(f1_p2, params["fc_256"][1])
    l0_p3 = linear(f0_p3, params["fc_256"][2])
    l1_p3 = linear(f1_p3, params["fc_256"][3])
    l2_p3 = linear(f2_p3, params["fc_256"][4])

    predict = jnp.concatenate(
        [fg_p1, fg_p2, fg_p3, f0_p2, f1_p2, f0_p3, f1_p3, f2_p3], axis=1)

    return (predict, fg_p1, fg_p2, fg_p3, l_p1, l_p2, l_p3,
            l0_p2, l1_p2, l0_p3, l1_p3, l2_p3)


# ----------------------------------------------------------------------------
# Main
# ----------------------------------------------------------------------------
if __name__ == "__main__":
    num_classes = 8
    batch = 2

    key = jax.random.PRNGKey(0)
    pkey, xkey = jax.random.split(key)
    params = init_mgn_params(pkey, num_classes)

    # Input is NCHW; 384x128 spatial is required by the module's fixed pooling kernels.
    x = jax.random.normal(xkey, (batch, 3, 384, 128), jnp.float32)

    outs = mgn_forward(params, x)
    outs = jax.block_until_ready(outs)

    assert outs[0].shape == (batch, 8 * 256)        # predict
    assert outs[1].shape == (batch, 256)            # fg_p1
    assert outs[4].shape == (batch, num_classes)    # l_p1
    assert outs[11].shape == (batch, num_classes)   # l2_p3
    assert len(outs) == 12

    print("KERNEL_OK")
</pallas_src>

<mosaic_0001>
module attributes {stable_mosaic.version = 11 : i64} {
  func.func @_matmul_affine_kernel(%arg0: i32, %arg1: i32, %arg2: memref<2048x147xbf16, #tpu.memory_space<vmem>>, %arg3: memref<147x64xbf16, #tpu.memory_space<vmem>>, %arg4: memref<1x64xf32, #tpu.memory_space<vmem>>, %arg5: memref<1x64xf32, #tpu.memory_space<vmem>>, %arg6: memref<2048x64xbf16, #tpu.memory_space<vmem>>) attributes {dimension_semantics = [#tpu.dimension_semantics<parallel>, #tpu.dimension_semantics<parallel>], iteration_bounds = array<i64: 12, 1>, scalar_prefetch = 0 : i64, scratch_operands = 0 : i64, tpu.core_type = #tpu.core_type<tc>, window_params = [{transform_indices = @transform_0, window_bounds = array<i64: 2048, 147>}, {transform_indices = @transform_1, window_bounds = array<i64: 147, 64>}, {transform_indices = @transform_2, window_bounds = array<i64: 1, 64>}, {transform_indices = @transform_3, window_bounds = array<i64: 1, 64>}, {transform_indices = @transform_4, window_bounds = array<i64: 2048, 64>}]} {
    %c0 = arith.constant 0 : index
    %c0_0 = arith.constant 0 : index
    %0 = vector.load %arg2[%c0, %c0_0] : memref<2048x147xbf16, #tpu.memory_space<vmem>>, vector<2048x147xbf16>
    %c0_1 = arith.constant 0 : index
    %c0_2 = arith.constant 0 : index
    %1 = vector.load %arg3[%c0_1, %c0_2] : memref<147x64xbf16, #tpu.memory_space<vmem>>, vector<147x64xbf16>
    %cst = arith.constant dense<0.000000e+00> : vector<2048x64xf32>
    %2 = tpu.matmul %0, %1, %cst {dimension_numbers = #tpu.dot_dimension_numbers<[1], [0], [0], [1], [0, 0, 1, 1], [], []>} : vector<2048x147xbf16>, vector<147x64xbf16>, vector<2048x64xf32> -> vector<2048x64xf32>
    %c0_3 = arith.constant 0 : index
    %c0_4 = arith.constant 0 : index
    %3 = vector.load %arg4[%c0_3, %c0_4] : memref<1x64xf32, #tpu.memory_space<vmem>>, vector<1x64xf32>
    %4 = vector.broadcast %3 : vector<1x64xf32> to vector<2048x64xf32>
    %5 = arith.mulf %2, %4 : vector<2048x64xf32>
    %c0_5 = arith.constant 0 : index
    %c0_6 = arith.constant 0 : index
    %6 = vector.load %arg5[%c0_5, %c0_6] : memref<1x64xf32, #tpu.memory_space<vmem>>, vector<1x64xf32>
    %7 = vector.broadcast %6 : vector<1x64xf32> to vector<2048x64xf32>
    %8 = arith.addf %5, %7 : vector<2048x64xf32>
    %cst_7 = arith.constant 0.000000e+00 : f32
    %9 = vector.broadcast %cst_7 : f32 to vector<2048x64xf32>
    %10 = arith.maximumf %8, %9 : vector<2048x64xf32>
    %11 = arith.truncf %10 : vector<2048x64xf32> to vector<2048x64xbf16>
    %c0_8 = arith.constant 0 : index
    %c0_9 = arith.constant 0 : index
    %12 = vector.load %arg6[%c0_8, %c0_9] : memref<2048x64xbf16, #tpu.memory_space<vmem>>, vector<2048x64xbf16>
    tpu.vector_store %arg6[%c0_8, %c0_9], %11 {strides = array<i32>} : memref<2048x64xbf16, #tpu.memory_space<vmem>>, vector<2048x64xbf16>,
    return
  }
  func.func @transform_0(%arg0: i32, %arg1: i32) -> (i32, i32) {
    %c0_i32 = arith.constant 0 : i32
    %c0_i32_0 = arith.constant 0 : i32
    return %arg0, %c0_i32 : i32, i32
  }
  func.func @transform_1(%arg0: i32, %arg1: i32) -> (i32, i32) {
    %c0_i32 = arith.constant 0 : i32
    %c0_i32_0 = arith.constant 0 : i32
    return %c0_i32, %arg1 : i32, i32
  }
  func.func @transform_2(%arg0: i32, %arg1: i32) -> (i32, i32) {
    %c0_i32 = arith.constant 0 : i32
    %c0_i32_0 = arith.constant 0 : i32
    return %c0_i32, %arg1 : i32, i32
  }
  func.func @transform_3(%arg0: i32, %arg1: i32) -> (i32, i32) {
    %c0_i32 = arith.constant 0 : i32
    %c0_i32_0 = arith.constant 0 : i32
    return %c0_i32, %arg1 : i32, i32
  }
  func.func @transform_4(%arg0: i32, %arg1: i32) -> (i32, i32) {
    %c0_i32 = arith.constant 0 : i32
    return %arg0, %arg1 : i32, i32
  }
}

</mosaic_0001>

<bundles_post_ra>
// kernel: tpu_custom_call.1
= control target key start
LH: loop header
LB: loop body
LE: loop exit
PB: predicated region body
PF: predicated region fallthrough
CT: control target
= control target key end

     0   :  { %s6413_s15 = smov 0   ;;  %s6415_s16 = smov 0   ;;  %s8559_s0 = inlined_call_operand.vmem [shape: bf16[24576,147], index: 0, kind: input, shape index: {}]   ;;  %s8560_s1 = inlined_call_operand.vmem [shape: bf16[147,64], index: 1, kind: input, shape index: {}]   ;;  %s8561_s2 = inlined_call_operand.vmem [shape: f32[1,64], index: 2, kind: input, shape index: {}]   ;;  %s8562_s3 = inlined_call_operand.vmem [shape: f32[1,64], index: 3, kind: input, shape index: {}]   ;;  %s8563_s4 = inlined_call_operand.vmem [shape: bf16[24576,64], index: 4, kind: output, shape index: {}]  }
   0x1   :  { %s6417_s17 = smov 0  }
   0x2 LB: > { %s26_s18 = sadd.s32 1, %s6381_s16  ;;  %p4854_p0 = scmp.ge.s32.totalorder %s6385_s17, 1  ;;  %s6385_s17 = sphi %s6417_s17, %s14_s17   ;;  %s6381_s16 = sphi %s6415_s16, %s8565_s16   ;;  %s6377_s15 = sphi %s6413_s15, %s8564_s15  }
   0x3   : > { %p28_p1 = scmp.ge.s32.totalorder %s26_s18, 12  ;;  %p203_p2 = scmp.lt.s32.totalorder %s6385_s17, 13 }
   0x5   : > { %s8567_s18 = smov (%p28_p1, %s26_s18), 0  ;;  %p204_p3 = pnand %p4854_p0, %p203_p2 }
   0x6   : > { %s4855_s23 = sshll.u32 (!%p204_p3), %s6377_s15, 8 }
   0x7   : > { %207 = sbr.rel (%p204_p3) target bundleno = 1203 (0x4b3), region = 36  ;;  %p244_p4 = scmp.lt.s32.totalorder (!%p204_p3), %s4855_s23, 3071 }
   0xc   : > { %v6314_v0 = vld [vmem:[%s8560_s1 + $0x38] sm:$0xff]  ;;  %v544_v1 = vld [vmem:[%s8560_s1 + $0x48] sm:$0x3]  ;;  %vm2139_vm0 = vcmask 1040384   ;;  %vm2140_vm1 = vcmask 1041408   ;;  %v6313_v3 = vld [vmem:[%s8560_s1 + $0x30] sm:$0xff] }
   0xd   : > { %v1734_v2 = vunpack.c.l.b16 %v544_v1  ;;  %2146 = vmatpush.bf16.msra.mxu0 %v6314_v0  ;;  %6316 = vmatpush.bf16.msra.mxu2 %v6314_v0  ;;  %v6387_v4 = vmov 65535   ;;  %s8569_s23 = smov (!%p244_p4, %s4855_s23), 3071  ;;  %v6312_v9 = vld [vmem:[%s8560_s1 + $0x28] sm:$0xff]  ;;  %v6315_v10 = vld [vmem:[%s8560_s1 + $0x40] sm:$0xff]  ;;  %vm1754_vm2 = vcmask 154624   ;;  %v6310_v18 = vld [vmem:[%s8560_s1 + $0x18] sm:$0xff] }
   0xe   : > { %v2141_v5 = vsel %vm2139_vm0, 4294967295, %v6387_v4  ;;  %s6050_s28 = sshll.u32 %s8569_s23, 3  ;;  %v6311_v14 = vld [vmem:[%s8560_s1 + $0x20] sm:$0xff]  ;;  %v6309_v19 = vld [vmem:[%s8560_s1 + $0x10] sm:$0xff]  ;;  %v6308_v20 = vld [vmem:[%s8560_s1 + $0x8] sm:$0xff]  ;;  %s4859_s26 = sshll.u32 %s8569_s23, 2 }
   0xf   : > { %v1744_v6 = vpack.c.b16 %v1734_v2, %v1734_v2  ;;  %v2142_v7 = vsel %vm2140_vm1, %v2141_v5, 0  ;;  %s6452_s7 = scalar_lea.vmem %s8559_s0, %s6050_s28  ;;  %v6307_v26 = vld [vmem:[%s8560_s1] sm:$0xff]  ;;  %s6589_s29 = scalar_lea.vmem %s8563_s4, %s4859_s26  ;;  %vm4476_vm3 = vcmask 519168  }
  0x10   : > { %v6051_v11 = vld [vmem:[%s6452_s7 + $0x4] sm:$0xf]  ;;  %v4864_v12 = vld [vmem:[%s6452_s7 + $0x8] sm:$0xf0]  ;;  %v6181_v15 = vld [vmem:[%s6452_s7 + $0x414] sm:$0xf] }
  0x11   : > { %v2144_v8 = vand.u32 %v2142_v7, %v1744_v6  ;;  %2147 = vmatpush.bf16.msra.mxu0 %v6313_v3  ;;  %6317 = vmatpush.bf16.msra.mxu2 %v6313_v3  ;;  %v4867_v13 = vor.u32 %v6051_v11, %v4864_v12  ;;  %v5384_v16 = vld [vmem:[%s6452_s7 + $0x418] sm:$0xf0]  ;;  %v6053_v21 = vld [vmem:[%s6452_s7 + $0x14] sm:$0xf]  ;;  %v6183_v23 = vld [vmem:[%s6452_s7 + $0x424] sm:$0xf] }
  0x12   : > { %v5387_v17 = vor.u32 %v6181_v15, %v5384_v16  ;;  %v4872_v22 = vld [vmem:[%s6452_s7 + $0x18] sm:$0xf0]  ;;  %v5392_v24 = vld [vmem:[%s6452_s7 + $0x428] sm:$0xf0]  ;;  %v4862_v27 = vld [vmem:[%s6452_s7] sm:$0xf] }
  0x13   : > { %2801 = vmatpush.bf16.msra.mxu1 %v2144_v8  ;;  %6324 = vmatpush.bf16.msra.mxu3 %v2144_v8  ;;  %v4875_v25 = vor.u32 %v6053_v21, %v4872_v22  ;;  %v6052_v28 = vld [vmem:[%s6452_s7 + $0x4] sm:$0xf0]  ;;  %v5374_v29 = vld [vmem:[%s6452_s7 + $0x400] sm:$0xf]  ;;  %v5395_v31 = vor.u32 %v6183_v23, %v5392_v24  ;;  %v6055_v34 = vld [vmem:[%s6452_s7 + $0x24] sm:$0xf] }
  0x14   : > { %v6180_v30 = vld [vmem:[%s6452_s7 + $0x404] sm:$0xf0]  ;;  %v4863_v32 = vor.u32 %v6052_v28, %v4862_v27  ;;  %v4880_v35 = vld [vmem:[%s6452_s7 + $0x28] sm:$0xf0]  ;;  %v6185_v36 = vld [vmem:[%s6452_s7 + $0x434] sm:$0xf] }
  0x15   : > { %2148 = vmatpush.bf16.msra.mxu0 %v6312_v9  ;;  %6318 = vmatpush.bf16.msra.mxu2 %v6312_v9  ;;  %v5375_v33 = vor.u32 %v6180_v30, %v5374_v29  ;;  %v5400_v37 = vld [vmem:[%s6452_s7 + $0x438] sm:$0xf0]  ;;  %v4883_v38 = vor.u32 %v6055_v34, %v4880_v35  ;;  %v4870_v39 = vld [vmem:[%s6452_s7 + $0x10] sm:$0xf]  ;;  %v6054_v40 = vld [vmem:[%s6452_s7 + $0x14] sm:$0xf0] }
  0x16   : > { %v5382_v41 = vld [vmem:[%s6452_s7 + $0x410] sm:$0xf]  ;;  %v6182_v42 = vld [vmem:[%s6452_s7 + $0x414] sm:$0xf0]  ;;  %v5403_v43 = vor.u32 %v6185_v36, %v5400_v37  ;;  %v4871_v44 = vor.u32 %v6054_v40, %v4870_v39  ;;  %v6057_v46 = vld [vmem:[%s6452_s7 + $0x34] sm:$0xf] }
  0x17   : > { %2802 = vmatpush.bf16.msra.mxu1 %v6315_v10  ;;  %6325 = vmatpush.bf16.msra.mxu3 %v6315_v10  ;;  %v5383_v45 = vor.u32 %v6182_v42, %v5382_v41  ;;  %v4888_v47 = vld [vmem:[%s6452_s7 + $0x38] sm:$0xf0]  ;;  %v6187_v48 = vld [vmem:[%s6452_s7 + $0x444] sm:$0xf]  ;;  %v5408_v49 = vld [vmem:[%s6452_s7 + $0x448] sm:$0xf0] }
  0x18   : > { %v4891_v50 = vor.u32 %v6057_v46, %v4888_v47  ;;  %v4878_v51 = vld [vmem:[%s6452_s7 + $0x20] sm:$0xf]  ;;  %v6056_v52 = vld [vmem:[%s6452_s7 + $0x24] sm:$0xf0]  ;;  %v5411_v55 = vor.u32 %v6187_v48, %v5408_v49  ;;  %v6059_v58 = vld [vmem:[%s6452_s7 + $0x44] sm:$0xf] }
  0x19   : > { %2149 = vmatpush.bf16.msra.mxu0 %v6311_v14  ;;  %6319 = vmatpush.bf16.msra.mxu2 %v6311_v14  ;;  %v5390_v53 = vld [vmem:[%s6452_s7 + $0x420] sm:$0xf]  ;;  %v6184_v54 = vld [vmem:[%s6452_s7 + $0x424] sm:$0xf0]  ;;  %v4879_v56 = vor.u32 %v6056_v52, %v4878_v51  ;;  %v4896_v59 = vld [vmem:[%s6452_s7 + $0x48] sm:$0xf0] }
  0x1a   : > { %5920 = vmatmul.msk.bf16.vlgmr.msra.gmra.mxu1 %vm1754_vm2, %v4867_v13  ;;  %5985 = vmatmul.msk.bf16.vlgmr.msra.gmra.mxu3 %vm1754_vm2, %v5387_v17  ;;  %v5391_v57 = vor.u32 %v6184_v54, %v5390_v53  ;;  %v6189_v60 = vld [vmem:[%s6452_s7 + $0x454] sm:$0xf]  ;;  %v5416_v61 = vld [vmem:[%s6452_s7 + $0x458] sm:$0xf0]  ;;  %v4899_v62 = vor.u32 %v6059_v58, %v4896_v59  ;;  %v4886_v63 = vld [vmem:[%s6452_s7 + $0x30] sm:$0xf] }
  0x1b   : > { %v6058_v0 = vld [vmem:[%s6452_s7 + $0x34] sm:$0xf0]  ;;  %v5398_v1 = vld [vmem:[%s6452_s7 + $0x430] sm:$0xf]  ;;  %v5419_v3 = vor.u32 %v6189_v60, %v5416_v61  ;;  %v6061_v6 = vld [vmem:[%s6452_s7 + $0x54] sm:$0xf] }
  0x1c   : > { %v6186_v2 = vld [vmem:[%s6452_s7 + $0x434] sm:$0xf0]  ;;  %v4887_v4 = vor.u32 %v6058_v0, %v4886_v63  ;;  %v4904_v7 = vld [vmem:[%s6452_s7 + $0x58] sm:$0xf0]  ;;  %v6191_v8 = vld [vmem:[%s6452_s7 + $0x464] sm:$0xf] }
  0x1d   : > { %2150 = vmatpush.bf16.msra.mxu0 %v6310_v18  ;;  %6320 = vmatpush.bf16.msra.mxu2 %v6310_v18  ;;  %v5399_v5 = vor.u32 %v6186_v2, %v5398_v1  ;;  %v5424_v9 = vld [vmem:[%s6452_s7 + $0x468] sm:$0xf0]  ;;  %v4907_v10 = vor.u32 %v6061_v6, %v4904_v7  ;;  %v4894_v11 = vld [vmem:[%s6452_s7 + $0x40] sm:$0xf]  ;;  %v6060_v12 = vld [vmem:[%s6452_s7 + $0x44] sm:$0xf0] }
  0x1e   : > { %v5406_v13 = vld [vmem:[%s6452_s7 + $0x440] sm:$0xf]  ;;  %v6188_v14 = vld [vmem:[%s6452_s7 + $0x444] sm:$0xf0]  ;;  %v5427_v15 = vor.u32 %v6191_v8, %v5424_v9  ;;  %v4895_v16 = vor.u32 %v6060_v12, %v4894_v11  ;;  %v6063_v18 = vld [vmem:[%s6452_s7 + $0x64] sm:$0xf] }
  0x1f   : > { %v5407_v17 = vor.u32 %v6188_v14, %v5406_v13  ;;  %v5432_v21 = vld [vmem:[%s6452_s7 + $0x478] sm:$0xf0]  ;;  %v4902_v23 = vld [vmem:[%s6452_s7 + $0x50] sm:$0xf]  ;;  %v6062_v24 = vld [vmem:[%s6452_s7 + $0x54] sm:$0xf0] }
  0x20   : > { %v4903_v28 = vor.u32 %v6062_v24, %v4902_v23  ;;  %v6065_v30 = vld [vmem:[%s6452_s7 + $0x74] sm:$0xf]  ;;  %v4910_v35 = vld [vmem:[%s6452_s7 + $0x60] sm:$0xf]  ;;  %v6064_v36 = vld [vmem:[%s6452_s7 + $0x64] sm:$0xf0] }
  0x21   : > { %2151 = vmatpush.bf16.msra.mxu0 %v6309_v19  ;;  %6321 = vmatpush.bf16.msra.mxu2 %v6309_v19  ;;  %v4912_v19 = vld [vmem:[%s6452_s7 + $0x68] sm:$0xf0]  ;;  %v5422_v37 = vld [vmem:[%s6452_s7 + $0x460] sm:$0xf]  ;;  %v4911_v40 = vor.u32 %v6064_v36, %v4910_v35  ;;  %v6067_v42 = vld [vmem:[%s6452_s7 + $0x84] sm:$0xf] }
  0x22   : > { %v4915_v22 = vor.u32 %v6063_v18, %v4912_v19  ;;  %v4918_v47 = vld [vmem:[%s6452_s7 + $0x70] sm:$0xf]  ;;  %v6066_v48 = vld [vmem:[%s6452_s7 + $0x74] sm:$0xf0]  ;;  %v4936_v58 = vld [vmem:[%s6452_s7 + $0x98] sm:$0xf0] }
  0x23   : > { %v6194_v51 = vld [vmem:[%s6452_s7 + $0x474] sm:$0xf0]  ;;  %v4919_v53 = vor.u32 %v6066_v48, %v4918_v47  ;;  %v6199_v59 = vld [vmem:[%s6452_s7 + $0x4a4] sm:$0xf]  ;;  %v5456_v60 = vld [vmem:[%s6452_s7 + $0x4a8] sm:$0xf0] }
  0x24   : > { %v6068_v63 = vld [vmem:[%s6452_s7 + $0x84] sm:$0xf0]  ;;  %v5438_v2 = vld [vmem:[%s6452_s7 + $0x480] sm:$0xf]  ;;  %v5464_v23 = vld [vmem:[%s6452_s7 + $0x4b8] sm:$0xf0] }
  0x25   : > { %2152 = vmatpush.bf16.msra.mxu0 %v6308_v20  ;;  %6322 = vmatpush.bf16.msra.mxu2 %v6308_v20  ;;  %v6193_v20 = vld [vmem:[%s6452_s7 + $0x474] sm:$0xf] }
  0x26   : > { %v5435_v27 = vor.u32 %v6193_v20, %v5432_v21  ;;  %v6071_v20 = vld [vmem:[%s6452_s7 + $0xa4] sm:$0xf]  ;;  %v4944_v21 = vld [vmem:[%s6452_s7 + $0xa8] sm:$0xf0] }
  0x29   : > { %2153 = vmatpush.bf16.msra.mxu0 %v6307_v26  ;;  %6323 = vmatpush.bf16.msra.mxu2 %v6307_v26  ;;  %v6190_v26 = vld [vmem:[%s6452_s7 + $0x454] sm:$0xf0] }
  0x2a   : > { %5921 = vmatmul.msk.bf16.gmra.mxu1 %vm1754_vm2, %v4875_v25  ;;  %5986 = vmatmul.msk.bf16.gmra.mxu3 %vm1754_vm2, %v5395_v31  ;;  %v5414_v25 = vld [vmem:[%s6452_s7 + $0x450] sm:$0xf]  ;;  %v4920_v31 = vld [vmem:[%s6452_s7 + $0x78] sm:$0xf0] }
  0x2b   : > { %v5415_v29 = vor.u32 %v6190_v26, %v5414_v25  ;;  %v4923_v34 = vor.u32 %v6065_v30, %v4920_v31  ;;  %v4947_v25 = vor.u32 %v6071_v20, %v4944_v21  ;;  %v4934_v26 = vld [vmem:[%s6452_s7 + $0x90] sm:$0xf] }
  0x2c   : > { %2154 = vmatmul.bf16.vlgmr.msra.gmra.mxu0 %v4863_v32  ;;  %2474 = vmatmul.bf16.vlgmr.msra.gmra.mxu2 %v5375_v33  ;;  %v6195_v32 = vld [vmem:[%s6452_s7 + $0x484] sm:$0xf]  ;;  %v5440_v33 = vld [vmem:[%s6452_s7 + $0x488] sm:$0xf0]  ;;  %v5446_v31 = vld [vmem:[%s6452_s7 + $0x490] sm:$0xf] }
  0x2d   : > { %v5443_v39 = vor.u32 %v6195_v32, %v5440_v33  ;;  %v6198_v32 = vld [vmem:[%s6452_s7 + $0x494] sm:$0xf0] }
  0x3a   : > { %5922 = vmatmul.msk.bf16.gmra.mxu1 %vm1754_vm2, %v4883_v38  ;;  %5987 = vmatmul.msk.bf16.gmra.mxu3 %vm1754_vm2, %v5403_v43  ;;  %v6192_v38 = vld [vmem:[%s6452_s7 + $0x464] sm:$0xf0]  ;;  %v4928_v43 = vld [vmem:[%s6452_s7 + $0x88] sm:$0xf0] }
  0x3b   : > { %v5423_v41 = vor.u32 %v6192_v38, %v5422_v37  ;;  %v4931_v46 = vor.u32 %v6067_v42, %v4928_v43  ;;  %v5447_v38 = vor.u32 %v6198_v32, %v5446_v31  ;;  %v6075_v32 = vld [vmem:[%s6452_s7 + $0xc4] sm:$0xf] }
  0x3c   : > { %2159 = vmatmul.bf16.gmra.mxu0 %v4871_v44  ;;  %2479 = vmatmul.bf16.gmra.mxu2 %v5383_v45  ;;  %v6197_v44 = vld [vmem:[%s6452_s7 + $0x494] sm:$0xf]  ;;  %v5448_v45 = vld [vmem:[%s6452_s7 + $0x498] sm:$0xf0] }
  0x3d   : > { %v5451_v52 = vor.u32 %v6197_v44, %v5448_v45 }
  0x4a   : > { %5923 = vmatmul.msk.bf16.gmra.mxu1 %vm1754_vm2, %v4891_v50  ;;  %5988 = vmatmul.msk.bf16.gmra.mxu3 %vm1754_vm2, %v5411_v55  ;;  %v5430_v50 = vld [vmem:[%s6452_s7 + $0x470] sm:$0xf] }
  0x4b   : > { %v5431_v54 = vor.u32 %v6194_v51, %v5430_v50  ;;  %v6073_v51 = vld [vmem:[%s6452_s7 + $0xb4] sm:$0xf] }
  0x4c   : > { %2164 = vmatmul.bf16.gmra.mxu0 %v4879_v56  ;;  %2484 = vmatmul.bf16.gmra.mxu2 %v5391_v57  ;;  %v6069_v57 = vld [vmem:[%s6452_s7 + $0x94] sm:$0xf] }
  0x4d   : > { %v4939_v61 = vor.u32 %v6069_v57, %v4936_v58 }
  0x5a   : > { %5924 = vmatmul.msk.bf16.gmra.mxu1 %vm1754_vm2, %v4899_v62  ;;  %5989 = vmatmul.msk.bf16.gmra.mxu3 %vm1754_vm2, %v5419_v3  ;;  %v4926_v62 = vld [vmem:[%s6452_s7 + $0x80] sm:$0xf]  ;;  %v6196_v3 = vld [vmem:[%s6452_s7 + $0x484] sm:$0xf0] }
  0x5b   : > { %v4927_v6 = vor.u32 %v6068_v63, %v4926_v62  ;;  %v5439_v8 = vor.u32 %v6196_v3, %v5438_v2  ;;  %v6200_v2 = vld [vmem:[%s6452_s7 + $0x4a4] sm:$0xf0] }
  0x5c   : > { %2169 = vmatmul.bf16.gmra.mxu0 %v4887_v4  ;;  %2489 = vmatmul.bf16.gmra.mxu2 %v5399_v5  ;;  %v5459_v4 = vor.u32 %v6199_v59, %v5456_v60  ;;  %v6570_v5 = vld [vmem:[%s8561_s2] ss:$0 sm:$0xff] }
  0x5d   : > { %v4942_v60 = vld [vmem:[%s6452_s7 + $0xa0] sm:$0xf] }
  0x6a   : > { %5925 = vmatmul.msk.bf16.gmra.mxu1 %vm1754_vm2, %v4907_v10  ;;  %5990 = vmatmul.msk.bf16.gmra.mxu3 %vm1754_vm2, %v5427_v15  ;;  %v6576_v10 = vld [vmem:[%s8562_s3] ss:$0 sm:$0xff] }
  0x6c   : > { %2174 = vmatmul.bf16.gmra.mxu0 %v4895_v16  ;;  %2494 = vmatmul.bf16.gmra.mxu2 %v5407_v17 }
  0x7a   : > { %5926 = vmatmul.msk.bf16.gmra.mxu1 %vm1754_vm2, %v4915_v22  ;;  %5991 = vmatmul.msk.bf16.gmra.mxu3 %vm1754_vm2, %v5435_v27  ;;  %v6201_v22 = vld [vmem:[%s6452_s7 + $0x4b4] sm:$0xf]  ;;  %v6070_v27 = vld [vmem:[%s6452_s7 + $0x94] sm:$0xf0] }
  0x7b   : > { %v5467_v33 = vor.u32 %v6201_v22, %v5464_v23  ;;  %v4935_v36 = vor.u32 %v6070_v27, %v4934_v26 }
  0x7c   : > { %2179 = vmatmul.bf16.gmra.mxu0 %v4903_v28  ;;  %2499 = vmatmul.bf16.gmra.mxu2 %v5415_v29 }
  0x8a   : > { %5927 = vmatmul.msk.bf16.gmra.mxu1 %vm1754_vm2, %v4923_v34  ;;  %5992 = vmatmul.msk.bf16.gmra.mxu3 %vm1754_vm2, %v5443_v39 }
  0x8c   : > { %2184 = vmatmul.bf16.gmra.mxu0 %v4911_v40  ;;  %2504 = vmatmul.bf16.gmra.mxu2 %v5423_v41 }
  0x97   : > { %v2804_v49 = vpop.f32.mrf.mxu1 }
  0x9a   : > { %5928 = vmatmul.msk.bf16.gmra.mxu1 %vm1754_vm2, %v4931_v46  ;;  %5993 = vmatmul.msk.bf16.gmra.mxu3 %vm1754_vm2, %v5451_v52  ;;  %v4952_v52 = vld [vmem:[%s6452_s7 + $0xb8] sm:$0xf0] }
  0x9b   : > { %v4955_v59 = vor.u32 %v6073_v51, %v4952_v52 }
  0x9c   : > { %2189 = vmatmul.bf16.gmra.mxu0 %v4919_v53  ;;  %2509 = vmatmul.bf16.gmra.mxu2 %v5431_v54  ;;  %v6203_v54 = vld [vmem:[%s6452_s7 + $0x4c4] sm:$0xf] }
  0x9d   : > { %v6555_v55 = vpop.f32.mrf.mxu3 }
  0x9f   : > { %v2806_v56 = vpop.f32.mrf.mxu1 }
  0xa5   : > { %v6563_v0 = vpop.f32.mrf.mxu3 }
  0xa7   : > { %v2809_v1 = vpop.f32.mrf.mxu1 }
  0xa9   : > { %v2155_v7 = vpop.f32.mrf.mxu0 }
  0xaa   : > { %5929 = vmatmul.msk.bf16.gmra.mxu1 %vm1754_vm2, %v4939_v61  ;;  %v2805_v9 = vadd.f32 %v2804_v49, %v2155_v7  ;;  %5994 = vmatmul.msk.bf16.gmra.mxu3 %vm1754_vm2, %v5459_v4 }
  0xac   : > { %v3448_v11 = vmul.f32 %v6570_v5, %v2805_v9  ;;  %2194 = vmatmul.bf16.gmra.mxu0 %v4927_v6  ;;  %2514 = vmatmul.bf16.gmra.mxu2 %v5439_v8 }
  0xad   : > { %v6580_v12 = vpop.f32.mrf.mxu3 }
  0xae   : > { %v3708_v13 = vadd.f32 %v6576_v10, %v3448_v11 }
  0xaf   : > { %v2811_v14 = vpop.f32.mrf.mxu1  ;;  %v6584_v16 = vpop.f32.mrf.mxu2 }
  0xb0   : > { %v3964_v15 = vmax.f32 %v3708_v13, 0.0 }
  0xb1   : > { %v2157_v17 = vpop.f32.mrf.mxu0 }
  0xb2   : > { %v4220_v18 = vpack.c.bf16 %v3964_v15, %v3964_v15  ;;  %v2807_v19 = vadd.f32 %v2806_v56, %v2157_v17  ;;  %v5472_v56 = vld [vmem:[%s6452_s7 + $0x4c8] sm:$0xf0] }
  0xb3   : > { %v5475_v3 = vor.u32 %v6203_v54, %v5472_v56 }
  0xb4   : > { %4477 = vst.msk [vmem:[%s6589_s29] sm:$0xf] %vm4476_vm3, %v4220_v18  ;;  %v3449_v24 = vmul.f32 %v6570_v5, %v2807_v19 }
  0xb5   : > { %v6600_v28 = vpop.f32.mrf.mxu3 }
  0xb6   : > { %v3709_v29 = vadd.f32 %v6576_v10, %v3449_v24 }
  0xb7   : > { %v2814_v30 = vpop.f32.mrf.mxu1  ;;  %v6605_v35 = vpop.f32.mrf.mxu2 }
  0xb8   : > { %v3965_v34 = vmax.f32 %v3709_v29, 0.0 }
  0xb9   : > { %v2160_v37 = vpop.f32.mrf.mxu0 }
  0xba   : > { %5930 = vmatmul.msk.bf16.gmra.mxu1 %vm1754_vm2, %v4947_v25  ;;  %v4221_v39 = vpack.c.bf16 %v3965_v34, %v3965_v34  ;;  %v2810_v40 = vadd.f32 %v2809_v1, %v2160_v37  ;;  %5995 = vmatmul.msk.bf16.gmra.mxu3 %vm1754_vm2, %v5467_v33  ;;  %v5454_v1 = vld [vmem:[%s6452_s7 + $0x4a0] sm:$0xf]  ;;  %v4960_v33 = vld [vmem:[%s6452_s7 + $0xc8] sm:$0xf0]  ;;  %v5480_v37 = vld [vmem:[%s6452_s7 + $0x4d8] sm:$0xf0] }
  0xbc   : > { %4478 = vst.msk [vmem:[%s6589_s29 + $0x4] sm:$0xf] %vm4476_vm3, %v4221_v39  ;;  %v3450_v41 = vmul.f32 %v6570_v5, %v2810_v40  ;;  %2199 = vmatmul.bf16.gmra.mxu0 %v4935_v36  ;;  %2519 = vmatmul.bf16.gmra.mxu2 %v5447_v38  ;;  %v6205_v36 = vld [vmem:[%s6452_s7 + $0x4d4] sm:$0xf]  ;;  %v4950_v40 = vld [vmem:[%s6452_s7 + $0xb0] sm:$0xf] }
  0xbd   : > { %v6612_v42 = vpop.f32.mrf.mxu3 }
  0xbe   : > { %v3710_v43 = vadd.f32 %v6576_v10, %v3450_v41  ;;  %v6074_v41 = vld [vmem:[%s6452_s7 + $0xb4] sm:$0xf0] }
  0xbf   : > { %v2816_v44 = vpop.f32.mrf.mxu1  ;;  %v2480_v46 = vpop.f32.mrf.mxu2  ;;  %v4951_v52 = vor.u32 %v6074_v41, %v4950_v40 }
  0xc0   : > { %v3966_v45 = vmax.f32 %v3710_v43, 0.0  ;;  %v3130_v47 = vadd.f32 %v6555_v55, %v2480_v46  ;;  %v6072_v55 = vld [vmem:[%s6452_s7 + $0xa4] sm:$0xf0]  ;;  %v5462_v46 = vld [vmem:[%s6452_s7 + $0x4b0] sm:$0xf] }
  0xc1   : > { %v2162_v48 = vpop.f32.mrf.mxu0  ;;  %v4943_v8 = vor.u32 %v6072_v55, %v4942_v60 }
  0xc2   : > { %v4222_v49 = vpack.c.bf16 %v3966_v45, %v3966_v45  ;;  %v2812_v50 = vadd.f32 %v2811_v14, %v2162_v48  ;;  %v3578_v53 = vmul.f32 %v6570_v5, %v3130_v47  ;;  %v5455_v14 = vor.u32 %v6200_v2, %v5454_v1  ;;  %v6202_v47 = vld [vmem:[%s6452_s7 + $0x4b4] sm:$0xf0] }
  0xc3   : > { %v5483_v48 = vor.u32 %v6205_v36, %v5480_v37 }
  0xc4   : > { %4479 = vst.msk [vmem:[%s6589_s29 + $0x8] sm:$0xf] %vm4476_vm3, %v4222_v49  ;;  %v3451_v57 = vmul.f32 %v6570_v5, %v2812_v50  ;;  %v3838_v58 = vadd.f32 %v6576_v10, %v3578_v53 }
  0xc5   : > { %v6627_v61 = vpop.f32.mrf.mxu3 }
  0xc6   : > { %v3711_v62 = vadd.f32 %v6576_v10, %v3451_v57  ;;  %v4094_v4 = vmax.f32 %v3838_v58, 0.0  ;;  %v5463_v57 = vor.u32 %v6202_v47, %v5462_v46 }
  0xc7   : > { %v2819_v63 = vpop.f32.mrf.mxu1  ;;  %v2482_v7 = vpop.f32.mrf.mxu2 }
  0xc8   : > { %v3967_v6 = vmax.f32 %v3711_v62, 0.0  ;;  %v4350_v9 = vpack.c.bf16 %v4094_v4, %v4094_v4  ;;  %v3132_v11 = vadd.f32 %v6563_v0, %v2482_v7 }
  0xc9   : > { %v2165_v13 = vpop.f32.mrf.mxu0 }
  0xca   : > { %5931 = vmatmul.msk.bf16.gmra.mxu1 %vm1754_vm2, %v4955_v59  ;;  %v4223_v15 = vpack.c.bf16 %v3967_v6, %v3967_v6  ;;  %v2815_v17 = vadd.f32 %v2814_v30, %v2165_v13  ;;  %5996 = vmatmul.msk.bf16.gmra.mxu3 %vm1754_vm2, %v5475_v3  ;;  %4607 = vst.msk [vmem:[%s6589_s29 + $0x208] sm:$0xf] %vm4476_vm3, %v4350_v9  ;;  %v6077_v13 = vld [vmem:[%s6452_s7 + $0xd4] sm:$0xf] }
  0xcb   : > { %v3579_v18 = vmul.f32 %v6570_v5, %v3132_v11 }
  0xcc   : > { %4480 = vst.msk [vmem:[%s6589_s29 + $0xc] sm:$0xf] %vm4476_vm3, %v4223_v15  ;;  %v3452_v19 = vmul.f32 %v6570_v5, %v2815_v17  ;;  %2204 = vmatmul.bf16.gmra.mxu0 %v4943_v8  ;;  %2524 = vmatmul.bf16.gmra.mxu2 %v5455_v14  ;;  %v4968_v14 = vld [vmem:[%s6452_s7 + $0xd8] sm:$0xf0]  ;;  %v6207_v17 = vld [vmem:[%s6452_s7 + $0x4e4] sm:$0xf] }
  0xcd   : > { %v3839_v0 = vadd.f32 %v6576_v10, %v3579_v18  ;;  %v6642_v20 = vpop.f32.mrf.mxu3  ;;  %v5488_v18 = vld [vmem:[%s6452_s7 + $0x4e8] sm:$0xf0] }
  0xce   : > { %v3712_v21 = vadd.f32 %v6576_v10, %v3452_v19 }
  0xcf   : > { %v2821_v22 = vpop.f32.mrf.mxu1  ;;  %v4095_v23 = vmax.f32 %v3839_v0, 0.0  ;;  %v2485_v25 = vpop.f32.mrf.mxu2 }
  0xd0   : > { %v3968_v24 = vmax.f32 %v3712_v21, 0.0  ;;  %v3135_v27 = vadd.f32 %v6580_v12, %v2485_v25  ;;  %v4963_v12 = vor.u32 %v6075_v32, %v4960_v33  ;;  %v4958_v21 = vld [vmem:[%s6452_s7 + $0xc0] sm:$0xf] }
  0xd1   : > { %v4351_v26 = vpack.c.bf16 %v4095_v23, %v4095_v23  ;;  %v2167_v29 = vpop.f32.mrf.mxu0  ;;  %v6076_v23 = vld [vmem:[%s6452_s7 + $0xc4] sm:$0xf0] }
  0xd2   : > { %v4224_v30 = vpack.c.bf16 %v3968_v24, %v3968_v24  ;;  %v2817_v31 = vadd.f32 %v2816_v44, %v2167_v29  ;;  %v3580_v34 = vmul.f32 %v6570_v5, %v3135_v27  ;;  %v6204_v27 = vld [vmem:[%s6452_s7 + $0x4c4] sm:$0xf0]  ;;  %v5491_v29 = vor.u32 %v6207_v17, %v5488_v18 }
  0xd3   : > { %4608 = vst.msk [vmem:[%s6589_s29 + $0x20c] sm:$0xf] %vm4476_vm3, %v4351_v26  ;;  %v5470_v26 = vld [vmem:[%s6452_s7 + $0x4c0] sm:$0xf]  ;;  %v4959_v33 = vor.u32 %v6076_v23, %v4958_v21 }
  0xd4   : > { %4481 = vst.msk [vmem:[%s6589_s29 + $0x10] sm:$0xf] %vm4476_vm3, %v4224_v30  ;;  %v3453_v38 = vmul.f32 %v6570_v5, %v2817_v31  ;;  %v3840_v39 = vadd.f32 %v6576_v10, %v3580_v34 }
  0xd5   : > { %v6659_v43 = vpop.f32.mrf.mxu3 }
  0xd6   : > { %v3713_v44 = vadd.f32 %v6576_v10, %v3453_v38  ;;  %v4096_v49 = vmax.f32 %v3840_v39, 0.0  ;;  %v5471_v38 = vor.u32 %v6204_v27, %v5470_v26 }
  0xd7   : > { %v2824_v45 = vpop.f32.mrf.mxu1  ;;  %v2487_v51 = vpop.f32.mrf.mxu2 }
  0xd8   : > { %v3969_v50 = vmax.f32 %v3713_v44, 0.0  ;;  %v4352_v53 = vpack.c.bf16 %v4096_v49, %v4096_v49  ;;  %v3137_v54 = vadd.f32 %v6600_v28, %v2487_v51 }
  0xd9   : > { %v2170_v56 = vpop.f32.mrf.mxu0 }
  0xda   : > { %5932 = vmatmul.msk.bf16.gmra.mxu1 %vm1754_vm2, %v4963_v12  ;;  %v4225_v58 = vpack.c.bf16 %v3969_v50, %v3969_v50  ;;  %v2820_v59 = vadd.f32 %v2819_v63, %v2170_v56  ;;  %5997 = vmatmul.msk.bf16.gmra.mxu3 %vm1754_vm2, %v5483_v48  ;;  %4609 = vst.msk [vmem:[%s6589_s29 + $0x210] sm:$0xf] %vm4476_vm3, %v4352_v53  ;;  %v6079_v56 = vld [vmem:[%s6452_s7 + $0xe4] sm:$0xf] }
  0xdb   : > { %v3581_v60 = vmul.f32 %v6570_v5, %v3137_v54 }
  0xdc   : > { %4482 = vst.msk [vmem:[%s6589_s29 + $0x14] sm:$0xf] %vm4476_vm3, %v4225_v58  ;;  %v3454_v55 = vmul.f32 %v6570_v5, %v2820_v59  ;;  %2209 = vmatmul.bf16.gmra.mxu0 %v4951_v52  ;;  %2529 = vmatmul.bf16.gmra.mxu2 %v5463_v57  ;;  %v4976_v57 = vld [vmem:[%s6452_s7 + $0xe8] sm:$0xf0]  ;;  %v6209_v59 = vld [vmem:[%s6452_s7 + $0x4f4] sm:$0xf] }
  0xdd   : > { %v3841_v28 = vadd.f32 %v6576_v10, %v3581_v60  ;;  %v6674_v62 = vpop.f32.mrf.mxu3  ;;  %v5496_v60 = vld [vmem:[%s6452_s7 + $0x4f8] sm:$0xf0] }
  0xde   : > { %v3714_v63 = vadd.f32 %v6576_v10, %v3454_v55 }
  0xdf   : > { %v2826_v1 = vpop.f32.mrf.mxu1  ;;  %v4097_v2 = vmax.f32 %v3841_v28, 0.0  ;;  %v2490_v4 = vpop.f32.mrf.mxu2 }
  0xe0   : > { %v3970_v3 = vmax.f32 %v3714_v63, 0.0  ;;  %v3140_v7 = vadd.f32 %v6612_v42, %v2490_v4  ;;  %v4971_v42 = vor.u32 %v6077_v13, %v4968_v14  ;;  %v4966_v63 = vld [vmem:[%s6452_s7 + $0xd0] sm:$0xf] }
  0xe1   : > { %v4353_v6 = vpack.c.bf16 %v4097_v2, %v4097_v2  ;;  %v2172_v8 = vpop.f32.mrf.mxu0  ;;  %v6078_v2 = vld [vmem:[%s6452_s7 + $0xd4] sm:$0xf0] }
  0xe2   : > { %v4226_v9 = vpack.c.bf16 %v3970_v3, %v3970_v3  ;;  %v2822_v11 = vadd.f32 %v2821_v22, %v2172_v8  ;;  %v3582_v15 = vmul.f32 %v6570_v5, %v3140_v7  ;;  %v6206_v7 = vld [vmem:[%s6452_s7 + $0x4d4] sm:$0xf0]  ;;  %v5499_v8 = vor.u32 %v6209_v59, %v5496_v60 }
  0xe3   : > { %4610 = vst.msk [vmem:[%s6589_s29 + $0x214] sm:$0xf] %vm4476_vm3, %v4353_v6  ;;  %v5478_v6 = vld [vmem:[%s6452_s7 + $0x4d0] sm:$0xf]  ;;  %v4967_v14 = vor.u32 %v6078_v2, %v4966_v63 }
  0xe4   : > { %4483 = vst.msk [vmem:[%s6589_s29 + $0x18] sm:$0xf] %vm4476_vm3, %v4226_v9  ;;  %v3455_v19 = vmul.f32 %v6570_v5, %v2822_v11  ;;  %v3842_v0 = vadd.f32 %v6576_v10, %v3582_v15 }
  0xe5   : > { %v6691_v22 = vpop.f32.mrf.mxu3 }
  0xe6   : > { %v3715_v24 = vadd.f32 %v6576_v10, %v3455_v19  ;;  %v4098_v30 = vmax.f32 %v3842_v0, 0.0  ;;  %v5479_v19 = vor.u32 %v6206_v7, %v5478_v6 }
  0xe7   : > { %v2829_v25 = vpop.f32.mrf.mxu1  ;;  %v2492_v32 = vpop.f32.mrf.mxu2 }
  0xe8   : > { %v3971_v31 = vmax.f32 %v3715_v24, 0.0  ;;  %v4354_v34 = vpack.c.bf16 %v4098_v30, %v4098_v30  ;;  %v3142_v36 = vadd.f32 %v6627_v61, %v2492_v32 }
  0xe9   : > { %v2175_v37 = vpop.f32.mrf.mxu0 }
  0xea   : > { %5933 = vmatmul.msk.bf16.gmra.mxu1 %vm1754_vm2, %v4971_v42  ;;  %v4227_v39 = vpack.c.bf16 %v3971_v31, %v3971_v31  ;;  %v2825_v12 = vadd.f32 %v2824_v45, %v2175_v37  ;;  %5998 = vmatmul.msk.bf16.gmra.mxu3 %vm1754_vm2, %v5491_v29  ;;  %4611 = vst.msk [vmem:[%s6589_s29 + $0x218] sm:$0xf] %vm4476_vm3, %v4354_v34  ;;  %v6081_v37 = vld [vmem:[%s6452_s7 + $0xf4] sm:$0xf] }
  0xeb   : > { %v3583_v40 = vmul.f32 %v6570_v5, %v3142_v36 }
  0xec   : > { %4484 = vst.msk [vmem:[%s6589_s29 + $0x1c] sm:$0xf] %vm4476_vm3, %v4227_v39  ;;  %v3456_v41 = vmul.f32 %v6570_v5, %v2825_v12  ;;  %2214 = vmatmul.bf16.gmra.mxu0 %v4959_v33  ;;  %2534 = vmatmul.bf16.gmra.mxu2 %v5471_v38  ;;  %v4984_v38 = vld [vmem:[%s6452_s7 + $0xf8] sm:$0xf0]  ;;  %v6211_v12 = vld [vmem:[%s6452_s7 + $0x504] sm:$0xf] }
  0xed   : > { %v3843_v61 = vadd.f32 %v6576_v10, %v3583_v40  ;;  %v6706_v44 = vpop.f32.mrf.mxu3  ;;  %v5504_v40 = vld [vmem:[%s6452_s7 + $0x508] sm:$0xf0] }
  0xee   : > { %v3716_v45 = vadd.f32 %v6576_v10, %v3456_v41 }
  0xef   : > { %v2831_v46 = vpop.f32.mrf.mxu1  ;;  %v4099_v47 = vmax.f32 %v3843_v61, 0.0  ;;  %v2495_v49 = vpop.f32.mrf.mxu2 }
  0xf0   : > { %v3972_v48 = vmax.f32 %v3716_v45, 0.0  ;;  %v3145_v51 = vadd.f32 %v6642_v20, %v2495_v49  ;;  %v4979_v20 = vor.u32 %v6079_v56, %v4976_v57  ;;  %v4974_v45 = vld [vmem:[%s6452_s7 + $0xe0] sm:$0xf] }
  0xf1   : > { %v4355_v50 = vpack.c.bf16 %v4099_v47, %v4099_v47  ;;  %v2177_v52 = vpop.f32.mrf.mxu0  ;;  %v6080_v47 = vld [vmem:[%s6452_s7 + $0xe4] sm:$0xf0] }
  0xf2   : > { %v4228_v53 = vpack.c.bf16 %v3972_v48, %v3972_v48  ;;  %v2827_v54 = vadd.f32 %v2826_v1, %v2177_v52  ;;  %v3584_v58 = vmul.f32 %v6570_v5, %v3145_v51  ;;  %v6208_v51 = vld [vmem:[%s6452_s7 + $0x4e4] sm:$0xf0]  ;;  %v5507_v52 = vor.u32 %v6211_v12, %v5504_v40 }
  0xf3   : > { %4612 = vst.msk [vmem:[%s6589_s29 + $0x21c] sm:$0xf] %vm4476_vm3, %v4355_v50  ;;  %v5486_v50 = vld [vmem:[%s6452_s7 + $0x4e0] sm:$0xf]  ;;  %v4975_v57 = vor.u32 %v6080_v47, %v4974_v45 }
  0xf4   : > { %4485 = vst.msk [vmem:[%s6589_s29 + $0x20] sm:$0xf] %vm4476_vm3, %v4228_v53  ;;  %v3457_v55 = vmul.f32 %v6570_v5, %v2827_v54  ;;  %v3844_v28 = vadd.f32 %v6576_v10, %v3584_v58 }
  0xf5   : > { %v6723_v1 = vpop.f32.mrf.mxu3 }
  0xf6   : > { %v3717_v3 = vadd.f32 %v6576_v10, %v3457_v55  ;;  %v4100_v9 = vmax.f32 %v3844_v28, 0.0  ;;  %v5487_v55 = vor.u32 %v6208_v51, %v5486_v50 }
  0xf7   : > { %v2834_v4 = vpop.f32.mrf.mxu1  ;;  %v2497_v13 = vpop.f32.mrf.mxu2 }
  0xf8   : > { %v3973_v11 = vmax.f32 %v3717_v3, 0.0  ;;  %v4356_v15 = vpack.c.bf16 %v4100_v9, %v4100_v9  ;;  %v3147_v17 = vadd.f32 %v6659_v43, %v2497_v13 }
  0xf9   : > { %v2180_v18 = vpop.f32.mrf.mxu0 }
  0xfa   : > { %5934 = vmatmul.msk.bf16.gmra.mxu1 %vm1754_vm2, %v4979_v20  ;;  %v4229_v0 = vpack.c.bf16 %v3973_v11, %v3973_v11  ;;  %v2830_v42 = vadd.f32 %v2829_v25, %v2180_v18  ;;  %5999 = vmatmul.msk.bf16.gmra.mxu3 %vm1754_vm2, %v5499_v8  ;;  %4613 = vst.msk [vmem:[%s6589_s29 + $0x220] sm:$0xf] %vm4476_vm3, %v4356_v15  ;;  %v6083_v18 = vld [vmem:[%s6452_s7 + $0x104] sm:$0xf] }
  0xfb   : > { %v3585_v21 = vmul.f32 %v6570_v5, %v3147_v17 }
  0xfc   : > { %4486 = vst.msk [vmem:[%s6589_s29 + $0x24] sm:$0xf] %vm4476_vm3, %v4229_v0  ;;  %v3458_v23 = vmul.f32 %v6570_v5, %v2830_v42  ;;  %2219 = vmatmul.bf16.gmra.mxu0 %v4967_v14  ;;  %2539 = vmatmul.bf16.gmra.mxu2 %v5479_v19  ;;  %v4992_v19 = vld [vmem:[%s6452_s7 + $0x108] sm:$0xf0]  ;;  %v6213_v42 = vld [vmem:[%s6452_s7 + $0x514] sm:$0xf] }
  0xfd   : > { %v3845_v43 = vadd.f32 %v6576_v10, %v3585_v21  ;;  %v6738_v24 = vpop.f32.mrf.mxu3  ;;  %v5512_v21 = vld [vmem:[%s6452_s7 + $0x518] sm:$0xf0] }
  0xfe   : > { %v3718_v25 = vadd.f32 %v6576_v10, %v3458_v23 }
  0xff   : > { %v2836_v26 = vpop.f32.mrf.mxu1  ;;  %v4101_v27 = vmax.f32 %v3845_v43, 0.0  ;;  %v2500_v30 = vpop.f32.mrf.mxu2 }
 0x100   : > { %v3974_v29 = vmax.f32 %v3718_v25, 0.0  ;;  %v3150_v32 = vadd.f32 %v6674_v62, %v2500_v30  ;;  %v4987_v62 = vor.u32 %v6081_v37, %v4984_v38  ;;  %v4982_v25 = vld [vmem:[%s6452_s7 + $0xf0] sm:$0xf] }
 0x101   : > { %v4357_v31 = vpack.c.bf16 %v4101_v27, %v4101_v27  ;;  %v2182_v33 = vpop.f32.mrf.mxu0  ;;  %v6082_v27 = vld [vmem:[%s6452_s7 + $0xf4] sm:$0xf0] }
 0x102   : > { %v4230_v34 = vpack.c.bf16 %v3974_v29, %v3974_v29  ;;  %v2832_v36 = vadd.f32 %v2831_v46, %v2182_v33  ;;  %v3586_v39 = vmul.f32 %v6570_v5, %v3150_v32  ;;  %v6210_v32 = vld [vmem:[%s6452_s7 + $0x4f4] sm:$0xf0]  ;;  %v5515_v33 = vor.u32 %v6213_v42, %v5512_v21 }
 0x103   : > { %4614 = vst.msk [vmem:[%s6589_s29 + $0x224] sm:$0xf] %vm4476_vm3, %v4357_v31  ;;  %v5494_v31 = vld [vmem:[%s6452_s7 + $0x4f0] sm:$0xf]  ;;  %v4983_v38 = vor.u32 %v6082_v27, %v4982_v25 }
 0x104   : > { %4487 = vst.msk [vmem:[%s6589_s29 + $0x28] sm:$0xf] %vm4476_vm3, %v4230_v34  ;;  %v3459_v41 = vmul.f32 %v6570_v5, %v2832_v36  ;;  %v3846_v61 = vadd.f32 %v6576_v10, %v3586_v39 }
 0x105   : > { %v6755_v46 = vpop.f32.mrf.mxu3 }
 0x106   : > { %v3719_v48 = vadd.f32 %v6576_v10, %v3459_v41  ;;  %v4102_v53 = vmax.f32 %v3846_v61, 0.0  ;;  %v5495_v41 = vor.u32 %v6210_v32, %v5494_v31 }
 0x107   : > { %v2839_v49 = vpop.f32.mrf.mxu1  ;;  %v2502_v56 = vpop.f32.mrf.mxu2 }
 0x108   : > { %v3975_v54 = vmax.f32 %v3719_v48, 0.0  ;;  %v4358_v58 = vpack.c.bf16 %v4102_v53, %v4102_v53  ;;  %v3152_v59 = vadd.f32 %v6691_v22, %v2502_v56 }
 0x109   : > { %v2185_v60 = vpop.f32.mrf.mxu0 }
 0x10a   : > { %5935 = vmatmul.msk.bf16.gmra.mxu1 %vm1754_vm2, %v4987_v62  ;;  %v4231_v28 = vpack.c.bf16 %v3975_v54, %v3975_v54  ;;  %v2835_v20 = vadd.f32 %v2834_v4, %v2185_v60  ;;  %6000 = vmatmul.msk.bf16.gmra.mxu3 %vm1754_vm2, %v5507_v52  ;;  %4615 = vst.msk [vmem:[%s6589_s29 + $0x228] sm:$0xf] %vm4476_vm3, %v4358_v58  ;;  %v6085_v60 = vld [vmem:[%s6452_s7 + $0x114] sm:$0xf] }
 0x10b   : > { %v3587_v63 = vmul.f32 %v6570_v5, %v3152_v59 }
 0x10c   : > { %4488 = vst.msk [vmem:[%s6589_s29 + $0x2c] sm:$0xf] %vm4476_vm3, %v4231_v28  ;;  %v3460_v2 = vmul.f32 %v6570_v5, %v2835_v20  ;;  %2224 = vmatmul.bf16.gmra.mxu0 %v4975_v57  ;;  %2544 = vmatmul.bf16.gmra.mxu2 %v5487_v55  ;;  %v5000_v55 = vld [vmem:[%s6452_s7 + $0x118] sm:$0xf0]  ;;  %v6215_v20 = vld [vmem:[%s6452_s7 + $0x524] sm:$0xf] }
 0x10d   : > { %v3847_v22 = vadd.f32 %v6576_v10, %v3587_v63  ;;  %v6770_v3 = vpop.f32.mrf.mxu3  ;;  %v5520_v63 = vld [vmem:[%s6452_s7 + $0x528] sm:$0xf0] }
 0x10e   : > { %v3720_v4 = vadd.f32 %v6576_v10, %v3460_v2 }
 0x10f   : > { %v2841_v6 = vpop.f32.mrf.mxu1  ;;  %v4103_v7 = vmax.f32 %v3847_v22, 0.0  ;;  %v2505_v9 = vpop.f32.mrf.mxu2 }
 0x110   : > { %v3976_v8 = vmax.f32 %v3720_v4, 0.0  ;;  %v3155_v13 = vadd.f32 %v6706_v44, %v2505_v9  ;;  %v4995_v44 = vor.u32 %v6083_v18, %v4992_v19  ;;  %v4990_v4 = vld [vmem:[%s6452_s7 + $0x100] sm:$0xf] }
 0x111   : > { %v4359_v11 = vpack.c.bf16 %v4103_v7, %v4103_v7  ;;  %v2187_v14 = vpop.f32.mrf.mxu0  ;;  %v6084_v7 = vld [vmem:[%s6452_s7 + $0x104] sm:$0xf0] }
 0x112   : > { %v4232_v15 = vpack.c.bf16 %v3976_v8, %v3976_v8  ;;  %v2837_v17 = vadd.f32 %v2836_v26, %v2187_v14  ;;  %v3588_v0 = vmul.f32 %v6570_v5, %v3155_v13  ;;  %v6212_v13 = vld [vmem:[%s6452_s7 + $0x504] sm:$0xf0]  ;;  %v5523_v14 = vor.u32 %v6215_v20, %v5520_v63 }
 0x113   : > { %4616 = vst.msk [vmem:[%s6589_s29 + $0x22c] sm:$0xf] %vm4476_vm3, %v4359_v11  ;;  %v5502_v11 = vld [vmem:[%s6452_s7 + $0x500] sm:$0xf]  ;;  %v4991_v19 = vor.u32 %v6084_v7, %v4990_v4 }
 0x114   : > { %4489 = vst.msk [vmem:[%s6589_s29 + $0x30] sm:$0xf] %vm4476_vm3, %v4232_v15  ;;  %v3461_v23 = vmul.f32 %v6570_v5, %v2837_v17  ;;  %v3848_v43 = vadd.f32 %v6576_v10, %v3588_v0 }
 0x115   : > { %v6787_v26 = vpop.f32.mrf.mxu3 }
 0x116   : > { %v3721_v29 = vadd.f32 %v6576_v10, %v3461_v23  ;;  %v4104_v34 = vmax.f32 %v3848_v43, 0.0  ;;  %v5503_v23 = vor.u32 %v6212_v13, %v5502_v11 }
 0x117   : > { %v2844_v30 = vpop.f32.mrf.mxu1  ;;  %v2507_v37 = vpop.f32.mrf.mxu2 }
 0x118   : > { %v3977_v36 = vmax.f32 %v3721_v29, 0.0  ;;  %v4360_v39 = vpack.c.bf16 %v4104_v34, %v4104_v34  ;;  %v3157_v12 = vadd.f32 %v6723_v1, %v2507_v37 }
 0x119   : > { %v2190_v40 = vpop.f32.mrf.mxu0 }
 0x11a   : > { %5936 = vmatmul.msk.bf16.gmra.mxu1 %vm1754_vm2, %v4995_v44  ;;  %v4233_v61 = vpack.c.bf16 %v3977_v36, %v3977_v36  ;;  %v2840_v62 = vadd.f32 %v2839_v49, %v2190_v40  ;;  %6001 = vmatmul.msk.bf16.gmra.mxu3 %vm1754_vm2, %v5515_v33  ;;  %4617 = vst.msk [vmem:[%s6589_s29 + $0x230] sm:$0xf] %vm4476_vm3, %v4360_v39  ;;  %v6087_v40 = vld [vmem:[%s6452_s7 + $0x124] sm:$0xf] }
 0x11b   : > { %v3589_v45 = vmul.f32 %v6570_v5, %v3157_v12 }
 0x11c   : > { %4490 = vst.msk [vmem:[%s6589_s29 + $0x34] sm:$0xf] %vm4476_vm3, %v4233_v61  ;;  %v3462_v47 = vmul.f32 %v6570_v5, %v2840_v62  ;;  %2229 = vmatmul.bf16.gmra.mxu0 %v4983_v38  ;;  %2549 = vmatmul.bf16.gmra.mxu2 %v5495_v41  ;;  %v5008_v41 = vld [vmem:[%s6452_s7 + $0x128] sm:$0xf0]  ;;  %v6217_v62 = vld [vmem:[%s6452_s7 + $0x534] sm:$0xf] }
 0x11d   : > { %v3849_v1 = vadd.f32 %v6576_v10, %v3589_v45  ;;  %v6802_v48 = vpop.f32.mrf.mxu3  ;;  %v5528_v45 = vld [vmem:[%s6452_s7 + $0x538] sm:$0xf0] }
 0x11e   : > { %v3722_v49 = vadd.f32 %v6576_v10, %v3462_v47 }
 0x11f   : > { %v2846_v50 = vpop.f32.mrf.mxu1  ;;  %v4105_v51 = vmax.f32 %v3849_v1, 0.0  ;;  %v2510_v53 = vpop.f32.mrf.mxu2 }
 0x120   : > { %v3978_v52 = vmax.f32 %v3722_v49, 0.0  ;;  %v3160_v56 = vadd.f32 %v6738_v24, %v2510_v53  ;;  %v5003_v24 = vor.u32 %v6085_v60, %v5000_v55  ;;  %v4998_v49 = vld [vmem:[%s6452_s7 + $0x110] sm:$0xf] }
 0x121   : > { %v4361_v54 = vpack.c.bf16 %v4105_v51, %v4105_v51  ;;  %v2192_v57 = vpop.f32.mrf.mxu0  ;;  %v6086_v51 = vld [vmem:[%s6452_s7 + $0x114] sm:$0xf0] }
 0x122   : > { %v4234_v58 = vpack.c.bf16 %v3978_v52, %v3978_v52  ;;  %v2842_v59 = vadd.f32 %v2841_v6, %v2192_v57  ;;  %v3590_v28 = vmul.f32 %v6570_v5, %v3160_v56  ;;  %v6214_v56 = vld [vmem:[%s6452_s7 + $0x514] sm:$0xf0]  ;;  %v5531_v57 = vor.u32 %v6217_v62, %v5528_v45 }
 0x123   : > { %4618 = vst.msk [vmem:[%s6589_s29 + $0x234] sm:$0xf] %vm4476_vm3, %v4361_v54  ;;  %v5510_v54 = vld [vmem:[%s6452_s7 + $0x510] sm:$0xf]  ;;  %v4999_v55 = vor.u32 %v6086_v51, %v4998_v49 }
 0x124   : > { %4491 = vst.msk [vmem:[%s6589_s29 + $0x38] sm:$0xf] %vm4476_vm3, %v4234_v58  ;;  %v3463_v2 = vmul.f32 %v6570_v5, %v2842_v59  ;;  %v3850_v22 = vadd.f32 %v6576_v10, %v3590_v28 }
 0x125   : > { %v6819_v6 = vpop.f32.mrf.mxu3 }
 0x126   : > { %v3723_v8 = vadd.f32 %v6576_v10, %v3463_v2  ;;  %v4106_v15 = vmax.f32 %v3850_v22, 0.0  ;;  %v5511_v2 = vor.u32 %v6214_v56, %v5510_v54 }
 0x127   : > { %v2849_v9 = vpop.f32.mrf.mxu1  ;;  %v2512_v18 = vpop.f32.mrf.mxu2 }
 0x128   : > { %v3979_v17 = vmax.f32 %v3723_v8, 0.0  ;;  %v4362_v0 = vpack.c.bf16 %v4106_v15, %v4106_v15  ;;  %v3162_v42 = vadd.f32 %v6755_v46, %v2512_v18 }
 0x129   : > { %v2195_v21 = vpop.f32.mrf.mxu0 }
 0x12a   : > { %5937 = vmatmul.msk.bf16.gmra.mxu1 %vm1754_vm2, %v5003_v24  ;;  %v4235_v43 = vpack.c.bf16 %v3979_v17, %v3979_v17  ;;  %v2845_v44 = vadd.f32 %v2844_v30, %v2195_v21  ;;  %6002 = vmatmul.msk.bf16.gmra.mxu3 %vm1754_vm2, %v5523_v14  ;;  %4619 = vst.msk [vmem:[%s6589_s29 + $0x238] sm:$0xf] %vm4476_vm3, %v4362_v0  ;;  %v6089_v21 = vld [vmem:[%s6452_s7 + $0x134] sm:$0xf] }
 0x12b   : > { %v3591_v25 = vmul.f32 %v6570_v5, %v3162_v42 }
 0x12c   : > { %4492 = vst.msk [vmem:[%s6589_s29 + $0x3c] sm:$0xf] %vm4476_vm3, %v4235_v43  ;;  %v3464_v27 = vmul.f32 %v6570_v5, %v2845_v44  ;;  %2234 = vmatmul.bf16.gmra.mxu0 %v4991_v19  ;;  %2554 = vmatmul.bf16.gmra.mxu2 %v5503_v23  ;;  %v5016_v23 = vld [vmem:[%s6452_s7 + $0x138] sm:$0xf0]  ;;  %v6219_v44 = vld [vmem:[%s6452_s7 + $0x544] sm:$0xf] }
 0x12d   : > { %v3851_v46 = vadd.f32 %v6576_v10, %v3591_v25  ;;  %v6834_v29 = vpop.f32.mrf.mxu3  ;;  %v5536_v25 = vld [vmem:[%s6452_s7 + $0x548] sm:$0xf0] }
 0x12e   : > { %v3724_v30 = vadd.f32 %v6576_v10, %v3464_v27 }
 0x12f   : > { %v2851_v31 = vpop.f32.mrf.mxu1  ;;  %v4107_v32 = vmax.f32 %v3851_v46, 0.0  ;;  %v2515_v34 = vpop.f32.mrf.mxu2 }
 0x130   : > { %v3980_v33 = vmax.f32 %v3724_v30, 0.0  ;;  %v3165_v37 = vadd.f32 %v6770_v3, %v2515_v34  ;;  %v5011_v3 = vor.u32 %v6087_v40, %v5008_v41  ;;  %v5006_v30 = vld [vmem:[%s6452_s7 + $0x120] sm:$0xf] }
 0x131   : > { %v4363_v36 = vpack.c.bf16 %v4107_v32, %v4107_v32  ;;  %v2197_v38 = vpop.f32.mrf.mxu0  ;;  %v6088_v32 = vld [vmem:[%s6452_s7 + $0x124] sm:$0xf0] }
 0x132   : > { %v4236_v39 = vpack.c.bf16 %v3980_v33, %v3980_v33  ;;  %v2847_v12 = vadd.f32 %v2846_v50, %v2197_v38  ;;  %v3592_v61 = vmul.f32 %v6570_v5, %v3165_v37  ;;  %v6216_v37 = vld [vmem:[%s6452_s7 + $0x524] sm:$0xf0]  ;;  %v5539_v38 = vor.u32 %v6219_v44, %v5536_v25 }
 0x133   : > { %4620 = vst.msk [vmem:[%s6589_s29 + $0x23c] sm:$0xf] %vm4476_vm3, %v4363_v36  ;;  %v5518_v36 = vld [vmem:[%s6452_s7 + $0x520] sm:$0xf]  ;;  %v5007_v41 = vor.u32 %v6088_v32, %v5006_v30 }
 0x134   : > { %4493 = vst.msk [vmem:[%s6589_s29 + $0x40] sm:$0xf] %vm4476_vm3, %v4236_v39  ;;  %v3465_v47 = vmul.f32 %v6570_v5, %v2847_v12  ;;  %v3852_v1 = vadd.f32 %v6576_v10, %v3592_v61  ;;  %v6939_v30 = vld [vmem:[%s8562_s3] ss:$0 sm:$0xff] }
 0x135   : > { %v6851_v50 = vpop.f32.mrf.mxu3 }
 0x136   : > { %v3725_v52 = vadd.f32 %v6576_v10, %v3465_v47  ;;  %v4108_v58 = vmax.f32 %v3852_v1, 0.0  ;;  %v5519_v47 = vor.u32 %v6216_v37, %v5518_v36 }
 0x137   : > { %v2854_v53 = vpop.f32.mrf.mxu1  ;;  %v2517_v60 = vpop.f32.mrf.mxu2 }
 0x138   : > { %v3981_v59 = vmax.f32 %v3725_v52, 0.0  ;;  %v4364_v28 = vpack.c.bf16 %v4108_v58, %v4108_v58  ;;  %v3167_v20 = vadd.f32 %v6787_v26, %v2517_v60 }
 0x139   : > { %v2200_v63 = vpop.f32.mrf.mxu0 }
 0x13a   : > { %5938 = vmatmul.msk.bf16.gmra.mxu1 %vm1754_vm2, %v5011_v3  ;;  %v4237_v22 = vpack.c.bf16 %v3981_v59, %v3981_v59  ;;  %v2850_v24 = vadd.f32 %v2849_v9, %v2200_v63  ;;  %6003 = vmatmul.msk.bf16.gmra.mxu3 %vm1754_vm2, %v5531_v57  ;;  %4621 = vst.msk [vmem:[%s6589_s29 + $0x240] sm:$0xf] %vm4476_vm3, %v4364_v28  ;;  %v6091_v63 = vld [vmem:[%s6452_s7 + $0x144] sm:$0xf] }
 0x13b   : > { %v3593_v4 = vmul.f32 %v6570_v5, %v3167_v20 }
 0x13c   : > { %4494 = vst.msk [vmem:[%s6589_s29 + $0x44] sm:$0xf] %vm4476_vm3, %v4237_v22  ;;  %v3466_v7 = vmul.f32 %v6570_v5, %v2850_v24  ;;  %2239 = vmatmul.bf16.gmra.mxu0 %v4999_v55  ;;  %2559 = vmatmul.bf16.gmra.mxu2 %v5511_v2  ;;  %v5024_v2 = vld [vmem:[%s6452_s7 + $0x148] sm:$0xf0]  ;;  %v6221_v24 = vld [vmem:[%s6452_s7 + $0x554] sm:$0xf] }
 0x13d   : > { %v3853_v26 = vadd.f32 %v6576_v10, %v3593_v4  ;;  %v6866_v8 = vpop.f32.mrf.mxu3  ;;  %v5544_v4 = vld [vmem:[%s6452_s7 + $0x558] sm:$0xf0] }
 0x13e   : > { %v3726_v9 = vadd.f32 %v6576_v10, %v3466_v7 }
 0x13f   : > { %v2856_v11 = vpop.f32.mrf.mxu1  ;;  %v4109_v13 = vmax.f32 %v3853_v26, 0.0  ;;  %v2520_v15 = vpop.f32.mrf.mxu2 }
 0x140   : > { %v3982_v14 = vmax.f32 %v3726_v9, 0.0  ;;  %v3170_v18 = vadd.f32 %v6802_v48, %v2520_v15  ;;  %v5019_v48 = vor.u32 %v6089_v21, %v5016_v23  ;;  %v5014_v9 = vld [vmem:[%s6452_s7 + $0x130] sm:$0xf] }
 0x141   : > { %v4365_v17 = vpack.c.bf16 %v4109_v13, %v4109_v13  ;;  %v2202_v19 = vpop.f32.mrf.mxu0  ;;  %v6090_v13 = vld [vmem:[%s6452_s7 + $0x134] sm:$0xf0] }
 0x142   : > { %v4238_v0 = vpack.c.bf16 %v3982_v14, %v3982_v14  ;;  %v2852_v42 = vadd.f32 %v2851_v31, %v2202_v19  ;;  %v3594_v43 = vmul.f32 %v6570_v5, %v3170_v18  ;;  %v6218_v18 = vld [vmem:[%s6452_s7 + $0x534] sm:$0xf0]  ;;  %v5547_v19 = vor.u32 %v6221_v24, %v5544_v4 }
 0x143   : > { %4622 = vst.msk [vmem:[%s6589_s29 + $0x244] sm:$0xf] %vm4476_vm3, %v4365_v17  ;;  %v5526_v17 = vld [vmem:[%s6452_s7 + $0x530] sm:$0xf] }
 0x144   : > { %4495 = vst.msk [vmem:[%s6589_s29 + $0x48] sm:$0xf] %vm4476_vm3, %v4238_v0  ;;  %v3467_v27 = vmul.f32 %v6570_v5, %v2852_v42  ;;  %v3854_v46 = vadd.f32 %v6576_v10, %v3594_v43  ;;  %v5527_v25 = vor.u32 %v6218_v18, %v5526_v17 }
 0x145   : > { %v6883_v31 = vpop.f32.mrf.mxu3 }
 0x146   : > { %v3727_v33 = vadd.f32 %v6576_v10, %v3467_v27  ;;  %v4110_v39 = vmax.f32 %v3854_v46, 0.0  ;;  %v6930_v46 = vld [vmem:[%s8561_s2] ss:$0 sm:$0xff] }
 0x147   : > { %v2859_v34 = vpop.f32.mrf.mxu1  ;;  %v2522_v40 = vpop.f32.mrf.mxu2 }
 0x148   : > { %v3983_v12 = vmax.f32 %v3727_v33, 0.0  ;;  %v4366_v61 = vpack.c.bf16 %v4110_v39, %v4110_v39  ;;  %v3172_v62 = vadd.f32 %v6819_v6, %v2522_v40 }
 0x149   : > { %v2205_v45 = vpop.f32.mrf.mxu0 }
 0x14a   : > { %5939 = vmatmul.msk.bf16.gmra.mxu1 %vm1754_vm2, %v5019_v48  ;;  %v4239_v1 = vpack.c.bf16 %v3983_v12, %v3983_v12  ;;  %v2855_v3 = vadd.f32 %v2854_v53, %v2205_v45  ;;  %6004 = vmatmul.msk.bf16.gmra.mxu3 %vm1754_vm2, %v5539_v38  ;;  %4623 = vst.msk [vmem:[%s6589_s29 + $0x248] sm:$0xf] %vm4476_vm3, %v4366_v61  ;;  %v6093_v45 = vld [vmem:[%s6452_s7 + $0x154] sm:$0xf] }
 0x14b   : > { %v3595_v49 = vmul.f32 %v6570_v5, %v3172_v62 }
 0x14c   : > { %4496 = vst.msk [vmem:[%s6589_s29 + $0x4c] sm:$0xf] %vm4476_vm3, %v4239_v1  ;;  %v3468_v51 = vmul.f32 %v6570_v5, %v2855_v3  ;;  %2244 = vmatmul.bf16.gmra.mxu0 %v5007_v41  ;;  %2564 = vmatmul.bf16.gmra.mxu2 %v5519_v47  ;;  %v5032_v47 = vld [vmem:[%s6452_s7 + $0x158] sm:$0xf0]  ;;  %v6223_v3 = vld [vmem:[%s6452_s7 + $0x564] sm:$0xf] }
 0x14d   : > { %v3855_v6 = vadd.f32 %v6576_v10, %v3595_v49  ;;  %v6898_v52 = vpop.f32.mrf.mxu3  ;;  %v5552_v49 = vld [vmem:[%s6452_s7 + $0x568] sm:$0xf0] }
 0x14e   : > { %v3728_v53 = vadd.f32 %v6576_v10, %v3468_v51 }
 0x14f   : > { %v2861_v54 = vpop.f32.mrf.mxu1  ;;  %v4111_v56 = vmax.f32 %v3855_v6, 0.0  ;;  %v2525_v58 = vpop.f32.mrf.mxu2 }
 0x150   : > { %v3984_v57 = vmax.f32 %v3728_v53, 0.0  ;;  %v3175_v60 = vadd.f32 %v6834_v29, %v2525_v58  ;;  %v5027_v29 = vor.u32 %v6091_v63, %v5024_v2  ;;  %v5022_v53 = vld [vmem:[%s6452_s7 + $0x140] sm:$0xf] }
 0x151   : > { %v4367_v59 = vpack.c.bf16 %v4111_v56, %v4111_v56  ;;  %v2207_v55 = vpop.f32.mrf.mxu0  ;;  %v6092_v56 = vld [vmem:[%s6452_s7 + $0x144] sm:$0xf0] }
 0x152   : > { %v4240_v28 = vpack.c.bf16 %v3984_v57, %v3984_v57  ;;  %v2857_v20 = vadd.f32 %v2856_v11, %v2207_v55  ;;  %v3596_v22 = vmul.f32 %v6570_v5, %v3175_v60  ;;  %v6220_v60 = vld [vmem:[%s6452_s7 + $0x544] sm:$0xf0]  ;;  %v5555_v55 = vor.u32 %v6223_v3, %v5552_v49 }
 0x153   : > { %4624 = vst.msk [vmem:[%s6589_s29 + $0x24c] sm:$0xf] %vm4476_vm3, %v4367_v59  ;;  %v5534_v59 = vld [vmem:[%s6452_s7 + $0x540] sm:$0xf]  ;;  %v5023_v2 = vor.u32 %v6092_v56, %v5022_v53 }
 0x154   : > { %4497 = vst.msk [vmem:[%s6589_s29 + $0x50] sm:$0xf] %vm4476_vm3, %v4240_v28  ;;  %v3469_v7 = vmul.f32 %v6570_v5, %v2857_v20  ;;  %v3856_v26 = vadd.f32 %v6576_v10, %v3596_v22  ;;  %v5015_v5 = vor.u32 %v6090_v13, %v5014_v9 }
 0x155   : > { %v6915_v11 = vpop.f32.mrf.mxu3 }
 0x156   : > { %v3729_v14 = vadd.f32 %v6576_v10, %v3469_v7  ;;  %v4112_v0 = vmax.f32 %v3856_v26, 0.0  ;;  %v5535_v7 = vor.u32 %v6220_v60, %v5534_v59 }
 0x157   : > { %v6918_v15 = vpop.f32.mrf.mxu1  ;;  %v2527_v21 = vpop.f32.mrf.mxu2 }
 0x158   : > { %v3985_v42 = vmax.f32 %v3729_v14, 0.0  ;;  %v4368_v23 = vpack.c.bf16 %v4112_v0, %v4112_v0  ;;  %v3177_v43 = vadd.f32 %v6851_v50, %v2527_v21 }
 0x159   : > { %v2210_v44 = vpop.f32.mrf.mxu0 }
 0x15a   : > { %5940 = vmatmul.msk.bf16.gmra.mxu1 %vm1754_vm2, %v5027_v29  ;;  %v4241_v27 = vpack.c.bf16 %v3985_v42, %v3985_v42  ;;  %v2860_v10 = vadd.f32 %v2859_v34, %v2210_v44  ;;  %6005 = vmatmul.msk.bf16.gmra.mxu3 %vm1754_vm2, %v5547_v19  ;;  %4625 = vst.msk [vmem:[%s6589_s29 + $0x250] sm:$0xf] %vm4476_vm3, %v4368_v23  ;;  %v6095_v44 = vld [vmem:[%s6452_s7 + $0x164] sm:$0xf] }
 0x15b   : > { %v3597_v48 = vmul.f32 %v6930_v46, %v3177_v43 }
 0x15c   : > { %4498 = vst.msk [vmem:[%s6589_s29 + $0x54] sm:$0xf] %vm4476_vm3, %v4241_v27  ;;  %v3470_v50 = vmul.f32 %v6930_v46, %v2860_v10  ;;  %2249 = vmatmul.bf16.gmra.mxu0 %v5015_v5  ;;  %2569 = vmatmul.bf16.gmra.mxu2 %v5527_v25  ;;  %v5040_v25 = vld [vmem:[%s6452_s7 + $0x168] sm:$0xf0]  ;;  %v6225_v10 = vld [vmem:[%s6452_s7 + $0x574] sm:$0xf] }
 0x15d   : > { %v3857_v32 = vadd.f32 %v6939_v30, %v3597_v48  ;;  %v6942_v33 = vpop.f32.mrf.mxu3  ;;  %v5560_v48 = vld [vmem:[%s6452_s7 + $0x578] sm:$0xf0] }
 0x15e   : > { %v3730_v34 = vadd.f32 %v6939_v30, %v3470_v50 }
 0x15f   : > { %v2866_v36 = vpop.f32.mrf.mxu1  ;;  %v4113_v37 = vmax.f32 %v3857_v32, 0.0  ;;  %v2530_v39 = vpop.f32.mrf.mxu2 }
 0x160   : > { %v3986_v38 = vmax.f32 %v3730_v34, 0.0  ;;  %v3180_v40 = vadd.f32 %v6866_v8, %v2530_v39  ;;  %v5035_v8 = vor.u32 %v6093_v45, %v5032_v47  ;;  %v5030_v34 = vld [vmem:[%s6452_s7 + $0x150] sm:$0xf] }
 0x161   : > { %v4369_v12 = vpack.c.bf16 %v4113_v37, %v4113_v37  ;;  %v2212_v41 = vpop.f32.mrf.mxu0  ;;  %v6094_v37 = vld [vmem:[%s6452_s7 + $0x154] sm:$0xf0] }
 0x162   : > { %v4242_v61 = vpack.c.bf16 %v3986_v38, %v3986_v38  ;;  %v2862_v62 = vadd.f32 %v2861_v54, %v2212_v41  ;;  %v3598_v1 = vmul.f32 %v6930_v46, %v3180_v40  ;;  %v6222_v40 = vld [vmem:[%s6452_s7 + $0x554] sm:$0xf0]  ;;  %v5563_v41 = vor.u32 %v6225_v10, %v5560_v48 }
 0x163   : > { %4626 = vst.msk [vmem:[%s6589_s29 + $0x254] sm:$0xf] %vm4476_vm3, %v4369_v12  ;;  %v5542_v12 = vld [vmem:[%s6452_s7 + $0x550] sm:$0xf]  ;;  %v5031_v47 = vor.u32 %v6094_v37, %v5030_v34 }
 0x164   : > { %4499 = vst.msk [vmem:[%s6589_s29 + $0x58] sm:$0xf] %vm4476_vm3, %v4242_v61  ;;  %v3471_v51 = vmul.f32 %v6930_v46, %v2862_v62  ;;  %v3858_v6 = vadd.f32 %v6939_v30, %v3598_v1 }
 0x165   : > { %v6959_v54 = vpop.f32.mrf.mxu3 }
 0x166   : > { %v3731_v57 = vadd.f32 %v6939_v30, %v3471_v51  ;;  %v4114_v28 = vmax.f32 %v3858_v6, 0.0  ;;  %v5543_v51 = vor.u32 %v6222_v40, %v5542_v12 }
 0x167   : > { %v2869_v58 = vpop.f32.mrf.mxu1  ;;  %v2532_v63 = vpop.f32.mrf.mxu2 }
 0x168   : > { %v3987_v20 = vmax.f32 %v3731_v57, 0.0  ;;  %v4370_v22 = vpack.c.bf16 %v4114_v28, %v4114_v28  ;;  %v3182_v24 = vadd.f32 %v6883_v31, %v2532_v63 }
 0x169   : > { %v2215_v4 = vpop.f32.mrf.mxu0 }
 0x16a   : > { %5941 = vmatmul.msk.bf16.gmra.mxu1 %vm1754_vm2, %v5035_v8  ;;  %v4243_v26 = vpack.c.bf16 %v3987_v20, %v3987_v20  ;;  %v2865_v29 = vadd.f32 %v6918_v15, %v2215_v4  ;;  %6006 = vmatmul.msk.bf16.gmra.mxu3 %vm1754_vm2, %v5555_v55  ;;  %4627 = vst.msk [vmem:[%s6589_s29 + $0x258] sm:$0xf] %vm4476_vm3, %v4370_v22  ;;  %v6097_v4 = vld [vmem:[%s6452_s7 + $0x174] sm:$0xf] }
 0x16b   : > { %v3599_v9 = vmul.f32 %v6930_v46, %v3182_v24 }
 0x16c   : > { %4500 = vst.msk [vmem:[%s6589_s29 + $0x5c] sm:$0xf] %vm4476_vm3, %v4243_v26  ;;  %v3472_v13 = vmul.f32 %v6930_v46, %v2865_v29  ;;  %2254 = vmatmul.bf16.gmra.mxu0 %v5023_v2  ;;  %2574 = vmatmul.bf16.gmra.mxu2 %v5535_v7  ;;  %v5048_v7 = vld [vmem:[%s6452_s7 + $0x178] sm:$0xf0]  ;;  %v6227_v29 = vld [vmem:[%s6452_s7 + $0x584] sm:$0xf] }
 0x16d   : > { %v3859_v31 = vadd.f32 %v6939_v30, %v3599_v9  ;;  %v6975_v14 = vpop.f32.mrf.mxu3  ;;  %v5568_v9 = vld [vmem:[%s6452_s7 + $0x588] sm:$0xf0] }
 0x16e   : > { %v3732_v15 = vadd.f32 %v6939_v30, %v3472_v13 }
 0x16f   : > { %v2871_v17 = vpop.f32.mrf.mxu1  ;;  %v4115_v18 = vmax.f32 %v3859_v31, 0.0  ;;  %v2535_v0 = vpop.f32.mrf.mxu2 }
 0x170   : > { %v3988_v19 = vmax.f32 %v3732_v15, 0.0  ;;  %v3185_v21 = vadd.f32 %v6898_v52, %v2535_v0  ;;  %v5043_v52 = vor.u32 %v6095_v44, %v5040_v25  ;;  %v5038_v15 = vld [vmem:[%s6452_s7 + $0x160] sm:$0xf] }
 0x171   : > { %v4371_v42 = vpack.c.bf16 %v4115_v18, %v4115_v18  ;;  %v2217_v5 = vpop.f32.mrf.mxu0  ;;  %v6096_v18 = vld [vmem:[%s6452_s7 + $0x164] sm:$0xf0] }
 0x172   : > { %v4244_v23 = vpack.c.bf16 %v3988_v19, %v3988_v19  ;;  %v2867_v43 = vadd.f32 %v2866_v36, %v2217_v5  ;;  %v3600_v27 = vmul.f32 %v6930_v46, %v3185_v21  ;;  %v6224_v21 = vld [vmem:[%s6452_s7 + $0x564] sm:$0xf0]  ;;  %v5571_v5 = vor.u32 %v6227_v29, %v5568_v9 }
 0x173   : > { %4628 = vst.msk [vmem:[%s6589_s29 + $0x25c] sm:$0xf] %vm4476_vm3, %v4371_v42  ;;  %v5550_v42 = vld [vmem:[%s6452_s7 + $0x560] sm:$0xf]  ;;  %v5039_v25 = vor.u32 %v6096_v18, %v5038_v15 }
 0x174   : > { %4501 = vst.msk [vmem:[%s6589_s29 + $0x60] sm:$0xf] %vm4476_vm3, %v4244_v23  ;;  %v3473_v50 = vmul.f32 %v6930_v46, %v2867_v43  ;;  %v3860_v32 = vadd.f32 %v6939_v30, %v3600_v27 }
 0x175   : > { %v6992_v36 = vpop.f32.mrf.mxu3 }
 0x176   : > { %v3733_v38 = vadd.f32 %v6939_v30, %v3473_v50  ;;  %v4116_v61 = vmax.f32 %v3860_v32, 0.0  ;;  %v5551_v50 = vor.u32 %v6224_v21, %v5550_v42 }
 0x177   : > { %v2874_v39 = vpop.f32.mrf.mxu1  ;;  %v2537_v45 = vpop.f32.mrf.mxu2 }
 0x178   : > { %v3989_v62 = vmax.f32 %v3733_v38, 0.0  ;;  %v4372_v1 = vpack.c.bf16 %v4116_v61, %v4116_v61  ;;  %v3187_v3 = vadd.f32 %v6915_v11, %v2537_v45 }
 0x179   : > { %v2220_v49 = vpop.f32.mrf.mxu0 }
 0x17a   : > { %5942 = vmatmul.msk.bf16.gmra.mxu1 %vm1754_vm2, %v5043_v52  ;;  %v4245_v6 = vpack.c.bf16 %v3989_v62, %v3989_v62  ;;  %v2870_v8 = vadd.f32 %v2869_v58, %v2220_v49  ;;  %6007 = vmatmul.msk.bf16.gmra.mxu3 %vm1754_vm2, %v5563_v41  ;;  %4629 = vst.msk [vmem:[%s6589_s29 + $0x260] sm:$0xf] %vm4476_vm3, %v4372_v1  ;;  %v6099_v49 = vld [vmem:[%s6452_s7 + $0x184] sm:$0xf] }
 0x17b   : > { %v3601_v53 = vmul.f32 %v6930_v46, %v3187_v3 }
 0x17c   : > { %4502 = vst.msk [vmem:[%s6589_s29 + $0x64] sm:$0xf] %vm4476_vm3, %v4245_v6  ;;  %v3474_v56 = vmul.f32 %v6930_v46, %v2870_v8  ;;  %2259 = vmatmul.bf16.gmra.mxu0 %v5031_v47  ;;  %2579 = vmatmul.bf16.gmra.mxu2 %v5543_v51  ;;  %v5056_v51 = vld [vmem:[%s6452_s7 + $0x188] sm:$0xf0]  ;;  %v6229_v8 = vld [vmem:[%s6452_s7 + $0x594] sm:$0xf] }
 0x17d   : > { %v3861_v11 = vadd.f32 %v6939_v30, %v3601_v53  ;;  %v7007_v57 = vpop.f32.mrf.mxu3  ;;  %v5576_v53 = vld [vmem:[%s6452_s7 + $0x598] sm:$0xf0] }
 0x17e   : > { %v3734_v58 = vadd.f32 %v6939_v30, %v3474_v56 }
 0x17f   : > { %v2876_v59 = vpop.f32.mrf.mxu1  ;;  %v4117_v60 = vmax.f32 %v3861_v11, 0.0  ;;  %v2540_v28 = vpop.f32.mrf.mxu2 }
 0x180   : > { %v3990_v55 = vmax.f32 %v3734_v58, 0.0  ;;  %v3190_v63 = vadd.f32 %v6942_v33, %v2540_v28  ;;  %v5051_v33 = vor.u32 %v6097_v4, %v5048_v7  ;;  %v5046_v58 = vld [vmem:[%s6452_s7 + $0x170] sm:$0xf] }
 0x181   : > { %v4373_v20 = vpack.c.bf16 %v4117_v60, %v4117_v60  ;;  %v2222_v2 = vpop.f32.mrf.mxu0  ;;  %v6098_v60 = vld [vmem:[%s6452_s7 + $0x174] sm:$0xf0] }
 0x182   : > { %v4246_v22 = vpack.c.bf16 %v3990_v55, %v3990_v55  ;;  %v2872_v24 = vadd.f32 %v2871_v17, %v2222_v2  ;;  %v3602_v26 = vmul.f32 %v6930_v46, %v3190_v63  ;;  %v6226_v63 = vld [vmem:[%s6452_s7 + $0x574] sm:$0xf0]  ;;  %v5579_v2 = vor.u32 %v6229_v8, %v5576_v53 }
 0x183   : > { %4630 = vst.msk [vmem:[%s6589_s29 + $0x264] sm:$0xf] %vm4476_vm3, %v4373_v20  ;;  %v5558_v20 = vld [vmem:[%s6452_s7 + $0x570] sm:$0xf]  ;;  %v5047_v7 = vor.u32 %v6098_v60, %v5046_v58 }
 0x184   : > { %4503 = vst.msk [vmem:[%s6589_s29 + $0x68] sm:$0xf] %vm4476_vm3, %v4246_v22  ;;  %v3475_v13 = vmul.f32 %v6930_v46, %v2872_v24  ;;  %v3862_v31 = vadd.f32 %v6939_v30, %v3602_v26 }
 0x185   : > { %v7024_v17 = vpop.f32.mrf.mxu3 }
 0x186   : > { %v3735_v19 = vadd.f32 %v6939_v30, %v3475_v13  ;;  %v4118_v23 = vmax.f32 %v3862_v31, 0.0  ;;  %v5559_v13 = vor.u32 %v6226_v63, %v5558_v20 }
 0x187   : > { %v2879_v0 = vpop.f32.mrf.mxu1  ;;  %v2542_v44 = vpop.f32.mrf.mxu2 }
 0x188   : > { %v3991_v43 = vmax.f32 %v3735_v19, 0.0  ;;  %v4374_v27 = vpack.c.bf16 %v4118_v23, %v4118_v23  ;;  %v3192_v10 = vadd.f32 %v6959_v54, %v2542_v44 }
 0x189   : > { %v2225_v48 = vpop.f32.mrf.mxu0 }
 0x18a   : > { %5943 = vmatmul.msk.bf16.gmra.mxu1 %vm1754_vm2, %v5051_v33  ;;  %v4247_v32 = vpack.c.bf16 %v3991_v43, %v3991_v43  ;;  %v2875_v52 = vadd.f32 %v2874_v39, %v2225_v48  ;;  %6008 = vmatmul.msk.bf16.gmra.mxu3 %vm1754_vm2, %v5571_v5  ;;  %4631 = vst.msk [vmem:[%s6589_s29 + $0x268] sm:$0xf] %vm4476_vm3, %v4374_v27  ;;  %v6101_v48 = vld [vmem:[%s6452_s7 + $0x194] sm:$0xf] }
 0x18b   : > { %v3603_v34 = vmul.f32 %v6930_v46, %v3192_v10 }
 0x18c   : > { %4504 = vst.msk [vmem:[%s6589_s29 + $0x6c] sm:$0xf] %vm4476_vm3, %v4247_v32  ;;  %v3476_v37 = vmul.f32 %v6930_v46, %v2875_v52  ;;  %2264 = vmatmul.bf16.gmra.mxu0 %v5039_v25  ;;  %2584 = vmatmul.bf16.gmra.mxu2 %v5551_v50  ;;  %v5064_v50 = vld [vmem:[%s6452_s7 + $0x198] sm:$0xf0]  ;;  %v6231_v52 = vld [vmem:[%s6452_s7 + $0x5a4] sm:$0xf] }
 0x18d   : > { %v3863_v54 = vadd.f32 %v6939_v30, %v3603_v34  ;;  %v7039_v38 = vpop.f32.mrf.mxu3  ;;  %v5584_v34 = vld [vmem:[%s6452_s7 + $0x5a8] sm:$0xf0] }
 0x18e   : > { %v3736_v39 = vadd.f32 %v6939_v30, %v3476_v37 }
 0x18f   : > { %v2881_v12 = vpop.f32.mrf.mxu1  ;;  %v4119_v40 = vmax.f32 %v3863_v54, 0.0  ;;  %v2545_v61 = vpop.f32.mrf.mxu2 }
 0x190   : > { %v3992_v41 = vmax.f32 %v3736_v39, 0.0  ;;  %v3195_v45 = vadd.f32 %v6975_v14, %v2545_v61  ;;  %v5059_v14 = vor.u32 %v6099_v49, %v5056_v51  ;;  %v5054_v39 = vld [vmem:[%s6452_s7 + $0x180] sm:$0xf] }
 0x191   : > { %v4375_v62 = vpack.c.bf16 %v4119_v40, %v4119_v40  ;;  %v2227_v47 = vpop.f32.mrf.mxu0  ;;  %v6100_v40 = vld [vmem:[%s6452_s7 + $0x184] sm:$0xf0] }
 0x192   : > { %v4248_v1 = vpack.c.bf16 %v3992_v41, %v3992_v41  ;;  %v2877_v3 = vadd.f32 %v2876_v59, %v2227_v47  ;;  %v3604_v6 = vmul.f32 %v6930_v46, %v3195_v45  ;;  %v6228_v45 = vld [vmem:[%s6452_s7 + $0x584] sm:$0xf0]  ;;  %v5587_v47 = vor.u32 %v6231_v52, %v5584_v34 }
 0x193   : > { %4632 = vst.msk [vmem:[%s6589_s29 + $0x26c] sm:$0xf] %vm4476_vm3, %v4375_v62  ;;  %v5566_v62 = vld [vmem:[%s6452_s7 + $0x580] sm:$0xf]  ;;  %v5055_v51 = vor.u32 %v6100_v40, %v5054_v39 }
 0x194   : > { %4505 = vst.msk [vmem:[%s6589_s29 + $0x70] sm:$0xf] %vm4476_vm3, %v4248_v1  ;;  %v3477_v56 = vmul.f32 %v6930_v46, %v2877_v3  ;;  %v3864_v11 = vadd.f32 %v6939_v30, %v3604_v6 }
 0x195   : > { %v7056_v59 = vpop.f32.mrf.mxu3 }
 0x196   : > { %v3737_v55 = vadd.f32 %v6939_v30, %v3477_v56  ;;  %v4120_v22 = vmax.f32 %v3864_v11, 0.0  ;;  %v5567_v56 = vor.u32 %v6228_v45, %v5566_v62 }
 0x197   : > { %v2884_v28 = vpop.f32.mrf.mxu1  ;;  %v2547_v4 = vpop.f32.mrf.mxu2 }
 0x198   : > { %v3993_v24 = vmax.f32 %v3737_v55, 0.0  ;;  %v4376_v26 = vpack.c.bf16 %v4120_v22, %v4120_v22  ;;  %v3197_v29 = vadd.f32 %v6992_v36, %v2547_v4 }
 0x199   : > { %v2230_v9 = vpop.f32.mrf.mxu0 }
 0x19a   : > { %5944 = vmatmul.msk.bf16.gmra.mxu1 %vm1754_vm2, %v5059_v14  ;;  %v4249_v31 = vpack.c.bf16 %v3993_v24, %v3993_v24  ;;  %v2880_v33 = vadd.f32 %v2879_v0, %v2230_v9  ;;  %6009 = vmatmul.msk.bf16.gmra.mxu3 %vm1754_vm2, %v5579_v2  ;;  %4633 = vst.msk [vmem:[%s6589_s29 + $0x270] sm:$0xf] %vm4476_vm3, %v4376_v26  ;;  %v6103_v9 = vld [vmem:[%s6452_s7 + $0x1a4] sm:$0xf] }
 0x19b   : > { %v3605_v15 = vmul.f32 %v6930_v46, %v3197_v29 }
 0x19c   : > { %4506 = vst.msk [vmem:[%s6589_s29 + $0x74] sm:$0xf] %vm4476_vm3, %v4249_v31  ;;  %v3478_v18 = vmul.f32 %v6930_v46, %v2880_v33  ;;  %2269 = vmatmul.bf16.gmra.mxu0 %v5047_v7  ;;  %2589 = vmatmul.bf16.gmra.mxu2 %v5559_v13  ;;  %v5072_v13 = vld [vmem:[%s6452_s7 + $0x1a8] sm:$0xf0]  ;;  %v6233_v33 = vld [vmem:[%s6452_s7 + $0x5b4] sm:$0xf] }
 0x19d   : > { %v3865_v36 = vadd.f32 %v6939_v30, %v3605_v15  ;;  %v7071_v19 = vpop.f32.mrf.mxu3  ;;  %v5592_v15 = vld [vmem:[%s6452_s7 + $0x5b8] sm:$0xf0] }
 0x19e   : > { %v3738_v0 = vadd.f32 %v6939_v30, %v3478_v18 }
 0x19f   : > { %v2886_v42 = vpop.f32.mrf.mxu1  ;;  %v4121_v21 = vmax.f32 %v3865_v36, 0.0  ;;  %v2550_v23 = vpop.f32.mrf.mxu2 }
 0x1a0   : > { %v3994_v5 = vmax.f32 %v3738_v0, 0.0  ;;  %v3200_v44 = vadd.f32 %v7007_v57, %v2550_v23  ;;  %v5067_v57 = vor.u32 %v6101_v48, %v5064_v50  ;;  %v5062_v0 = vld [vmem:[%s6452_s7 + $0x190] sm:$0xf] }
 0x1a1   : > { %v4377_v43 = vpack.c.bf16 %v4121_v21, %v4121_v21  ;;  %v2232_v25 = vpop.f32.mrf.mxu0  ;;  %v6102_v21 = vld [vmem:[%s6452_s7 + $0x194] sm:$0xf0] }
 0x1a2   : > { %v4250_v27 = vpack.c.bf16 %v3994_v5, %v3994_v5  ;;  %v2882_v10 = vadd.f32 %v2881_v12, %v2232_v25  ;;  %v3606_v32 = vmul.f32 %v6930_v46, %v3200_v44  ;;  %v6230_v44 = vld [vmem:[%s6452_s7 + $0x594] sm:$0xf0]  ;;  %v5595_v25 = vor.u32 %v6233_v33, %v5592_v15 }
 0x1a3   : > { %4634 = vst.msk [vmem:[%s6589_s29 + $0x274] sm:$0xf] %vm4476_vm3, %v4377_v43  ;;  %v5574_v43 = vld [vmem:[%s6452_s7 + $0x590] sm:$0xf]  ;;  %v5063_v50 = vor.u32 %v6102_v21, %v5062_v0 }
 0x1a4   : > { %4507 = vst.msk [vmem:[%s6589_s29 + $0x78] sm:$0xf] %vm4476_vm3, %v4250_v27  ;;  %v3479_v37 = vmul.f32 %v6930_v46, %v2882_v10  ;;  %v3866_v54 = vadd.f32 %v6939_v30, %v3606_v32 }
 0x1a5   : > { %v7088_v12 = vpop.f32.mrf.mxu3 }
 0x1a6   : > { %v3739_v41 = vadd.f32 %v6939_v30, %v3479_v37  ;;  %v4122_v1 = vmax.f32 %v3866_v54, 0.0  ;;  %v5575_v37 = vor.u32 %v6230_v44, %v5574_v43 }
 0x1a7   : > { %v2889_v61 = vpop.f32.mrf.mxu1  ;;  %v2552_v49 = vpop.f32.mrf.mxu2 }
 0x1a8   : > { %v3995_v3 = vmax.f32 %v3739_v41, 0.0  ;;  %v4378_v6 = vpack.c.bf16 %v4122_v1, %v4122_v1  ;;  %v3202_v8 = vadd.f32 %v7024_v17, %v2552_v49 }
 0x1a9   : > { %v2235_v53 = vpop.f32.mrf.mxu0 }
 0x1aa   : > { %5945 = vmatmul.msk.bf16.gmra.mxu1 %vm1754_vm2, %v5067_v57  ;;  %v4251_v11 = vpack.c.bf16 %v3995_v3, %v3995_v3  ;;  %v2885_v14 = vadd.f32 %v2884_v28, %v2235_v53  ;;  %6010 = vmatmul.msk.bf16.gmra.mxu3 %vm1754_vm2, %v5587_v47  ;;  %4635 = vst.msk [vmem:[%s6589_s29 + $0x278] sm:$0xf] %vm4476_vm3, %v4378_v6  ;;  %v6105_v53 = vld [vmem:[%s6452_s7 + $0x1b4] sm:$0xf] }
 0x1ab   : > { %v3607_v58 = vmul.f32 %v6930_v46, %v3202_v8 }
 0x1ac   : > { %4508 = vst.msk [vmem:[%s6589_s29 + $0x7c] sm:$0xf] %vm4476_vm3, %v4251_v11  ;;  %v3480_v60 = vmul.f32 %v6930_v46, %v2885_v14  ;;  %2274 = vmatmul.bf16.gmra.mxu0 %v5055_v51  ;;  %2594 = vmatmul.bf16.gmra.mxu2 %v5567_v56  ;;  %v5080_v56 = vld [vmem:[%s6452_s7 + $0x1b8] sm:$0xf0]  ;;  %v6235_v14 = vld [vmem:[%s6452_s7 + $0x5c4] sm:$0xf] }
 0x1ad   : > { %v3867_v17 = vadd.f32 %v6939_v30, %v3607_v58  ;;  %v7103_v55 = vpop.f32.mrf.mxu3  ;;  %v5600_v58 = vld [vmem:[%s6452_s7 + $0x5c8] sm:$0xf0] }
 0x1ae   : > { %v3740_v28 = vadd.f32 %v6939_v30, %v3480_v60 }
 0x1af   : > { %v2891_v20 = vpop.f32.mrf.mxu1  ;;  %v4123_v63 = vmax.f32 %v3867_v17, 0.0  ;;  %v2555_v22 = vpop.f32.mrf.mxu2 }
 0x1b0   : > { %v3996_v2 = vmax.f32 %v3740_v28, 0.0  ;;  %v3205_v4 = vadd.f32 %v7039_v38, %v2555_v22  ;;  %v5075_v38 = vor.u32 %v6103_v9, %v5072_v13  ;;  %v5070_v28 = vld [vmem:[%s6452_s7 + $0x1a0] sm:$0xf] }
 0x1b1   : > { %v4379_v24 = vpack.c.bf16 %v4123_v63, %v4123_v63  ;;  %v2237_v7 = vpop.f32.mrf.mxu0  ;;  %v6104_v63 = vld [vmem:[%s6452_s7 + $0x1a4] sm:$0xf0] }
 0x1b2   : > { %v4252_v26 = vpack.c.bf16 %v3996_v2, %v3996_v2  ;;  %v2887_v29 = vadd.f32 %v2886_v42, %v2237_v7  ;;  %v3608_v31 = vmul.f32 %v6930_v46, %v3205_v4  ;;  %v6232_v4 = vld [vmem:[%s6452_s7 + $0x5a4] sm:$0xf0]  ;;  %v5603_v7 = vor.u32 %v6235_v14, %v5600_v58 }
 0x1b3   : > { %4636 = vst.msk [vmem:[%s6589_s29 + $0x27c] sm:$0xf] %vm4476_vm3, %v4379_v24  ;;  %v5582_v24 = vld [vmem:[%s6452_s7 + $0x5a0] sm:$0xf]  ;;  %v5071_v13 = vor.u32 %v6104_v63, %v5070_v28 }
 0x1b4   : > { %4509 = vst.msk [vmem:[%s6589_s29 + $0x80] sm:$0xf] %vm4476_vm3, %v4252_v26  ;;  %v3481_v18 = vmul.f32 %v6930_v46, %v2887_v29  ;;  %v3868_v36 = vadd.f32 %v6939_v30, %v3608_v31 }
 0x1b5   : > { %v7120_v42 = vpop.f32.mrf.mxu3 }
 0x1b6   : > { %v3741_v5 = vadd.f32 %v6939_v30, %v3481_v18  ;;  %v4124_v27 = vmax.f32 %v3868_v36, 0.0  ;;  %v5583_v18 = vor.u32 %v6232_v4, %v5582_v24 }
 0x1b7   : > { %v2894_v23 = vpop.f32.mrf.mxu1  ;;  %v2557_v48 = vpop.f32.mrf.mxu2 }
 0x1b8   : > { %v3997_v10 = vmax.f32 %v3741_v5, 0.0  ;;  %v4380_v32 = vpack.c.bf16 %v4124_v27, %v4124_v27  ;;  %v3207_v52 = vadd.f32 %v7056_v59, %v2557_v48 }
 0x1b9   : > { %v2240_v34 = vpop.f32.mrf.mxu0 }
 0x1ba   : > { %5946 = vmatmul.msk.bf16.gmra.mxu1 %vm1754_vm2, %v5075_v38  ;;  %v4253_v54 = vpack.c.bf16 %v3997_v10, %v3997_v10  ;;  %v2890_v57 = vadd.f32 %v2889_v61, %v2240_v34  ;;  %6011 = vmatmul.msk.bf16.gmra.mxu3 %vm1754_vm2, %v5595_v25  ;;  %4637 = vst.msk [vmem:[%s6589_s29 + $0x280] sm:$0xf] %vm4476_vm3, %v4380_v32  ;;  %v6107_v34 = vld [vmem:[%s6452_s7 + $0x1c4] sm:$0xf] }
 0x1bb   : > { %v3609_v39 = vmul.f32 %v6930_v46, %v3207_v52 }
 0x1bc   : > { %4510 = vst.msk [vmem:[%s6589_s29 + $0x84] sm:$0xf] %vm4476_vm3, %v4253_v54  ;;  %v3482_v40 = vmul.f32 %v6930_v46, %v2890_v57  ;;  %2279 = vmatmul.bf16.gmra.mxu0 %v5063_v50  ;;  %2599 = vmatmul.bf16.gmra.mxu2 %v5575_v37  ;;  %v5088_v37 = vld [vmem:[%s6452_s7 + $0x1c8] sm:$0xf0]  ;;  %v6237_v57 = vld [vmem:[%s6452_s7 + $0x5d4] sm:$0xf] }
 0x1bd   : > { %v3869_v59 = vadd.f32 %v6939_v30, %v3609_v39  ;;  %v7135_v41 = vpop.f32.mrf.mxu3  ;;  %v5608_v39 = vld [vmem:[%s6452_s7 + $0x5d8] sm:$0xf0] }
 0x1be   : > { %v3742_v61 = vadd.f32 %v6939_v30, %v3482_v40 }
 0x1bf   : > { %v2896_v62 = vpop.f32.mrf.mxu1  ;;  %v4125_v45 = vmax.f32 %v3869_v59, 0.0  ;;  %v2560_v1 = vpop.f32.mrf.mxu2 }
 0x1c0   : > { %v3998_v47 = vmax.f32 %v3742_v61, 0.0  ;;  %v3210_v49 = vadd.f32 %v7071_v19, %v2560_v1  ;;  %v5083_v19 = vor.u32 %v6105_v53, %v5080_v56  ;;  %v5078_v61 = vld [vmem:[%s6452_s7 + $0x1b0] sm:$0xf] }
 0x1c1   : > { %v4381_v3 = vpack.c.bf16 %v4125_v45, %v4125_v45  ;;  %v2242_v51 = vpop.f32.mrf.mxu0  ;;  %v6106_v45 = vld [vmem:[%s6452_s7 + $0x1b4] sm:$0xf0] }
 0x1c2   : > { %v4254_v6 = vpack.c.bf16 %v3998_v47, %v3998_v47  ;;  %v2892_v8 = vadd.f32 %v2891_v20, %v2242_v51  ;;  %v3610_v11 = vmul.f32 %v6930_v46, %v3210_v49  ;;  %v6234_v49 = vld [vmem:[%s6452_s7 + $0x5b4] sm:$0xf0]  ;;  %v5611_v51 = vor.u32 %v6237_v57, %v5608_v39 }
 0x1c3   : > { %4638 = vst.msk [vmem:[%s6589_s29 + $0x284] sm:$0xf] %vm4476_vm3, %v4381_v3  ;;  %v5590_v3 = vld [vmem:[%s6452_s7 + $0x5b0] sm:$0xf]  ;;  %v5079_v56 = vor.u32 %v6106_v45, %v5078_v61 }
 0x1c4   : > { %4511 = vst.msk [vmem:[%s6589_s29 + $0x88] sm:$0xf] %vm4476_vm3, %v4254_v6  ;;  %v3483_v60 = vmul.f32 %v6930_v46, %v2892_v8  ;;  %v3870_v17 = vadd.f32 %v6939_v30, %v3610_v11 }
 0x1c5   : > { %v7152_v20 = vpop.f32.mrf.mxu3 }
 0x1c6   : > { %v3743_v2 = vadd.f32 %v6939_v30, %v3483_v60  ;;  %v4126_v26 = vmax.f32 %v3870_v17, 0.0  ;;  %v5591_v60 = vor.u32 %v6234_v49, %v5590_v3 }
 0x1c7   : > { %v2899_v22 = vpop.f32.mrf.mxu1  ;;  %v2562_v9 = vpop.f32.mrf.mxu2 }
 0x1c8   : > { %v3999_v29 = vmax.f32 %v3743_v2, 0.0  ;;  %v4382_v31 = vpack.c.bf16 %v4126_v26, %v4126_v26  ;;  %v3212_v33 = vadd.f32 %v7088_v12, %v2562_v9 }
 0x1c9   : > { %v2245_v15 = vpop.f32.mrf.mxu0 }
 0x1ca   : > { %5947 = vmatmul.msk.bf16.gmra.mxu1 %vm1754_vm2, %v5083_v19  ;;  %v4255_v36 = vpack.c.bf16 %v3999_v29, %v3999_v29  ;;  %v2895_v38 = vadd.f32 %v2894_v23, %v2245_v15  ;;  %6012 = vmatmul.msk.bf16.gmra.mxu3 %vm1754_vm2, %v5603_v7  ;;  %4639 = vst.msk [vmem:[%s6589_s29 + $0x288] sm:$0xf] %vm4476_vm3, %v4382_v31  ;;  %v6109_v15 = vld [vmem:[%s6452_s7 + $0x1d4] sm:$0xf] }
 0x1cb   : > { %v3611_v0 = vmul.f32 %v6930_v46, %v3212_v33 }
 0x1cc   : > { %4512 = vst.msk [vmem:[%s6589_s29 + $0x8c] sm:$0xf] %vm4476_vm3, %v4255_v36  ;;  %v3484_v21 = vmul.f32 %v6930_v46, %v2895_v38  ;;  %2284 = vmatmul.bf16.gmra.mxu0 %v5071_v13  ;;  %2604 = vmatmul.bf16.gmra.mxu2 %v5583_v18  ;;  %v5096_v18 = vld [vmem:[%s6452_s7 + $0x1d8] sm:$0xf0]  ;;  %v6239_v38 = vld [vmem:[%s6452_s7 + $0x5e4] sm:$0xf] }
 0x1cd   : > { %v3871_v12 = vadd.f32 %v6939_v30, %v3611_v0  ;;  %v7167_v5 = vpop.f32.mrf.mxu3  ;;  %v5616_v0 = vld [vmem:[%s6452_s7 + $0x5e8] sm:$0xf0] }
 0x1ce   : > { %v3744_v23 = vadd.f32 %v6939_v30, %v3484_v21 }
 0x1cf   : > { %v2901_v43 = vpop.f32.mrf.mxu1  ;;  %v4127_v44 = vmax.f32 %v3871_v12, 0.0  ;;  %v2565_v27 = vpop.f32.mrf.mxu2 }
 0x1d0   : > { %v4000_v25 = vmax.f32 %v3744_v23, 0.0  ;;  %v3215_v48 = vadd.f32 %v7103_v55, %v2565_v27  ;;  %v5091_v55 = vor.u32 %v6107_v34, %v5088_v37  ;;  %v5086_v23 = vld [vmem:[%s6452_s7 + $0x1c0] sm:$0xf] }
 0x1d1   : > { %v4383_v10 = vpack.c.bf16 %v4127_v44, %v4127_v44  ;;  %v2247_v50 = vpop.f32.mrf.mxu0  ;;  %v6108_v44 = vld [vmem:[%s6452_s7 + $0x1c4] sm:$0xf0] }
 0x1d2   : > { %v4256_v32 = vpack.c.bf16 %v4000_v25, %v4000_v25  ;;  %v2897_v52 = vadd.f32 %v2896_v62, %v2247_v50  ;;  %v3612_v54 = vmul.f32 %v6930_v46, %v3215_v48  ;;  %v6236_v48 = vld [vmem:[%s6452_s7 + $0x5c4] sm:$0xf0]  ;;  %v5619_v50 = vor.u32 %v6239_v38, %v5616_v0 }
 0x1d3   : > { %4640 = vst.msk [vmem:[%s6589_s29 + $0x28c] sm:$0xf] %vm4476_vm3, %v4383_v10  ;;  %v5598_v10 = vld [vmem:[%s6452_s7 + $0x5c0] sm:$0xf]  ;;  %v5087_v37 = vor.u32 %v6108_v44, %v5086_v23 }
 0x1d4   : > { %4513 = vst.msk [vmem:[%s6589_s29 + $0x90] sm:$0xf] %vm4476_vm3, %v4256_v32  ;;  %v3485_v40 = vmul.f32 %v6930_v46, %v2897_v52  ;;  %v3872_v59 = vadd.f32 %v6939_v30, %v3612_v54 }
 0x1d5   : > { %v7184_v62 = vpop.f32.mrf.mxu3 }
 0x1d6   : > { %v3745_v47 = vadd.f32 %v6939_v30, %v3485_v40  ;;  %v4128_v6 = vmax.f32 %v3872_v59, 0.0  ;;  %v5599_v40 = vor.u32 %v6236_v48, %v5598_v10 }
 0x1d7   : > { %v2904_v1 = vpop.f32.mrf.mxu1  ;;  %v2567_v53 = vpop.f32.mrf.mxu2 }
 0x1d8   : > { %v4001_v8 = vmax.f32 %v3745_v47, 0.0  ;;  %v4384_v11 = vpack.c.bf16 %v4128_v6, %v4128_v6  ;;  %v3217_v14 = vadd.f32 %v7120_v42, %v2567_v53 }
 0x1d9   : > { %v2250_v58 = vpop.f32.mrf.mxu0 }
 0x1da   : > { %5948 = vmatmul.msk.bf16.gmra.mxu1 %vm1754_vm2, %v5091_v55  ;;  %v4257_v17 = vpack.c.bf16 %v4001_v8, %v4001_v8  ;;  %v2900_v19 = vadd.f32 %v2899_v22, %v2250_v58  ;;  %6013 = vmatmul.msk.bf16.gmra.mxu3 %vm1754_vm2, %v5611_v51  ;;  %4641 = vst.msk [vmem:[%s6589_s29 + $0x290] sm:$0xf] %vm4476_vm3, %v4384_v11  ;;  %v6111_v58 = vld [vmem:[%s6452_s7 + $0x1e4] sm:$0xf] }
 0x1db   : > { %v3613_v28 = vmul.f32 %v6930_v46, %v3217_v14 }
 0x1dc   : > { %4514 = vst.msk [vmem:[%s6589_s29 + $0x94] sm:$0xf] %vm4476_vm3, %v4257_v17  ;;  %v3486_v63 = vmul.f32 %v6930_v46, %v2900_v19  ;;  %2289 = vmatmul.bf16.gmra.mxu0 %v5079_v56  ;;  %2609 = vmatmul.bf16.gmra.mxu2 %v5591_v60  ;;  %v5104_v60 = vld [vmem:[%s6452_s7 + $0x1e8] sm:$0xf0]  ;;  %v6241_v19 = vld [vmem:[%s6452_s7 + $0x5f4] sm:$0xf] }
 0x1dd   : > { %v3873_v42 = vadd.f32 %v6939_v30, %v3613_v28  ;;  %v7199_v2 = vpop.f32.mrf.mxu3  ;;  %v5624_v28 = vld [vmem:[%s6452_s7 + $0x5f8] sm:$0xf0] }
 0x1de   : > { %v3746_v22 = vadd.f32 %v6939_v30, %v3486_v63 }
 0x1df   : > { %v2906_v24 = vpop.f32.mrf.mxu1  ;;  %v4129_v4 = vmax.f32 %v3873_v42, 0.0  ;;  %v2570_v26 = vpop.f32.mrf.mxu2 }
 0x1e0   : > { %v4002_v7 = vmax.f32 %v3746_v22, 0.0  ;;  %v3220_v9 = vadd.f32 %v7135_v41, %v2570_v26  ;;  %v5099_v41 = vor.u32 %v6109_v15, %v5096_v18  ;;  %v5094_v22 = vld [vmem:[%s6452_s7 + $0x1d0] sm:$0xf] }
 0x1e1   : > { %v4385_v29 = vpack.c.bf16 %v4129_v4, %v4129_v4  ;;  %v2252_v13 = vpop.f32.mrf.mxu0  ;;  %v6110_v4 = vld [vmem:[%s6452_s7 + $0x1d4] sm:$0xf0] }
 0x1e2   : > { %v4258_v31 = vpack.c.bf16 %v4002_v7, %v4002_v7  ;;  %v2902_v33 = vadd.f32 %v2901_v43, %v2252_v13  ;;  %v3614_v36 = vmul.f32 %v6930_v46, %v3220_v9  ;;  %v6238_v9 = vld [vmem:[%s6452_s7 + $0x5d4] sm:$0xf0]  ;;  %v5627_v13 = vor.u32 %v6241_v19, %v5624_v28 }
 0x1e3   : > { %4642 = vst.msk [vmem:[%s6589_s29 + $0x294] sm:$0xf] %vm4476_vm3, %v4385_v29  ;;  %v5606_v29 = vld [vmem:[%s6452_s7 + $0x5d0] sm:$0xf]  ;;  %v5095_v18 = vor.u32 %v6110_v4, %v5094_v22  ;;  %v7304_v22 = vld [vmem:[%s8562_s3] ss:$0 sm:$0xff] }
 0x1e4   : > { %4515 = vst.msk [vmem:[%s6589_s29 + $0x98] sm:$0xf] %vm4476_vm3, %v4258_v31  ;;  %v3487_v21 = vmul.f32 %v6930_v46, %v2902_v33  ;;  %v3874_v12 = vadd.f32 %v6939_v30, %v3614_v36 }
 0x1e5   : > { %v7216_v43 = vpop.f32.mrf.mxu3 }
 0x1e6   : > { %v3747_v25 = vadd.f32 %v6939_v30, %v3487_v21  ;;  %v4130_v32 = vmax.f32 %v3874_v12, 0.0  ;;  %v5607_v21 = vor.u32 %v6238_v9, %v5606_v29 }
 0x1e7   : > { %v2909_v27 = vpop.f32.mrf.mxu1  ;;  %v2572_v34 = vpop.f32.mrf.mxu2 }
 0x1e8   : > { %v4003_v52 = vmax.f32 %v3747_v25, 0.0  ;;  %v4386_v54 = vpack.c.bf16 %v4130_v32, %v4130_v32  ;;  %v3222_v57 = vadd.f32 %v7152_v20, %v2572_v34 }
 0x1e9   : > { %v2255_v39 = vpop.f32.mrf.mxu0 }
 0x1ea   : > { %5949 = vmatmul.msk.bf16.gmra.mxu1 %vm1754_vm2, %v5099_v41  ;;  %v4259_v59 = vpack.c.bf16 %v4003_v52, %v4003_v52  ;;  %v2905_v55 = vadd.f32 %v2904_v1, %v2255_v39  ;;  %6014 = vmatmul.msk.bf16.gmra.mxu3 %vm1754_vm2, %v5619_v50  ;;  %4643 = vst.msk [vmem:[%s6589_s29 + $0x298] sm:$0xf] %vm4476_vm3, %v4386_v54  ;;  %v6113_v39 = vld [vmem:[%s6452_s7 + $0x1f4] sm:$0xf] }
 0x1eb   : > { %v3615_v61 = vmul.f32 %v6930_v46, %v3222_v57 }
 0x1ec   : > { %4516 = vst.msk [vmem:[%s6589_s29 + $0x9c] sm:$0xf] %vm4476_vm3, %v4259_v59  ;;  %v3488_v45 = vmul.f32 %v6930_v46, %v2905_v55  ;;  %2294 = vmatmul.bf16.gmra.mxu0 %v5087_v37  ;;  %2614 = vmatmul.bf16.gmra.mxu2 %v5599_v40  ;;  %v5112_v40 = vld [vmem:[%s6452_s7 + $0x1f8] sm:$0xf0]  ;;  %v6243_v55 = vld [vmem:[%s6452_s7 + $0x604] sm:$0xf] }
 0x1ed   : > { %v3875_v20 = vadd.f32 %v6939_v30, %v3615_v61  ;;  %v7231_v47 = vpop.f32.mrf.mxu3  ;;  %v5632_v61 = vld [vmem:[%s6452_s7 + $0x608] sm:$0xf0] }
 0x1ee   : > { %v3748_v1 = vadd.f32 %v6939_v30, %v3488_v45 }
 0x1ef   : > { %v2911_v3 = vpop.f32.mrf.mxu1  ;;  %v4131_v49 = vmax.f32 %v3875_v20, 0.0  ;;  %v2575_v6 = vpop.f32.mrf.mxu2 }
 0x1f0   : > { %v4004_v51 = vmax.f32 %v3748_v1, 0.0  ;;  %v3225_v53 = vadd.f32 %v7167_v5, %v2575_v6  ;;  %v5107_v5 = vor.u32 %v6111_v58, %v5104_v60  ;;  %v5102_v1 = vld [vmem:[%s6452_s7 + $0x1e0] sm:$0xf] }
 0x1f1   : > { %v4387_v8 = vpack.c.bf16 %v4131_v49, %v4131_v49  ;;  %v2257_v56 = vpop.f32.mrf.mxu0  ;;  %v6112_v49 = vld [vmem:[%s6452_s7 + $0x1e4] sm:$0xf0] }
 0x1f2   : > { %v4260_v11 = vpack.c.bf16 %v4004_v51, %v4004_v51  ;;  %v2907_v14 = vadd.f32 %v2906_v24, %v2257_v56  ;;  %v3616_v17 = vmul.f32 %v6930_v46, %v3225_v53  ;;  %v6240_v53 = vld [vmem:[%s6452_s7 + $0x5e4] sm:$0xf0]  ;;  %v5635_v56 = vor.u32 %v6243_v55, %v5632_v61 }
 0x1f3   : > { %4644 = vst.msk [vmem:[%s6589_s29 + $0x29c] sm:$0xf] %vm4476_vm3, %v4387_v8  ;;  %v5614_v8 = vld [vmem:[%s6452_s7 + $0x5e0] sm:$0xf] }
 0x1f4   : > { %4517 = vst.msk [vmem:[%s6589_s29 + $0xa0] sm:$0xf] %vm4476_vm3, %v4260_v11  ;;  %v3489_v63 = vmul.f32 %v6930_v46, %v2907_v14  ;;  %v3876_v42 = vadd.f32 %v6939_v30, %v3616_v17  ;;  %v5615_v28 = vor.u32 %v6240_v53, %v5614_v8 }
 0x1f5   : > { %v7248_v24 = vpop.f32.mrf.mxu3 }
 0x1f6   : > { %v3749_v7 = vadd.f32 %v6939_v30, %v3489_v63  ;;  %v4132_v31 = vmax.f32 %v3876_v42, 0.0  ;;  %v7295_v42 = vld [vmem:[%s8561_s2] ss:$0 sm:$0xff] }
 0x1f7   : > { %v2914_v26 = vpop.f32.mrf.mxu1  ;;  %v2577_v15 = vpop.f32.mrf.mxu2 }
 0x1f8   : > { %v4005_v33 = vmax.f32 %v3749_v7, 0.0  ;;  %v4388_v36 = vpack.c.bf16 %v4132_v31, %v4132_v31  ;;  %v3227_v38 = vadd.f32 %v7184_v62, %v2577_v15 }
 0x1f9   : > { %v2260_v0 = vpop.f32.mrf.mxu0 }
 0x1fa   : > { %5950 = vmatmul.msk.bf16.gmra.mxu1 %vm1754_vm2, %v5107_v5  ;;  %v4261_v12 = vpack.c.bf16 %v4005_v33, %v4005_v33  ;;  %v2910_v41 = vadd.f32 %v2909_v27, %v2260_v0  ;;  %6015 = vmatmul.msk.bf16.gmra.mxu3 %vm1754_vm2, %v5627_v13  ;;  %4645 = vst.msk [vmem:[%s6589_s29 + $0x2a0] sm:$0xf] %vm4476_vm3, %v4388_v36  ;;  %v6115_v0 = vld [vmem:[%s6452_s7 + $0x204] sm:$0xf] }
 0x1fb   : > { %v3617_v23 = vmul.f32 %v6930_v46, %v3227_v38 }
 0x1fc   : > { %4518 = vst.msk [vmem:[%s6589_s29 + $0xa4] sm:$0xf] %vm4476_vm3, %v4261_v12  ;;  %v3490_v44 = vmul.f32 %v6930_v46, %v2910_v41  ;;  %2299 = vmatmul.bf16.gmra.mxu0 %v5095_v18  ;;  %2619 = vmatmul.bf16.gmra.mxu2 %v5607_v21  ;;  %v5120_v21 = vld [vmem:[%s6452_s7 + $0x208] sm:$0xf0]  ;;  %v6245_v41 = vld [vmem:[%s6452_s7 + $0x614] sm:$0xf] }
 0x1fd   : > { %v3877_v62 = vadd.f32 %v6939_v30, %v3617_v23  ;;  %v7263_v25 = vpop.f32.mrf.mxu3  ;;  %v5640_v23 = vld [vmem:[%s6452_s7 + $0x618] sm:$0xf0] }
 0x1fe   : > { %v3750_v27 = vadd.f32 %v6939_v30, %v3490_v44 }
 0x1ff   : > { %v2916_v10 = vpop.f32.mrf.mxu1  ;;  %v4133_v48 = vmax.f32 %v3877_v62, 0.0  ;;  %v2580_v32 = vpop.f32.mrf.mxu2 }
 0x200   : > { %v4006_v50 = vmax.f32 %v3750_v27, 0.0  ;;  %v3230_v34 = vadd.f32 %v7199_v2, %v2580_v32  ;;  %v5115_v2 = vor.u32 %v6113_v39, %v5112_v40  ;;  %v5110_v27 = vld [vmem:[%s6452_s7 + $0x1f0] sm:$0xf] }
 0x201   : > { %v4389_v52 = vpack.c.bf16 %v4133_v48, %v4133_v48  ;;  %v2262_v37 = vpop.f32.mrf.mxu0  ;;  %v6114_v48 = vld [vmem:[%s6452_s7 + $0x1f4] sm:$0xf0] }
 0x202   : > { %v4262_v54 = vpack.c.bf16 %v4006_v50, %v4006_v50  ;;  %v2912_v57 = vadd.f32 %v2911_v3, %v2262_v37  ;;  %v3618_v59 = vmul.f32 %v6930_v46, %v3230_v34  ;;  %v6242_v34 = vld [vmem:[%s6452_s7 + $0x5f4] sm:$0xf0]  ;;  %v5643_v37 = vor.u32 %v6245_v41, %v5640_v23 }
 0x203   : > { %4646 = vst.msk [vmem:[%s6589_s29 + $0x2a4] sm:$0xf] %vm4476_vm3, %v4389_v52  ;;  %v5622_v52 = vld [vmem:[%s6452_s7 + $0x5f0] sm:$0xf]  ;;  %v5111_v40 = vor.u32 %v6114_v48, %v5110_v27 }
 0x204   : > { %4519 = vst.msk [vmem:[%s6589_s29 + $0xa8] sm:$0xf] %vm4476_vm3, %v4262_v54  ;;  %v3491_v45 = vmul.f32 %v6930_v46, %v2912_v57  ;;  %v3878_v20 = vadd.f32 %v6939_v30, %v3618_v59  ;;  %v5103_v46 = vor.u32 %v6112_v49, %v5102_v1 }
 0x205   : > { %v7280_v3 = vpop.f32.mrf.mxu3 }
 0x206   : > { %v3751_v51 = vadd.f32 %v6939_v30, %v3491_v45  ;;  %v4134_v11 = vmax.f32 %v3878_v20, 0.0  ;;  %v5623_v45 = vor.u32 %v6242_v34, %v5622_v52 }
 0x207   : > { %v7283_v6 = vpop.f32.mrf.mxu1  ;;  %v2582_v58 = vpop.f32.mrf.mxu2 }
 0x208   : > { %v4007_v14 = vmax.f32 %v3751_v51, 0.0  ;;  %v4390_v60 = vpack.c.bf16 %v4134_v11, %v4134_v11  ;;  %v3232_v17 = vadd.f32 %v7216_v43, %v2582_v58 }
 0x209   : > { %v2265_v19 = vpop.f32.mrf.mxu0 }
 0x20a   : > { %5951 = vmatmul.msk.bf16.gmra.mxu1 %vm1754_vm2, %v5115_v2  ;;  %v4263_v63 = vpack.c.bf16 %v4007_v14, %v4007_v14  ;;  %v2915_v30 = vadd.f32 %v2914_v26, %v2265_v19  ;;  %6016 = vmatmul.msk.bf16.gmra.mxu3 %vm1754_vm2, %v5635_v56  ;;  %4647 = vst.msk [vmem:[%s6589_s29 + $0x2a8] sm:$0xf] %vm4476_vm3, %v4390_v60  ;;  %v6117_v19 = vld [vmem:[%s6452_s7 + $0x214] sm:$0xf] }
 0x20b   : > { %v3619_v5 = vmul.f32 %v7295_v42, %v3232_v17 }
 0x20c   : > { %4520 = vst.msk [vmem:[%s6589_s29 + $0xac] sm:$0xf] %vm4476_vm3, %v4263_v63  ;;  %v3492_v43 = vmul.f32 %v7295_v42, %v2915_v30  ;;  %2304 = vmatmul.bf16.gmra.mxu0 %v5103_v46  ;;  %2624 = vmatmul.bf16.gmra.mxu2 %v5615_v28  ;;  %v5128_v28 = vld [vmem:[%s6452_s7 + $0x218] sm:$0xf0]  ;;  %v6247_v30 = vld [vmem:[%s6452_s7 + $0x624] sm:$0xf] }
 0x20d   : > { %v3879_v4 = vadd.f32 %v7304_v22, %v3619_v5  ;;  %v7307_v7 = vpop.f32.mrf.mxu3  ;;  %v5648_v5 = vld [vmem:[%s6452_s7 + $0x628] sm:$0xf0] }
 0x20e   : > { %v3752_v26 = vadd.f32 %v7304_v22, %v3492_v43 }
 0x20f   : > { %v2921_v29 = vpop.f32.mrf.mxu1  ;;  %v4135_v9 = vmax.f32 %v3879_v4, 0.0  ;;  %v2585_v31 = vpop.f32.mrf.mxu2 }
 0x210   : > { %v4008_v13 = vmax.f32 %v3752_v26, 0.0  ;;  %v3235_v15 = vadd.f32 %v7231_v47, %v2585_v31  ;;  %v5123_v47 = vor.u32 %v6115_v0, %v5120_v21  ;;  %v5118_v26 = vld [vmem:[%s6452_s7 + $0x200] sm:$0xf] }
 0x211   : > { %v4391_v33 = vpack.c.bf16 %v4135_v9, %v4135_v9  ;;  %v2267_v18 = vpop.f32.mrf.mxu0  ;;  %v6116_v9 = vld [vmem:[%s6452_s7 + $0x204] sm:$0xf0] }
 0x212   : > { %v4264_v36 = vpack.c.bf16 %v4008_v13, %v4008_v13  ;;  %v2917_v38 = vadd.f32 %v2916_v10, %v2267_v18  ;;  %v3620_v12 = vmul.f32 %v7295_v42, %v3235_v15  ;;  %v6244_v15 = vld [vmem:[%s6452_s7 + $0x604] sm:$0xf0]  ;;  %v5651_v18 = vor.u32 %v6247_v30, %v5648_v5 }
 0x213   : > { %4648 = vst.msk [vmem:[%s6589_s29 + $0x2ac] sm:$0xf] %vm4476_vm3, %v4391_v33  ;;  %v5630_v33 = vld [vmem:[%s6452_s7 + $0x600] sm:$0xf]  ;;  %v5119_v21 = vor.u32 %v6116_v9, %v5118_v26 }
 0x214   : > { %4521 = vst.msk [vmem:[%s6589_s29 + $0xb0] sm:$0xf] %vm4476_vm3, %v4264_v36  ;;  %v3493_v44 = vmul.f32 %v7295_v42, %v2917_v38  ;;  %v3880_v62 = vadd.f32 %v7304_v22, %v3620_v12 }
 0x215   : > { %v7324_v10 = vpop.f32.mrf.mxu3 }
 0x216   : > { %v3753_v50 = vadd.f32 %v7304_v22, %v3493_v44  ;;  %v4136_v54 = vmax.f32 %v3880_v62, 0.0  ;;  %v5631_v44 = vor.u32 %v6244_v15, %v5630_v33 }
 0x217   : > { %v2924_v32 = vpop.f32.mrf.mxu1  ;;  %v2587_v39 = vpop.f32.mrf.mxu2 }
 0x218   : > { %v4009_v57 = vmax.f32 %v3753_v50, 0.0  ;;  %v4392_v59 = vpack.c.bf16 %v4136_v54, %v4136_v54  ;;  %v3237_v55 = vadd.f32 %v7248_v24, %v2587_v39 }
 0x219   : > { %v2270_v61 = vpop.f32.mrf.mxu0 }
 0x21a   : > { %5952 = vmatmul.msk.bf16.gmra.mxu1 %vm1754_vm2, %v5123_v47  ;;  %v4265_v20 = vpack.c.bf16 %v4009_v57, %v4009_v57  ;;  %v2920_v2 = vadd.f32 %v7283_v6, %v2270_v61  ;;  %6017 = vmatmul.msk.bf16.gmra.mxu3 %vm1754_vm2, %v5643_v37  ;;  %4649 = vst.msk [vmem:[%s6589_s29 + $0x2b0] sm:$0xf] %vm4476_vm3, %v4392_v59  ;;  %v6119_v61 = vld [vmem:[%s6452_s7 + $0x224] sm:$0xf] }
 0x21b   : > { %v3621_v1 = vmul.f32 %v7295_v42, %v3237_v55 }
 0x21c   : > { %4522 = vst.msk [vmem:[%s6589_s29 + $0xb4] sm:$0xf] %vm4476_vm3, %v4265_v20  ;;  %v3494_v49 = vmul.f32 %v7295_v42, %v2920_v2  ;;  %2309 = vmatmul.bf16.gmra.mxu0 %v5111_v40  ;;  %2629 = vmatmul.bf16.gmra.mxu2 %v5623_v45  ;;  %v5136_v45 = vld [vmem:[%s6452_s7 + $0x228] sm:$0xf0]  ;;  %v6249_v2 = vld [vmem:[%s6452_s7 + $0x634] sm:$0xf] }
 0x21d   : > { %v3881_v24 = vadd.f32 %v7304_v22, %v3621_v1  ;;  %v7340_v51 = vpop.f32.mrf.mxu3  ;;  %v5656_v1 = vld [vmem:[%s6452_s7 + $0x638] sm:$0xf0] }
 0x21e   : > { %v3754_v6 = vadd.f32 %v7304_v22, %v3494_v49 }
 0x21f   : > { %v2926_v8 = vpop.f32.mrf.mxu1  ;;  %v4137_v53 = vmax.f32 %v3881_v24, 0.0  ;;  %v2590_v11 = vpop.f32.mrf.mxu2 }
 0x220   : > { %v4010_v56 = vmax.f32 %v3754_v6, 0.0  ;;  %v3240_v58 = vadd.f32 %v7263_v25, %v2590_v11  ;;  %v5131_v25 = vor.u32 %v6117_v19, %v5128_v28  ;;  %v5126_v6 = vld [vmem:[%s6452_s7 + $0x210] sm:$0xf] }
 0x221   : > { %v4393_v14 = vpack.c.bf16 %v4137_v53, %v4137_v53  ;;  %v2272_v46 = vpop.f32.mrf.mxu0  ;;  %v6118_v53 = vld [vmem:[%s6452_s7 + $0x214] sm:$0xf0] }
 0x222   : > { %v4266_v60 = vpack.c.bf16 %v4010_v56, %v4010_v56  ;;  %v2922_v17 = vadd.f32 %v2921_v29, %v2272_v46  ;;  %v3622_v63 = vmul.f32 %v7295_v42, %v3240_v58  ;;  %v6246_v58 = vld [vmem:[%s6452_s7 + $0x614] sm:$0xf0]  ;;  %v5659_v46 = vor.u32 %v6249_v2, %v5656_v1 }
 0x223   : > { %4650 = vst.msk [vmem:[%s6589_s29 + $0x2b4] sm:$0xf] %vm4476_vm3, %v4393_v14  ;;  %v5638_v14 = vld [vmem:[%s6452_s7 + $0x610] sm:$0xf]  ;;  %v5127_v28 = vor.u32 %v6118_v53, %v5126_v6 }
 0x224   : > { %4523 = vst.msk [vmem:[%s6589_s29 + $0xb8] sm:$0xf] %vm4476_vm3, %v4266_v60  ;;  %v3495_v43 = vmul.f32 %v7295_v42, %v2922_v17  ;;  %v3882_v4 = vadd.f32 %v7304_v22, %v3622_v63 }
 0x225   : > { %v7357_v29 = vpop.f32.mrf.mxu3 }
 0x226   : > { %v3755_v13 = vadd.f32 %v7304_v22, %v3495_v43  ;;  %v4138_v36 = vmax.f32 %v3882_v4, 0.0  ;;  %v5639_v43 = vor.u32 %v6246_v58, %v5638_v14 }
 0x227   : > { %v2929_v31 = vpop.f32.mrf.mxu1  ;;  %v2592_v0 = vpop.f32.mrf.mxu2 }
 0x228   : > { %v4011_v38 = vmax.f32 %v3755_v13, 0.0  ;;  %v4394_v12 = vpack.c.bf16 %v4138_v36, %v4138_v36  ;;  %v3242_v41 = vadd.f32 %v7280_v3, %v2592_v0 }
 0x229   : > { %v2275_v23 = vpop.f32.mrf.mxu0 }
 0x22a   : > { %5953 = vmatmul.msk.bf16.gmra.mxu1 %vm1754_vm2, %v5131_v25  ;;  %v4267_v62 = vpack.c.bf16 %v4011_v38, %v4011_v38  ;;  %v2925_v47 = vadd.f32 %v2924_v32, %v2275_v23  ;;  %6018 = vmatmul.msk.bf16.gmra.mxu3 %vm1754_vm2, %v5651_v18  ;;  %4651 = vst.msk [vmem:[%s6589_s29 + $0x2b8] sm:$0xf] %vm4476_vm3, %v4394_v12  ;;  %v6121_v23 = vld [vmem:[%s6452_s7 + $0x234] sm:$0xf] }
 0x22b   : > { %v3623_v27 = vmul.f32 %v7295_v42, %v3242_v41 }
 0x22c   : > { %4524 = vst.msk [vmem:[%s6589_s29 + $0xbc] sm:$0xf] %vm4476_vm3, %v4267_v62  ;;  %v3496_v48 = vmul.f32 %v7295_v42, %v2925_v47  ;;  %2314 = vmatmul.bf16.gmra.mxu0 %v5119_v21  ;;  %2634 = vmatmul.bf16.gmra.mxu2 %v5631_v44  ;;  %v5144_v44 = vld [vmem:[%s6452_s7 + $0x238] sm:$0xf0]  ;;  %v6251_v47 = vld [vmem:[%s6452_s7 + $0x644] sm:$0xf] }
 0x22d   : > { %v3883_v3 = vadd.f32 %v7304_v22, %v3623_v27  ;;  %v7372_v50 = vpop.f32.mrf.mxu3  ;;  %v5664_v27 = vld [vmem:[%s6452_s7 + $0x648] sm:$0xf0] }
 0x22e   : > { %v3756_v32 = vadd.f32 %v7304_v22, %v3496_v48 }
 0x22f   : > { %v2931_v52 = vpop.f32.mrf.mxu1  ;;  %v4139_v34 = vmax.f32 %v3883_v3, 0.0  ;;  %v2595_v54 = vpop.f32.mrf.mxu2 }
 0x230   : > { %v4012_v37 = vmax.f32 %v3756_v32, 0.0  ;;  %v3245_v39 = vadd.f32 %v7307_v7, %v2595_v54  ;;  %v5139_v7 = vor.u32 %v6119_v61, %v5136_v45  ;;  %v5134_v32 = vld [vmem:[%s6452_s7 + $0x220] sm:$0xf] }
 0x231   : > { %v4395_v57 = vpack.c.bf16 %v4139_v34, %v4139_v34  ;;  %v2277_v40 = vpop.f32.mrf.mxu0  ;;  %v6120_v34 = vld [vmem:[%s6452_s7 + $0x224] sm:$0xf0] }
 0x232   : > { %v4268_v59 = vpack.c.bf16 %v4012_v37, %v4012_v37  ;;  %v2927_v55 = vadd.f32 %v2926_v8, %v2277_v40  ;;  %v3624_v20 = vmul.f32 %v7295_v42, %v3245_v39  ;;  %v6248_v39 = vld [vmem:[%s6452_s7 + $0x624] sm:$0xf0]  ;;  %v5667_v40 = vor.u32 %v6251_v47, %v5664_v27 }
 0x233   : > { %4652 = vst.msk [vmem:[%s6589_s29 + $0x2bc] sm:$0xf] %vm4476_vm3, %v4395_v57  ;;  %v5646_v57 = vld [vmem:[%s6452_s7 + $0x620] sm:$0xf]  ;;  %v5135_v45 = vor.u32 %v6120_v34, %v5134_v32 }
 0x234   : > { %4525 = vst.msk [vmem:[%s6589_s29 + $0xc0] sm:$0xf] %vm4476_vm3, %v4268_v59  ;;  %v3497_v49 = vmul.f32 %v7295_v42, %v2927_v55  ;;  %v3884_v24 = vadd.f32 %v7304_v22, %v3624_v20 }
 0x235   : > { %v7389_v8 = vpop.f32.mrf.mxu3 }
 0x236   : > { %v3757_v56 = vadd.f32 %v7304_v22, %v3497_v49  ;;  %v4140_v60 = vmax.f32 %v3884_v24, 0.0  ;;  %v5647_v49 = vor.u32 %v6248_v39, %v5646_v57 }
 0x237   : > { %v2934_v11 = vpop.f32.mrf.mxu1  ;;  %v2597_v19 = vpop.f32.mrf.mxu2 }
 0x238   : > { %v4013_v17 = vmax.f32 %v3757_v56, 0.0  ;;  %v4396_v63 = vpack.c.bf16 %v4140_v60, %v4140_v60  ;;  %v3247_v30 = vadd.f32 %v7324_v10, %v2597_v19 }
 0x239   : > { %v2280_v5 = vpop.f32.mrf.mxu0 }
 0x23a   : > { %5954 = vmatmul.msk.bf16.gmra.mxu1 %vm1754_vm2, %v5139_v7  ;;  %v4269_v4 = vpack.c.bf16 %v4013_v17, %v4013_v17  ;;  %v2930_v25 = vadd.f32 %v2929_v31, %v2280_v5  ;;  %6019 = vmatmul.msk.bf16.gmra.mxu3 %vm1754_vm2, %v5659_v46  ;;  %4653 = vst.msk [vmem:[%s6589_s29 + $0x2c0] sm:$0xf] %vm4476_vm3, %v4396_v63  ;;  %v6123_v5 = vld [vmem:[%s6452_s7 + $0x244] sm:$0xf] }
 0x23b   : > { %v3625_v26 = vmul.f32 %v7295_v42, %v3247_v30 }
 0x23c   : > { %4526 = vst.msk [vmem:[%s6589_s29 + $0xc4] sm:$0xf] %vm4476_vm3, %v4269_v4  ;;  %v3498_v9 = vmul.f32 %v7295_v42, %v2930_v25  ;;  %2319 = vmatmul.bf16.gmra.mxu0 %v5127_v28  ;;  %2639 = vmatmul.bf16.gmra.mxu2 %v5639_v43  ;;  %v5152_v43 = vld [vmem:[%s6452_s7 + $0x248] sm:$0xf0]  ;;  %v6253_v25 = vld [vmem:[%s6452_s7 + $0x654] sm:$0xf] }
 0x23d   : > { %v3885_v10 = vadd.f32 %v7304_v22, %v3625_v26  ;;  %v7404_v13 = vpop.f32.mrf.mxu3  ;;  %v5672_v26 = vld [vmem:[%s6452_s7 + $0x658] sm:$0xf0] }
 0x23e   : > { %v3758_v31 = vadd.f32 %v7304_v22, %v3498_v9 }
 0x23f   : > { %v2936_v33 = vpop.f32.mrf.mxu1  ;;  %v4141_v15 = vmax.f32 %v3885_v10, 0.0  ;;  %v2600_v36 = vpop.f32.mrf.mxu2 }
 0x240   : > { %v4014_v18 = vmax.f32 %v3758_v31, 0.0  ;;  %v3250_v0 = vadd.f32 %v7340_v51, %v2600_v36  ;;  %v5147_v51 = vor.u32 %v6121_v23, %v5144_v44  ;;  %v5142_v31 = vld [vmem:[%s6452_s7 + $0x230] sm:$0xf] }
 0x241   : > { %v4397_v38 = vpack.c.bf16 %v4141_v15, %v4141_v15  ;;  %v2282_v21 = vpop.f32.mrf.mxu0  ;;  %v6122_v15 = vld [vmem:[%s6452_s7 + $0x234] sm:$0xf0] }
 0x242   : > { %v4270_v12 = vpack.c.bf16 %v4014_v18, %v4014_v18  ;;  %v2932_v41 = vadd.f32 %v2931_v52, %v2282_v21  ;;  %v3626_v62 = vmul.f32 %v7295_v42, %v3250_v0  ;;  %v6250_v0 = vld [vmem:[%s6452_s7 + $0x634] sm:$0xf0]  ;;  %v5675_v21 = vor.u32 %v6253_v25, %v5672_v26 }
 0x243   : > { %4654 = vst.msk [vmem:[%s6589_s29 + $0x2c4] sm:$0xf] %vm4476_vm3, %v4397_v38  ;;  %v5654_v38 = vld [vmem:[%s6452_s7 + $0x630] sm:$0xf]  ;;  %v5143_v44 = vor.u32 %v6122_v15, %v5142_v31 }
 0x244   : > { %4527 = vst.msk [vmem:[%s6589_s29 + $0xc8] sm:$0xf] %vm4476_vm3, %v4270_v12  ;;  %v3499_v48 = vmul.f32 %v7295_v42, %v2932_v41  ;;  %v3886_v3 = vadd.f32 %v7304_v22, %v3626_v62 }
 0x245   : > { %v7421_v52 = vpop.f32.mrf.mxu3 }
 0x246   : > { %v3759_v37 = vadd.f32 %v7304_v22, %v3499_v48  ;;  %v4142_v59 = vmax.f32 %v3886_v3, 0.0  ;;  %v5655_v48 = vor.u32 %v6250_v0, %v5654_v38 }
 0x247   : > { %v2939_v54 = vpop.f32.mrf.mxu1  ;;  %v2602_v61 = vpop.f32.mrf.mxu2 }
 0x248   : > { %v4015_v55 = vmax.f32 %v3759_v37, 0.0  ;;  %v4398_v20 = vpack.c.bf16 %v4142_v59, %v4142_v59  ;;  %v3252_v2 = vadd.f32 %v7357_v29, %v2602_v61 }
 0x249   : > { %v2285_v1 = vpop.f32.mrf.mxu0 }
 0x24a   : > { %5955 = vmatmul.msk.bf16.gmra.mxu1 %vm1754_vm2, %v5147_v51  ;;  %v4271_v24 = vpack.c.bf16 %v4015_v55, %v4015_v55  ;;  %v2935_v7 = vadd.f32 %v2934_v11, %v2285_v1  ;;  %6020 = vmatmul.msk.bf16.gmra.mxu3 %vm1754_vm2, %v5667_v40  ;;  %4655 = vst.msk [vmem:[%s6589_s29 + $0x2c8] sm:$0xf] %vm4476_vm3, %v4398_v20  ;;  %v6125_v1 = vld [vmem:[%s6452_s7 + $0x254] sm:$0xf] }
 0x24b   : > { %v3627_v6 = vmul.f32 %v7295_v42, %v3252_v2 }
 0x24c   : > { %4528 = vst.msk [vmem:[%s6589_s29 + $0xcc] sm:$0xf] %vm4476_vm3, %v4271_v24  ;;  %v3500_v53 = vmul.f32 %v7295_v42, %v2935_v7  ;;  %2324 = vmatmul.bf16.gmra.mxu0 %v5135_v45  ;;  %2644 = vmatmul.bf16.gmra.mxu2 %v5647_v49  ;;  %v5160_v49 = vld [vmem:[%s6452_s7 + $0x258] sm:$0xf0]  ;;  %v6255_v7 = vld [vmem:[%s6452_s7 + $0x664] sm:$0xf] }
 0x24d   : > { %v3887_v29 = vadd.f32 %v7304_v22, %v3627_v6  ;;  %v7436_v56 = vpop.f32.mrf.mxu3  ;;  %v5680_v6 = vld [vmem:[%s6452_s7 + $0x668] sm:$0xf0] }
 0x24e   : > { %v3760_v11 = vadd.f32 %v7304_v22, %v3500_v53 }
 0x24f   : > { %v2941_v14 = vpop.f32.mrf.mxu1  ;;  %v4143_v58 = vmax.f32 %v3887_v29, 0.0  ;;  %v2605_v60 = vpop.f32.mrf.mxu2 }
 0x250   : > { %v4016_v46 = vmax.f32 %v3760_v11, 0.0  ;;  %v3255_v19 = vadd.f32 %v7372_v50, %v2605_v60  ;;  %v5155_v50 = vor.u32 %v6123_v5, %v5152_v43  ;;  %v5150_v11 = vld [vmem:[%s6452_s7 + $0x240] sm:$0xf] }
 0x251   : > { %v4399_v17 = vpack.c.bf16 %v4143_v58, %v4143_v58  ;;  %v2287_v28 = vpop.f32.mrf.mxu0  ;;  %v6124_v58 = vld [vmem:[%s6452_s7 + $0x244] sm:$0xf0] }
 0x252   : > { %v4272_v63 = vpack.c.bf16 %v4016_v46, %v4016_v46  ;;  %v2937_v30 = vadd.f32 %v2936_v33, %v2287_v28  ;;  %v3628_v4 = vmul.f32 %v7295_v42, %v3255_v19  ;;  %v6252_v19 = vld [vmem:[%s6452_s7 + $0x644] sm:$0xf0]  ;;  %v5683_v28 = vor.u32 %v6255_v7, %v5680_v6 }
 0x253   : > { %4656 = vst.msk [vmem:[%s6589_s29 + $0x2cc] sm:$0xf] %vm4476_vm3, %v4399_v17  ;;  %v5662_v17 = vld [vmem:[%s6452_s7 + $0x640] sm:$0xf]  ;;  %v5151_v43 = vor.u32 %v6124_v58, %v5150_v11 }
 0x254   : > { %4529 = vst.msk [vmem:[%s6589_s29 + $0xd0] sm:$0xf] %vm4476_vm3, %v4272_v63  ;;  %v3501_v9 = vmul.f32 %v7295_v42, %v2937_v30  ;;  %v3888_v10 = vadd.f32 %v7304_v22, %v3628_v4 }
 0x255   : > { %v7453_v33 = vpop.f32.mrf.mxu3 }
 0x256   : > { %v3761_v18 = vadd.f32 %v7304_v22, %v3501_v9  ;;  %v4144_v12 = vmax.f32 %v3888_v10, 0.0  ;;  %v5663_v9 = vor.u32 %v6252_v19, %v5662_v17 }
 0x257   : > { %v2944_v36 = vpop.f32.mrf.mxu1  ;;  %v2607_v23 = vpop.f32.mrf.mxu2 }
 0x258   : > { %v4017_v41 = vmax.f32 %v3761_v18, 0.0  ;;  %v4400_v62 = vpack.c.bf16 %v4144_v12, %v4144_v12  ;;  %v3257_v47 = vadd.f32 %v7389_v8, %v2607_v23 }
 0x259   : > { %v2290_v27 = vpop.f32.mrf.mxu0 }
 0x25a   : > { %5956 = vmatmul.msk.bf16.gmra.mxu1 %vm1754_vm2, %v5155_v50  ;;  %v4273_v3 = vpack.c.bf16 %v4017_v41, %v4017_v41  ;;  %v2940_v51 = vadd.f32 %v2939_v54, %v2290_v27  ;;  %6021 = vmatmul.msk.bf16.gmra.mxu3 %vm1754_vm2, %v5675_v21  ;;  %4657 = vst.msk [vmem:[%s6589_s29 + $0x2d0] sm:$0xf] %vm4476_vm3, %v4400_v62  ;;  %v6127_v27 = vld [vmem:[%s6452_s7 + $0x264] sm:$0xf] }
 0x25b   : > { %v3629_v32 = vmul.f32 %v7295_v42, %v3257_v47 }
 0x25c   : > { %4530 = vst.msk [vmem:[%s6589_s29 + $0xd4] sm:$0xf] %vm4476_vm3, %v4273_v3  ;;  %v3502_v34 = vmul.f32 %v7295_v42, %v2940_v51  ;;  %2329 = vmatmul.bf16.gmra.mxu0 %v5143_v44  ;;  %2649 = vmatmul.bf16.gmra.mxu2 %v5655_v48  ;;  %v5168_v48 = vld [vmem:[%s6452_s7 + $0x268] sm:$0xf0]  ;;  %v6257_v51 = vld [vmem:[%s6452_s7 + $0x674] sm:$0xf] }
 0x25d   : > { %v3889_v8 = vadd.f32 %v7304_v22, %v3629_v32  ;;  %v7468_v37 = vpop.f32.mrf.mxu3  ;;  %v5688_v32 = vld [vmem:[%s6452_s7 + $0x678] sm:$0xf0] }
 0x25e   : > { %v3762_v54 = vadd.f32 %v7304_v22, %v3502_v34 }
 0x25f   : > { %v2946_v57 = vpop.f32.mrf.mxu1  ;;  %v4145_v39 = vmax.f32 %v3889_v8, 0.0  ;;  %v2610_v59 = vpop.f32.mrf.mxu2 }
 0x260   : > { %v4018_v40 = vmax.f32 %v3762_v54, 0.0  ;;  %v3260_v61 = vadd.f32 %v7404_v13, %v2610_v59  ;;  %v5163_v13 = vor.u32 %v6125_v1, %v5160_v49  ;;  %v5158_v54 = vld [vmem:[%s6452_s7 + $0x250] sm:$0xf] }
 0x261   : > { %v4401_v55 = vpack.c.bf16 %v4145_v39, %v4145_v39  ;;  %v2292_v45 = vpop.f32.mrf.mxu0  ;;  %v6126_v39 = vld [vmem:[%s6452_s7 + $0x254] sm:$0xf0] }
 0x262   : > { %v4274_v20 = vpack.c.bf16 %v4018_v40, %v4018_v40  ;;  %v2942_v2 = vadd.f32 %v2941_v14, %v2292_v45  ;;  %v3630_v24 = vmul.f32 %v7295_v42, %v3260_v61  ;;  %v6254_v61 = vld [vmem:[%s6452_s7 + $0x654] sm:$0xf0]  ;;  %v5691_v45 = vor.u32 %v6257_v51, %v5688_v32 }
 0x263   : > { %4658 = vst.msk [vmem:[%s6589_s29 + $0x2d4] sm:$0xf] %vm4476_vm3, %v4401_v55  ;;  %v5670_v55 = vld [vmem:[%s6452_s7 + $0x650] sm:$0xf]  ;;  %v5159_v49 = vor.u32 %v6126_v39, %v5158_v54 }
 0x264   : > { %4531 = vst.msk [vmem:[%s6589_s29 + $0xd8] sm:$0xf] %vm4476_vm3, %v4274_v20  ;;  %v3503_v53 = vmul.f32 %v7295_v42, %v2942_v2  ;;  %v3890_v29 = vadd.f32 %v7304_v22, %v3630_v24 }
 0x265   : > { %v7485_v14 = vpop.f32.mrf.mxu3 }
 0x266   : > { %v3763_v46 = vadd.f32 %v7304_v22, %v3503_v53  ;;  %v4146_v63 = vmax.f32 %v3890_v29, 0.0  ;;  %v5671_v53 = vor.u32 %v6254_v61, %v5670_v55 }
 0x267   : > { %v2949_v60 = vpop.f32.mrf.mxu1  ;;  %v2612_v5 = vpop.f32.mrf.mxu2 }
 0x268   : > { %v4019_v30 = vmax.f32 %v3763_v46, 0.0  ;;  %v4402_v4 = vpack.c.bf16 %v4146_v63, %v4146_v63  ;;  %v3262_v25 = vadd.f32 %v7421_v52, %v2612_v5 }
 0x269   : > { %v2295_v26 = vpop.f32.mrf.mxu0 }
 0x26a   : > { %5957 = vmatmul.msk.bf16.gmra.mxu1 %vm1754_vm2, %v5163_v13  ;;  %v4275_v10 = vpack.c.bf16 %v4019_v30, %v4019_v30  ;;  %v2945_v50 = vadd.f32 %v2944_v36, %v2295_v26  ;;  %6022 = vmatmul.msk.bf16.gmra.mxu3 %vm1754_vm2, %v5683_v28  ;;  %4659 = vst.msk [vmem:[%s6589_s29 + $0x2d8] sm:$0xf] %vm4476_vm3, %v4402_v4  ;;  %v6129_v26 = vld [vmem:[%s6452_s7 + $0x274] sm:$0xf] }
 0x26b   : > { %v3631_v31 = vmul.f32 %v7295_v42, %v3262_v25 }
 0x26c   : > { %4532 = vst.msk [vmem:[%s6589_s29 + $0xdc] sm:$0xf] %vm4476_vm3, %v4275_v10  ;;  %v3504_v15 = vmul.f32 %v7295_v42, %v2945_v50  ;;  %2334 = vmatmul.bf16.gmra.mxu0 %v5151_v43  ;;  %2654 = vmatmul.bf16.gmra.mxu2 %v5663_v9  ;;  %v5176_v9 = vld [vmem:[%s6452_s7 + $0x278] sm:$0xf0]  ;;  %v6259_v50 = vld [vmem:[%s6452_s7 + $0x684] sm:$0xf] }
 0x26d   : > { %v3891_v52 = vadd.f32 %v7304_v22, %v3631_v31  ;;  %v7500_v18 = vpop.f32.mrf.mxu3  ;;  %v5696_v31 = vld [vmem:[%s6452_s7 + $0x688] sm:$0xf0] }
 0x26e   : > { %v3764_v36 = vadd.f32 %v7304_v22, %v3504_v15 }
 0x26f   : > { %v2951_v38 = vpop.f32.mrf.mxu1  ;;  %v4147_v0 = vmax.f32 %v3891_v52, 0.0  ;;  %v2615_v12 = vpop.f32.mrf.mxu2 }
 0x270   : > { %v4020_v21 = vmax.f32 %v3764_v36, 0.0  ;;  %v3265_v23 = vadd.f32 %v7436_v56, %v2615_v12  ;;  %v5171_v56 = vor.u32 %v6127_v27, %v5168_v48  ;;  %v5166_v36 = vld [vmem:[%s6452_s7 + $0x260] sm:$0xf] }
 0x271   : > { %v4403_v41 = vpack.c.bf16 %v4147_v0, %v4147_v0  ;;  %v2297_v44 = vpop.f32.mrf.mxu0  ;;  %v6128_v0 = vld [vmem:[%s6452_s7 + $0x264] sm:$0xf0] }
 0x272   : > { %v4276_v62 = vpack.c.bf16 %v4020_v21, %v4020_v21  ;;  %v2947_v47 = vadd.f32 %v2946_v57, %v2297_v44  ;;  %v3632_v3 = vmul.f32 %v7295_v42, %v3265_v23  ;;  %v6256_v23 = vld [vmem:[%s6452_s7 + $0x664] sm:$0xf0]  ;;  %v5699_v44 = vor.u32 %v6259_v50, %v5696_v31 }
 0x273   : > { %4660 = vst.msk [vmem:[%s6589_s29 + $0x2dc] sm:$0xf] %vm4476_vm3, %v4403_v41  ;;  %v5678_v41 = vld [vmem:[%s6452_s7 + $0x660] sm:$0xf]  ;;  %v5167_v48 = vor.u32 %v6128_v0, %v5166_v36 }
 0x274   : > { %4533 = vst.msk [vmem:[%s6589_s29 + $0xe0] sm:$0xf] %vm4476_vm3, %v4276_v62  ;;  %v3505_v34 = vmul.f32 %v7295_v42, %v2947_v47  ;;  %v3892_v8 = vadd.f32 %v7304_v22, %v3632_v3 }
 0x275   : > { %v7517_v57 = vpop.f32.mrf.mxu3 }
 0x276   : > { %v3765_v40 = vadd.f32 %v7304_v22, %v3505_v34  ;;  %v4148_v20 = vmax.f32 %v3892_v8, 0.0  ;;  %v5679_v34 = vor.u32 %v6256_v23, %v5678_v41 }
 0x277   : > { %v2954_v59 = vpop.f32.mrf.mxu1  ;;  %v2617_v1 = vpop.f32.mrf.mxu2 }
 0x278   : > { %v4021_v2 = vmax.f32 %v3765_v40, 0.0  ;;  %v4404_v24 = vpack.c.bf16 %v4148_v20, %v4148_v20  ;;  %v3267_v7 = vadd.f32 %v7453_v33, %v2617_v1 }
 0x279   : > { %v2300_v6 = vpop.f32.mrf.mxu0 }
 0x27a   : > { %5958 = vmatmul.msk.bf16.gmra.mxu1 %vm1754_vm2, %v5171_v56  ;;  %v4277_v29 = vpack.c.bf16 %v4021_v2, %v4021_v2  ;;  %v2950_v13 = vadd.f32 %v2949_v60, %v2300_v6  ;;  %6023 = vmatmul.msk.bf16.gmra.mxu3 %vm1754_vm2, %v5691_v45  ;;  %4661 = vst.msk [vmem:[%s6589_s29 + $0x2e0] sm:$0xf] %vm4476_vm3, %v4404_v24  ;;  %v6131_v6 = vld [vmem:[%s6452_s7 + $0x284] sm:$0xf] }
 0x27b   : > { %v3633_v11 = vmul.f32 %v7295_v42, %v3267_v7 }
 0x27c   : > { %4534 = vst.msk [vmem:[%s6589_s29 + $0xe4] sm:$0xf] %vm4476_vm3, %v4277_v29  ;;  %v3506_v58 = vmul.f32 %v7295_v42, %v2950_v13  ;;  %2339 = vmatmul.bf16.gmra.mxu0 %v5159_v49  ;;  %2659 = vmatmul.bf16.gmra.mxu2 %v5671_v53  ;;  %v5184_v53 = vld [vmem:[%s6452_s7 + $0x288] sm:$0xf0]  ;;  %v6261_v13 = vld [vmem:[%s6452_s7 + $0x694] sm:$0xf] }
 0x27d   : > { %v3893_v33 = vadd.f32 %v7304_v22, %v3633_v11  ;;  %v7532_v46 = vpop.f32.mrf.mxu3  ;;  %v5704_v11 = vld [vmem:[%s6452_s7 + $0x698] sm:$0xf0] }
 0x27e   : > { %v3766_v60 = vadd.f32 %v7304_v22, %v3506_v58 }
 0x27f   : > { %v2956_v17 = vpop.f32.mrf.mxu1  ;;  %v4149_v19 = vmax.f32 %v3893_v33, 0.0  ;;  %v2620_v63 = vpop.f32.mrf.mxu2 }
 0x280   : > { %v4022_v28 = vmax.f32 %v3766_v60, 0.0  ;;  %v3270_v5 = vadd.f32 %v7468_v37, %v2620_v63  ;;  %v5179_v37 = vor.u32 %v6129_v26, %v5176_v9  ;;  %v5174_v60 = vld [vmem:[%s6452_s7 + $0x270] sm:$0xf] }
 0x281   : > { %v4405_v30 = vpack.c.bf16 %v4149_v19, %v4149_v19  ;;  %v2302_v43 = vpop.f32.mrf.mxu0  ;;  %v6130_v19 = vld [vmem:[%s6452_s7 + $0x274] sm:$0xf0] }
 0x282   : > { %v4278_v4 = vpack.c.bf16 %v4022_v28, %v4022_v28  ;;  %v2952_v25 = vadd.f32 %v2951_v38, %v2302_v43  ;;  %v3634_v10 = vmul.f32 %v7295_v42, %v3270_v5  ;;  %v6258_v5 = vld [vmem:[%s6452_s7 + $0x674] sm:$0xf0]  ;;  %v5707_v43 = vor.u32 %v6261_v13, %v5704_v11 }
 0x283   : > { %4662 = vst.msk [vmem:[%s6589_s29 + $0x2e4] sm:$0xf] %vm4476_vm3, %v4405_v30  ;;  %v5686_v30 = vld [vmem:[%s6452_s7 + $0x670] sm:$0xf]  ;;  %v5175_v9 = vor.u32 %v6130_v19, %v5174_v60 }
 0x284   : > { %4535 = vst.msk [vmem:[%s6589_s29 + $0xe8] sm:$0xf] %vm4476_vm3, %v4278_v4  ;;  %v3507_v15 = vmul.f32 %v7295_v42, %v2952_v25  ;;  %v3894_v52 = vadd.f32 %v7304_v22, %v3634_v10 }
 0x285   : > { %v7549_v38 = vpop.f32.mrf.mxu3 }
 0x286   : > { %v3767_v21 = vadd.f32 %v7304_v22, %v3507_v15  ;;  %v4150_v62 = vmax.f32 %v3894_v52, 0.0  ;;  %v5687_v15 = vor.u32 %v6258_v5, %v5686_v30 }
 0x287   : > { %v2959_v12 = vpop.f32.mrf.mxu1  ;;  %v2622_v27 = vpop.f32.mrf.mxu2 }
 0x288   : > { %v4023_v47 = vmax.f32 %v3767_v21, 0.0  ;;  %v4406_v3 = vpack.c.bf16 %v4150_v62, %v4150_v62  ;;  %v3272_v51 = vadd.f32 %v7485_v14, %v2622_v27 }
 0x289   : > { %v2305_v32 = vpop.f32.mrf.mxu0 }
 0x28a   : > { %5959 = vmatmul.msk.bf16.gmra.mxu1 %vm1754_vm2, %v5179_v37  ;;  %v4279_v8 = vpack.c.bf16 %v4023_v47, %v4023_v47  ;;  %v2955_v56 = vadd.f32 %v2954_v59, %v2305_v32  ;;  %6024 = vmatmul.msk.bf16.gmra.mxu3 %vm1754_vm2, %v5699_v44  ;;  %4663 = vst.msk [vmem:[%s6589_s29 + $0x2e8] sm:$0xf] %vm4476_vm3, %v4406_v3  ;;  %v6133_v32 = vld [vmem:[%s6452_s7 + $0x294] sm:$0xf] }
 0x28b   : > { %v3635_v54 = vmul.f32 %v7295_v42, %v3272_v51 }
 0x28c   : > { %4536 = vst.msk [vmem:[%s6589_s29 + $0xec] sm:$0xf] %vm4476_vm3, %v4279_v8  ;;  %v3508_v39 = vmul.f32 %v7295_v42, %v2955_v56  ;;  %2344 = vmatmul.bf16.gmra.mxu0 %v5167_v48  ;;  %2664 = vmatmul.bf16.gmra.mxu2 %v5679_v34  ;;  %v5192_v34 = vld [vmem:[%s6452_s7 + $0x298] sm:$0xf0]  ;;  %v6263_v56 = vld [vmem:[%s6452_s7 + $0x6a4] sm:$0xf] }
 0x28d   : > { %v3895_v14 = vadd.f32 %v7304_v22, %v3635_v54  ;;  %v7564_v40 = vpop.f32.mrf.mxu3  ;;  %v5712_v54 = vld [vmem:[%s6452_s7 + $0x6a8] sm:$0xf0] }
 0x28e   : > { %v3768_v59 = vadd.f32 %v7304_v22, %v3508_v39 }
 0x28f   : > { %v2961_v55 = vpop.f32.mrf.mxu1  ;;  %v4151_v61 = vmax.f32 %v3895_v14, 0.0  ;;  %v2625_v20 = vpop.f32.mrf.mxu2 }
 0x290   : > { %v4024_v45 = vmax.f32 %v3768_v59, 0.0  ;;  %v3275_v1 = vadd.f32 %v7500_v18, %v2625_v20  ;;  %v5187_v18 = vor.u32 %v6131_v6, %v5184_v53  ;;  %v5182_v59 = vld [vmem:[%s6452_s7 + $0x280] sm:$0xf] }
 0x291   : > { %v4407_v2 = vpack.c.bf16 %v4151_v61, %v4151_v61  ;;  %v2307_v49 = vpop.f32.mrf.mxu0  ;;  %v6132_v61 = vld [vmem:[%s6452_s7 + $0x284] sm:$0xf0] }
 0x292   : > { %v4280_v24 = vpack.c.bf16 %v4024_v45, %v4024_v45  ;;  %v2957_v7 = vadd.f32 %v2956_v17, %v2307_v49  ;;  %v3636_v29 = vmul.f32 %v7295_v42, %v3275_v1  ;;  %v6260_v1 = vld [vmem:[%s6452_s7 + $0x684] sm:$0xf0]  ;;  %v5715_v49 = vor.u32 %v6263_v56, %v5712_v54 }
 0x293   : > { %4664 = vst.msk [vmem:[%s6589_s29 + $0x2ec] sm:$0xf] %vm4476_vm3, %v4407_v2  ;;  %v5694_v2 = vld [vmem:[%s6452_s7 + $0x680] sm:$0xf]  ;;  %v5183_v53 = vor.u32 %v6132_v61, %v5182_v59 }
 0x294   : > { %4537 = vst.msk [vmem:[%s6589_s29 + $0xf0] sm:$0xf] %vm4476_vm3, %v4280_v24  ;;  %v3509_v58 = vmul.f32 %v7295_v42, %v2957_v7  ;;  %v3896_v33 = vadd.f32 %v7304_v22, %v3636_v29  ;;  %v7669_v59 = vld [vmem:[%s8562_s3] ss:$0 sm:$0xff] }
 0x295   : > { %v7581_v17 = vpop.f32.mrf.mxu3 }
 0x296   : > { %v3769_v28 = vadd.f32 %v7304_v22, %v3509_v58  ;;  %v4152_v4 = vmax.f32 %v3896_v33, 0.0  ;;  %v5695_v58 = vor.u32 %v6260_v1, %v5694_v2 }
 0x297   : > { %v2964_v63 = vpop.f32.mrf.mxu1  ;;  %v2627_v26 = vpop.f32.mrf.mxu2 }
 0x298   : > { %v4025_v25 = vmax.f32 %v3769_v28, 0.0  ;;  %v4408_v10 = vpack.c.bf16 %v4152_v4, %v4152_v4  ;;  %v3277_v50 = vadd.f32 %v7517_v57, %v2627_v26 }
 0x299   : > { %v2310_v31 = vpop.f32.mrf.mxu0 }
 0x29a   : > { %5960 = vmatmul.msk.bf16.gmra.mxu1 %vm1754_vm2, %v5187_v18  ;;  %v4281_v52 = vpack.c.bf16 %v4025_v25, %v4025_v25  ;;  %v2960_v37 = vadd.f32 %v2959_v12, %v2310_v31  ;;  %6025 = vmatmul.msk.bf16.gmra.mxu3 %vm1754_vm2, %v5707_v43  ;;  %4665 = vst.msk [vmem:[%s6589_s29 + $0x2f0] sm:$0xf] %vm4476_vm3, %v4408_v10  ;;  %v6135_v31 = vld [vmem:[%s6452_s7 + $0x2a4] sm:$0xf] }
 0x29b   : > { %v3637_v36 = vmul.f32 %v7295_v42, %v3277_v50 }
 0x29c   : > { %4538 = vst.msk [vmem:[%s6589_s29 + $0xf4] sm:$0xf] %vm4476_vm3, %v4281_v52  ;;  %v3510_v0 = vmul.f32 %v7295_v42, %v2960_v37  ;;  %2349 = vmatmul.bf16.gmra.mxu0 %v5175_v9  ;;  %2669 = vmatmul.bf16.gmra.mxu2 %v5687_v15  ;;  %v5200_v15 = vld [vmem:[%s6452_s7 + $0x2a8] sm:$0xf0]  ;;  %v6265_v37 = vld [vmem:[%s6452_s7 + $0x6b4] sm:$0xf] }
 0x29d   : > { %v3897_v57 = vadd.f32 %v7304_v22, %v3637_v36  ;;  %v7596_v21 = vpop.f32.mrf.mxu3  ;;  %v5720_v36 = vld [vmem:[%s6452_s7 + $0x6b8] sm:$0xf0] }
 0x29e   : > { %v3770_v12 = vadd.f32 %v7304_v22, %v3510_v0 }
 0x29f   : > { %v2966_v41 = vpop.f32.mrf.mxu1  ;;  %v4153_v23 = vmax.f32 %v3897_v57, 0.0  ;;  %v2630_v62 = vpop.f32.mrf.mxu2 }
 0x2a0   : > { %v4026_v44 = vmax.f32 %v3770_v12, 0.0  ;;  %v3280_v27 = vadd.f32 %v7532_v46, %v2630_v62  ;;  %v5195_v46 = vor.u32 %v6133_v32, %v5192_v34  ;;  %v5190_v12 = vld [vmem:[%s6452_s7 + $0x290] sm:$0xf] }
 0x2a1   : > { %v4409_v47 = vpack.c.bf16 %v4153_v23, %v4153_v23  ;;  %v2312_v48 = vpop.f32.mrf.mxu0  ;;  %v6134_v23 = vld [vmem:[%s6452_s7 + $0x294] sm:$0xf0] }
 0x2a2   : > { %v4282_v3 = vpack.c.bf16 %v4026_v44, %v4026_v44  ;;  %v2962_v51 = vadd.f32 %v2961_v55, %v2312_v48  ;;  %v3638_v8 = vmul.f32 %v7295_v42, %v3280_v27  ;;  %v6262_v27 = vld [vmem:[%s6452_s7 + $0x694] sm:$0xf0]  ;;  %v5723_v48 = vor.u32 %v6265_v37, %v5720_v36 }
 0x2a3   : > { %4666 = vst.msk [vmem:[%s6589_s29 + $0x2f4] sm:$0xf] %vm4476_vm3, %v4409_v47  ;;  %v5702_v47 = vld [vmem:[%s6452_s7 + $0x690] sm:$0xf] }
 0x2a4   : > { %4539 = vst.msk [vmem:[%s6589_s29 + $0xf8] sm:$0xf] %vm4476_vm3, %v4282_v3  ;;  %v3511_v39 = vmul.f32 %v7295_v42, %v2962_v51  ;;  %v3898_v14 = vadd.f32 %v7304_v22, %v3638_v8  ;;  %v5703_v54 = vor.u32 %v6262_v27, %v5702_v47 }
 0x2a5   : > { %v7613_v55 = vpop.f32.mrf.mxu3 }
 0x2a6   : > { %v3771_v45 = vadd.f32 %v7304_v22, %v3511_v39  ;;  %v4154_v24 = vmax.f32 %v3898_v14, 0.0  ;;  %v7660_v14 = vld [vmem:[%s8561_s2] ss:$0 sm:$0xff] }
 0x2a7   : > { %v2969_v20 = vpop.f32.mrf.mxu1  ;;  %v2632_v6 = vpop.f32.mrf.mxu2 }
 0x2a8   : > { %v4027_v7 = vmax.f32 %v3771_v45, 0.0  ;;  %v4410_v29 = vpack.c.bf16 %v4154_v24, %v4154_v24  ;;  %v3282_v13 = vadd.f32 %v7549_v38, %v2632_v6 }
 0x2a9   : > { %v2315_v11 = vpop.f32.mrf.mxu0 }
 0x2aa   : > { %5961 = vmatmul.msk.bf16.gmra.mxu1 %vm1754_vm2, %v5195_v46  ;;  %v4283_v33 = vpack.c.bf16 %v4027_v7, %v4027_v7  ;;  %v2965_v18 = vadd.f32 %v2964_v63, %v2315_v11  ;;  %6026 = vmatmul.msk.bf16.gmra.mxu3 %vm1754_vm2, %v5715_v49  ;;  %4667 = vst.msk [vmem:[%s6589_s29 + $0x2f8] sm:$0xf] %vm4476_vm3, %v4410_v29  ;;  %v6137_v11 = vld [vmem:[%s6452_s7 + $0x2b4] sm:$0xf] }
 0x2ab   : > { %v3639_v60 = vmul.f32 %v7295_v42, %v3282_v13 }
 0x2ac   : > { %4540 = vst.msk [vmem:[%s6589_s29 + $0xfc] sm:$0xf] %vm4476_vm3, %v4283_v33  ;;  %v3512_v19 = vmul.f32 %v7295_v42, %v2965_v18  ;;  %2354 = vmatmul.bf16.gmra.mxu0 %v5183_v53  ;;  %2674 = vmatmul.bf16.gmra.mxu2 %v5695_v58  ;;  %v5208_v58 = vld [vmem:[%s6452_s7 + $0x2b8] sm:$0xf0]  ;;  %v6267_v18 = vld [vmem:[%s6452_s7 + $0x6c4] sm:$0xf] }
 0x2ad   : > { %v3899_v38 = vadd.f32 %v7304_v22, %v3639_v60  ;;  %v7628_v28 = vpop.f32.mrf.mxu3  ;;  %v5728_v60 = vld [vmem:[%s6452_s7 + $0x6c8] sm:$0xf0] }
 0x2ae   : > { %v3772_v63 = vadd.f32 %v7304_v22, %v3512_v19 }
 0x2af   : > { %v2971_v30 = vpop.f32.mrf.mxu1  ;;  %v4155_v5 = vmax.f32 %v3899_v38, 0.0  ;;  %v2635_v4 = vpop.f32.mrf.mxu2 }
 0x2b0   : > { %v4028_v43 = vmax.f32 %v3772_v63, 0.0  ;;  %v3285_v26 = vadd.f32 %v7564_v40, %v2635_v4  ;;  %v5203_v40 = vor.u32 %v6135_v31, %v5200_v15  ;;  %v5198_v63 = vld [vmem:[%s6452_s7 + $0x2a0] sm:$0xf] }
 0x2b1   : > { %v4411_v25 = vpack.c.bf16 %v4155_v5, %v4155_v5  ;;  %v2317_v9 = vpop.f32.mrf.mxu0  ;;  %v6136_v5 = vld [vmem:[%s6452_s7 + $0x2a4] sm:$0xf0] }
 0x2b2   : > { %v4284_v10 = vpack.c.bf16 %v4028_v43, %v4028_v43  ;;  %v2967_v50 = vadd.f32 %v2966_v41, %v2317_v9  ;;  %v3640_v52 = vmul.f32 %v7295_v42, %v3285_v26  ;;  %v6264_v26 = vld [vmem:[%s6452_s7 + $0x6a4] sm:$0xf0]  ;;  %v5731_v9 = vor.u32 %v6267_v18, %v5728_v60 }
 0x2b3   : > { %4668 = vst.msk [vmem:[%s6589_s29 + $0x2fc] sm:$0xf] %vm4476_vm3, %v4411_v25  ;;  %v5710_v25 = vld [vmem:[%s6452_s7 + $0x6a0] sm:$0xf]  ;;  %v5199_v15 = vor.u32 %v6136_v5, %v5198_v63 }
 0x2b4   : > { %4541 = vst.msk [vmem:[%s6589_s29 + $0x100] sm:$0xf] %vm4476_vm3, %v4284_v10  ;;  %v3513_v0 = vmul.f32 %v7295_v42, %v2967_v50  ;;  %v3900_v57 = vadd.f32 %v7304_v22, %v3640_v52  ;;  %v5191_v42 = vor.u32 %v6134_v23, %v5190_v12 }
 0x2b5   : > { %v7645_v41 = vpop.f32.mrf.mxu3 }
 0x2b6   : > { %v3773_v44 = vadd.f32 %v7304_v22, %v3513_v0  ;;  %v4156_v3 = vmax.f32 %v3900_v57, 0.0  ;;  %v5711_v0 = vor.u32 %v6264_v26, %v5710_v25 }
 0x2b7   : > { %v7648_v62 = vpop.f32.mrf.mxu1  ;;  %v2637_v32 = vpop.f32.mrf.mxu2 }
 0x2b8   : > { %v4029_v51 = vmax.f32 %v3773_v44, 0.0  ;;  %v4412_v34 = vpack.c.bf16 %v4156_v3, %v4156_v3  ;;  %v3287_v8 = vadd.f32 %v7581_v17, %v2637_v32 }
 0x2b9   : > { %v2320_v56 = vpop.f32.mrf.mxu0 }
 0x2ba   : > { %5962 = vmatmul.msk.bf16.gmra.mxu1 %vm1754_vm2, %v5203_v40  ;;  %v4285_v39 = vpack.c.bf16 %v4029_v51, %v4029_v51  ;;  %v2970_v22 = vadd.f32 %v2969_v20, %v2320_v56  ;;  %6027 = vmatmul.msk.bf16.gmra.mxu3 %vm1754_vm2, %v5723_v48  ;;  %4669 = vst.msk [vmem:[%s6589_s29 + $0x300] sm:$0xf] %vm4476_vm3, %v4412_v34  ;;  %v6139_v56 = vld [vmem:[%s6452_s7 + $0x2c4] sm:$0xf] }
 0x2bb   : > { %v3641_v46 = vmul.f32 %v7660_v14, %v3287_v8 }
 0x2bc   : > { %4542 = vst.msk [vmem:[%s6589_s29 + $0x104] sm:$0xf] %vm4476_vm3, %v4285_v39  ;;  %v3514_v17 = vmul.f32 %v7660_v14, %v2970_v22  ;;  %2359 = vmatmul.bf16.gmra.mxu0 %v5191_v42  ;;  %2679 = vmatmul.bf16.gmra.mxu2 %v5703_v54  ;;  %v5216_v54 = vld [vmem:[%s6452_s7 + $0x2c8] sm:$0xf0]  ;;  %v6269_v22 = vld [vmem:[%s6452_s7 + $0x6d4] sm:$0xf] }
 0x2bd   : > { %v3901_v61 = vadd.f32 %v7669_v59, %v3641_v46  ;;  %v7672_v45 = vpop.f32.mrf.mxu3  ;;  %v5736_v46 = vld [vmem:[%s6452_s7 + $0x6d8] sm:$0xf0] }
 0x2be   : > { %v3774_v20 = vadd.f32 %v7669_v59, %v3514_v17 }
 0x2bf   : > { %v2976_v2 = vpop.f32.mrf.mxu1  ;;  %v4157_v1 = vmax.f32 %v3901_v61, 0.0  ;;  %v2640_v24 = vpop.f32.mrf.mxu2 }
 0x2c0   : > { %v4030_v49 = vmax.f32 %v3774_v20, 0.0  ;;  %v3290_v6 = vadd.f32 %v7596_v21, %v2640_v24  ;;  %v5211_v21 = vor.u32 %v6137_v11, %v5208_v58  ;;  %v5206_v20 = vld [vmem:[%s6452_s7 + $0x2b0] sm:$0xf] }
 0x2c1   : > { %v4413_v7 = vpack.c.bf16 %v4157_v1, %v4157_v1  ;;  %v2322_v53 = vpop.f32.mrf.mxu0  ;;  %v6138_v1 = vld [vmem:[%s6452_s7 + $0x2b4] sm:$0xf0] }
 0x2c2   : > { %v4286_v29 = vpack.c.bf16 %v4030_v49, %v4030_v49  ;;  %v2972_v13 = vadd.f32 %v2971_v30, %v2322_v53  ;;  %v3642_v33 = vmul.f32 %v7660_v14, %v3290_v6  ;;  %v6266_v6 = vld [vmem:[%s6452_s7 + $0x6b4] sm:$0xf0]  ;;  %v5739_v53 = vor.u32 %v6269_v22, %v5736_v46 }
 0x2c3   : > { %4670 = vst.msk [vmem:[%s6589_s29 + $0x304] sm:$0xf] %vm4476_vm3, %v4413_v7  ;;  %v5718_v7 = vld [vmem:[%s6452_s7 + $0x6b0] sm:$0xf]  ;;  %v5207_v58 = vor.u32 %v6138_v1, %v5206_v20 }
 0x2c4   : > { %4543 = vst.msk [vmem:[%s6589_s29 + $0x108] sm:$0xf] %vm4476_vm3, %v4286_v29  ;;  %v3515_v19 = vmul.f32 %v7660_v14, %v2972_v13  ;;  %v3902_v38 = vadd.f32 %v7669_v59, %v3642_v33 }
 0x2c5   : > { %v7689_v30 = vpop.f32.mrf.mxu3 }
 0x2c6   : > { %v3775_v43 = vadd.f32 %v7669_v59, %v3515_v19  ;;  %v4158_v10 = vmax.f32 %v3902_v38, 0.0  ;;  %v5719_v19 = vor.u32 %v6266_v6, %v5718_v7 }
 0x2c7   : > { %v2979_v4 = vpop.f32.mrf.mxu1  ;;  %v2642_v31 = vpop.f32.mrf.mxu2 }
 0x2c8   : > { %v4031_v50 = vmax.f32 %v3775_v43, 0.0  ;;  %v4414_v52 = vpack.c.bf16 %v4158_v10, %v4158_v10  ;;  %v3292_v37 = vadd.f32 %v7613_v55, %v2642_v31 }
 0x2c9   : > { %v2325_v36 = vpop.f32.mrf.mxu0 }
 0x2ca   : > { %5963 = vmatmul.msk.bf16.gmra.mxu1 %vm1754_vm2, %v5211_v21  ;;  %v4287_v57 = vpack.c.bf16 %v4031_v50, %v4031_v50  ;;  %v2975_v40 = vadd.f32 %v7648_v62, %v2325_v36  ;;  %6028 = vmatmul.msk.bf16.gmra.mxu3 %vm1754_vm2, %v5731_v9  ;;  %4671 = vst.msk [vmem:[%s6589_s29 + $0x308] sm:$0xf] %vm4476_vm3, %v4414_v52  ;;  %v6141_v36 = vld [vmem:[%s6452_s7 + $0x2d4] sm:$0xf] }
 0x2cb   : > { %v3643_v12 = vmul.f32 %v7660_v14, %v3292_v37 }
 0x2cc   : > { %4544 = vst.msk [vmem:[%s6589_s29 + $0x10c] sm:$0xf] %vm4476_vm3, %v4287_v57  ;;  %v3516_v23 = vmul.f32 %v7660_v14, %v2975_v40  ;;  %2364 = vmatmul.bf16.gmra.mxu0 %v5199_v15  ;;  %2684 = vmatmul.bf16.gmra.mxu2 %v5711_v0  ;;  %v5224_v0 = vld [vmem:[%s6452_s7 + $0x2d8] sm:$0xf0]  ;;  %v6271_v40 = vld [vmem:[%s6452_s7 + $0x6e4] sm:$0xf] }
 0x2cd   : > { %v3903_v55 = vadd.f32 %v7669_v59, %v3643_v12  ;;  %v7705_v44 = vpop.f32.mrf.mxu3  ;;  %v5744_v12 = vld [vmem:[%s6452_s7 + $0x6e8] sm:$0xf0] }
 0x2ce   : > { %v3776_v62 = vadd.f32 %v7669_v59, %v3516_v23 }
 0x2cf   : > { %v2981_v47 = vpop.f32.mrf.mxu1  ;;  %v4159_v27 = vmax.f32 %v3903_v55, 0.0  ;;  %v2645_v3 = vpop.f32.mrf.mxu2 }
 0x2d0   : > { %v4032_v48 = vmax.f32 %v3776_v62, 0.0  ;;  %v3295_v32 = vadd.f32 %v7628_v28, %v2645_v3  ;;  %v5219_v28 = vor.u32 %v6139_v56, %v5216_v54  ;;  %v5214_v62 = vld [vmem:[%s6452_s7 + $0x2c0] sm:$0xf] }
 0x2d1   : > { %v4415_v51 = vpack.c.bf16 %v4159_v27, %v4159_v27  ;;  %v2327_v42 = vpop.f32.mrf.mxu0  ;;  %v6140_v27 = vld [vmem:[%s6452_s7 + $0x2c4] sm:$0xf0] }
 0x2d2   : > { %v4288_v34 = vpack.c.bf16 %v4032_v48, %v4032_v48  ;;  %v2977_v8 = vadd.f32 %v2976_v2, %v2327_v42  ;;  %v3644_v39 = vmul.f32 %v7660_v14, %v3295_v32  ;;  %v6268_v32 = vld [vmem:[%s6452_s7 + $0x6c4] sm:$0xf0]  ;;  %v5747_v42 = vor.u32 %v6271_v40, %v5744_v12 }
 0x2d3   : > { %4672 = vst.msk [vmem:[%s6589_s29 + $0x30c] sm:$0xf] %vm4476_vm3, %v4415_v51  ;;  %v5726_v51 = vld [vmem:[%s6452_s7 + $0x6c0] sm:$0xf]  ;;  %v5215_v54 = vor.u32 %v6140_v27, %v5214_v62 }
 0x2d4   : > { %4545 = vst.msk [vmem:[%s6589_s29 + $0x110] sm:$0xf] %vm4476_vm3, %v4288_v34  ;;  %v3517_v17 = vmul.f32 %v7660_v14, %v2977_v8  ;;  %v3904_v61 = vadd.f32 %v7669_v59, %v3644_v39 }
 0x2d5   : > { %v7722_v2 = vpop.f32.mrf.mxu3 }
 0x2d6   : > { %v3777_v49 = vadd.f32 %v7669_v59, %v3517_v17  ;;  %v4160_v29 = vmax.f32 %v3904_v61, 0.0  ;;  %v5727_v17 = vor.u32 %v6268_v32, %v5726_v51 }
 0x2d7   : > { %v2984_v24 = vpop.f32.mrf.mxu1  ;;  %v2647_v11 = vpop.f32.mrf.mxu2 }
 0x2d8   : > { %v4033_v13 = vmax.f32 %v3777_v49, 0.0  ;;  %v4416_v33 = vpack.c.bf16 %v4160_v29, %v4160_v29  ;;  %v3297_v18 = vadd.f32 %v7645_v41, %v2647_v11 }
 0x2d9   : > { %v2330_v60 = vpop.f32.mrf.mxu0 }
 0x2da   : > { %5964 = vmatmul.msk.bf16.gmra.mxu1 %vm1754_vm2, %v5219_v28  ;;  %v4289_v38 = vpack.c.bf16 %v4033_v13, %v4033_v13  ;;  %v2980_v21 = vadd.f32 %v2979_v4, %v2330_v60  ;;  %6029 = vmatmul.msk.bf16.gmra.mxu3 %vm1754_vm2, %v5739_v53  ;;  %4673 = vst.msk [vmem:[%s6589_s29 + $0x310] sm:$0xf] %vm4476_vm3, %v4416_v33  ;;  %v6143_v60 = vld [vmem:[%s6452_s7 + $0x2e4] sm:$0xf] }
 0x2db   : > { %v3645_v63 = vmul.f32 %v7660_v14, %v3297_v18 }
 0x2dc   : > { %4546 = vst.msk [vmem:[%s6589_s29 + $0x114] sm:$0xf] %vm4476_vm3, %v4289_v38  ;;  %v3518_v5 = vmul.f32 %v7660_v14, %v2980_v21  ;;  %2369 = vmatmul.bf16.gmra.mxu0 %v5207_v58  ;;  %2689 = vmatmul.bf16.gmra.mxu2 %v5719_v19  ;;  %v5232_v19 = vld [vmem:[%s6452_s7 + $0x2e8] sm:$0xf0]  ;;  %v6273_v21 = vld [vmem:[%s6452_s7 + $0x6f4] sm:$0xf] }
 0x2dd   : > { %v3905_v41 = vadd.f32 %v7669_v59, %v3645_v63  ;;  %v7737_v43 = vpop.f32.mrf.mxu3  ;;  %v5752_v63 = vld [vmem:[%s6452_s7 + $0x6f8] sm:$0xf0] }
 0x2de   : > { %v3778_v4 = vadd.f32 %v7669_v59, %v3518_v5 }
 0x2df   : > { %v2986_v25 = vpop.f32.mrf.mxu1  ;;  %v4161_v26 = vmax.f32 %v3905_v41, 0.0  ;;  %v2650_v10 = vpop.f32.mrf.mxu2 }
 0x2e0   : > { %v4034_v9 = vmax.f32 %v3778_v4, 0.0  ;;  %v3300_v31 = vadd.f32 %v7672_v45, %v2650_v10  ;;  %v5227_v45 = vor.u32 %v6141_v36, %v5224_v0  ;;  %v5222_v4 = vld [vmem:[%s6452_s7 + $0x2d0] sm:$0xf] }
 0x2e1   : > { %v4417_v50 = vpack.c.bf16 %v4161_v26, %v4161_v26  ;;  %v2332_v15 = vpop.f32.mrf.mxu0  ;;  %v6142_v26 = vld [vmem:[%s6452_s7 + $0x2d4] sm:$0xf0] }
 0x2e2   : > { %v4290_v52 = vpack.c.bf16 %v4034_v9, %v4034_v9  ;;  %v2982_v37 = vadd.f32 %v2981_v47, %v2332_v15  ;;  %v3646_v57 = vmul.f32 %v7660_v14, %v3300_v31  ;;  %v6270_v31 = vld [vmem:[%s6452_s7 + $0x6d4] sm:$0xf0]  ;;  %v5755_v15 = vor.u32 %v6273_v21, %v5752_v63 }
 0x2e3   : > { %4674 = vst.msk [vmem:[%s6589_s29 + $0x314] sm:$0xf] %vm4476_vm3, %v4417_v50  ;;  %v5734_v50 = vld [vmem:[%s6452_s7 + $0x6d0] sm:$0xf]  ;;  %v5223_v0 = vor.u32 %v6142_v26, %v5222_v4 }
 0x2e4   : > { %4547 = vst.msk [vmem:[%s6589_s29 + $0x118] sm:$0xf] %vm4476_vm3, %v4290_v52  ;;  %v3519_v23 = vmul.f32 %v7660_v14, %v2982_v37  ;;  %v3906_v55 = vadd.f32 %v7669_v59, %v3646_v57 }
 0x2e5   : > { %v7754_v47 = vpop.f32.mrf.mxu3 }
 0x2e6   : > { %v3779_v48 = vadd.f32 %v7669_v59, %v3519_v23  ;;  %v4162_v34 = vmax.f32 %v3906_v55, 0.0  ;;  %v5735_v23 = vor.u32 %v6270_v31, %v5734_v50 }
 0x2e7   : > { %v2989_v3 = vpop.f32.mrf.mxu1  ;;  %v2652_v56 = vpop.f32.mrf.mxu2 }
 0x2e8   : > { %v4035_v8 = vmax.f32 %v3779_v48, 0.0  ;;  %v4418_v39 = vpack.c.bf16 %v4162_v34, %v4162_v34  ;;  %v3302_v22 = vadd.f32 %v7689_v30, %v2652_v56 }
 0x2e9   : > { %v2335_v46 = vpop.f32.mrf.mxu0 }
 0x2ea   : > { %5965 = vmatmul.msk.bf16.gmra.mxu1 %vm1754_vm2, %v5227_v45  ;;  %v4291_v61 = vpack.c.bf16 %v4035_v8, %v4035_v8  ;;  %v2985_v28 = vadd.f32 %v2984_v24, %v2335_v46  ;;  %6030 = vmatmul.msk.bf16.gmra.mxu3 %vm1754_vm2, %v5747_v42  ;;  %4675 = vst.msk [vmem:[%s6589_s29 + $0x318] sm:$0xf] %vm4476_vm3, %v4418_v39  ;;  %v6145_v46 = vld [vmem:[%s6452_s7 + $0x2f4] sm:$0xf] }
 0x2eb   : > { %v3647_v20 = vmul.f32 %v7660_v14, %v3302_v22 }
 0x2ec   : > { %4548 = vst.msk [vmem:[%s6589_s29 + $0x11c] sm:$0xf] %vm4476_vm3, %v4291_v61  ;;  %v3520_v1 = vmul.f32 %v7660_v14, %v2985_v28  ;;  %2374 = vmatmul.bf16.gmra.mxu0 %v5215_v54  ;;  %2694 = vmatmul.bf16.gmra.mxu2 %v5727_v17  ;;  %v5240_v17 = vld [vmem:[%s6452_s7 + $0x2f8] sm:$0xf0]  ;;  %v6275_v28 = vld [vmem:[%s6452_s7 + $0x704] sm:$0xf] }
 0x2ed   : > { %v3907_v30 = vadd.f32 %v7669_v59, %v3647_v20  ;;  %v7769_v49 = vpop.f32.mrf.mxu3  ;;  %v5760_v20 = vld [vmem:[%s6452_s7 + $0x708] sm:$0xf0] }
 0x2ee   : > { %v3780_v24 = vadd.f32 %v7669_v59, %v3520_v1 }
 0x2ef   : > { %v2991_v7 = vpop.f32.mrf.mxu1  ;;  %v4163_v6 = vmax.f32 %v3907_v30, 0.0  ;;  %v2655_v29 = vpop.f32.mrf.mxu2 }
 0x2f0   : > { %v4036_v53 = vmax.f32 %v3780_v24, 0.0  ;;  %v3305_v11 = vadd.f32 %v7705_v44, %v2655_v29  ;;  %v5235_v44 = vor.u32 %v6143_v60, %v5232_v19  ;;  %v5230_v24 = vld [vmem:[%s6452_s7 + $0x2e0] sm:$0xf] }
 0x2f1   : > { %v4419_v13 = vpack.c.bf16 %v4163_v6, %v4163_v6  ;;  %v2337_v58 = vpop.f32.mrf.mxu0  ;;  %v6144_v6 = vld [vmem:[%s6452_s7 + $0x2e4] sm:$0xf0] }
 0x2f2   : > { %v4292_v33 = vpack.c.bf16 %v4036_v53, %v4036_v53  ;;  %v2987_v18 = vadd.f32 %v2986_v25, %v2337_v58  ;;  %v3648_v38 = vmul.f32 %v7660_v14, %v3305_v11  ;;  %v6272_v11 = vld [vmem:[%s6452_s7 + $0x6e4] sm:$0xf0]  ;;  %v5763_v58 = vor.u32 %v6275_v28, %v5760_v20 }
 0x2f3   : > { %4676 = vst.msk [vmem:[%s6589_s29 + $0x31c] sm:$0xf] %vm4476_vm3, %v4419_v13  ;;  %v5742_v13 = vld [vmem:[%s6452_s7 + $0x6e0] sm:$0xf]  ;;  %v5231_v19 = vor.u32 %v6144_v6, %v5230_v24 }
 0x2f4   : > { %4549 = vst.msk [vmem:[%s6589_s29 + $0x120] sm:$0xf] %vm4476_vm3, %v4292_v33  ;;  %v3521_v5 = vmul.f32 %v7660_v14, %v2987_v18  ;;  %v3908_v41 = vadd.f32 %v7669_v59, %v3648_v38 }
 0x2f5   : > { %v7786_v25 = vpop.f32.mrf.mxu3 }
 0x2f6   : > { %v3781_v9 = vadd.f32 %v7669_v59, %v3521_v5  ;;  %v4164_v52 = vmax.f32 %v3908_v41, 0.0  ;;  %v5743_v5 = vor.u32 %v6272_v11, %v5742_v13 }
 0x2f7   : > { %v2994_v10 = vpop.f32.mrf.mxu1  ;;  %v2657_v36 = vpop.f32.mrf.mxu2 }
 0x2f8   : > { %v4037_v37 = vmax.f32 %v3781_v9, 0.0  ;;  %v4420_v57 = vpack.c.bf16 %v4164_v52, %v4164_v52  ;;  %v3307_v40 = vadd.f32 %v7722_v2, %v2657_v36 }
 0x2f9   : > { %v2340_v12 = vpop.f32.mrf.mxu0 }
 0x2fa   : > { %5966 = vmatmul.msk.bf16.gmra.mxu1 %vm1754_vm2, %v5235_v44  ;;  %v4293_v55 = vpack.c.bf16 %v4037_v37, %v4037_v37  ;;  %v2990_v45 = vadd.f32 %v2989_v3, %v2340_v12  ;;  %6031 = vmatmul.msk.bf16.gmra.mxu3 %vm1754_vm2, %v5755_v15  ;;  %4677 = vst.msk [vmem:[%s6589_s29 + $0x320] sm:$0xf] %vm4476_vm3, %v4420_v57  ;;  %v6147_v12 = vld [vmem:[%s6452_s7 + $0x304] sm:$0xf] }
 0x2fb   : > { %v3649_v62 = vmul.f32 %v7660_v14, %v3307_v40 }
 0x2fc   : > { %4550 = vst.msk [vmem:[%s6589_s29 + $0x124] sm:$0xf] %vm4476_vm3, %v4293_v55  ;;  %v3522_v27 = vmul.f32 %v7660_v14, %v2990_v45  ;;  %2379 = vmatmul.bf16.gmra.mxu0 %v5223_v0  ;;  %2699 = vmatmul.bf16.gmra.mxu2 %v5735_v23  ;;  %v5248_v23 = vld [vmem:[%s6452_s7 + $0x308] sm:$0xf0]  ;;  %v6277_v45 = vld [vmem:[%s6452_s7 + $0x714] sm:$0xf] }
 0x2fd   : > { %v3909_v2 = vadd.f32 %v7669_v59, %v3649_v62  ;;  %v7801_v48 = vpop.f32.mrf.mxu3  ;;  %v5768_v62 = vld [vmem:[%s6452_s7 + $0x718] sm:$0xf0] }
 0x2fe   : > { %v3782_v3 = vadd.f32 %v7669_v59, %v3522_v27 }
 0x2ff   : > { %v2996_v51 = vpop.f32.mrf.mxu1  ;;  %v4165_v32 = vmax.f32 %v3909_v2, 0.0  ;;  %v2660_v34 = vpop.f32.mrf.mxu2 }
 0x300   : > { %v4038_v42 = vmax.f32 %v3782_v3, 0.0  ;;  %v3310_v56 = vadd.f32 %v7737_v43, %v2660_v34  ;;  %v5243_v43 = vor.u32 %v6145_v46, %v5240_v17  ;;  %v5238_v3 = vld [vmem:[%s6452_s7 + $0x2f0] sm:$0xf] }
 0x301   : > { %v4421_v8 = vpack.c.bf16 %v4165_v32, %v4165_v32  ;;  %v2342_v54 = vpop.f32.mrf.mxu0  ;;  %v6146_v32 = vld [vmem:[%s6452_s7 + $0x2f4] sm:$0xf0] }
 0x302   : > { %v4294_v39 = vpack.c.bf16 %v4038_v42, %v4038_v42  ;;  %v2992_v22 = vadd.f32 %v2991_v7, %v2342_v54  ;;  %v3650_v61 = vmul.f32 %v7660_v14, %v3310_v56  ;;  %v6274_v56 = vld [vmem:[%s6452_s7 + $0x6f4] sm:$0xf0]  ;;  %v5771_v54 = vor.u32 %v6277_v45, %v5768_v62 }
 0x303   : > { %4678 = vst.msk [vmem:[%s6589_s29 + $0x324] sm:$0xf] %vm4476_vm3, %v4421_v8  ;;  %v5750_v8 = vld [vmem:[%s6452_s7 + $0x6f0] sm:$0xf]  ;;  %v5239_v17 = vor.u32 %v6146_v32, %v5238_v3 }
 0x304   : > { %4551 = vst.msk [vmem:[%s6589_s29 + $0x128] sm:$0xf] %vm4476_vm3, %v4294_v39  ;;  %v3523_v1 = vmul.f32 %v7660_v14, %v2992_v22  ;;  %v3910_v30 = vadd.f32 %v7669_v59, %v3650_v61 }
 0x305   : > { %v7818_v7 = vpop.f32.mrf.mxu3 }
 0x306   : > { %v3783_v53 = vadd.f32 %v7669_v59, %v3523_v1  ;;  %v4166_v33 = vmax.f32 %v3910_v30, 0.0  ;;  %v5751_v1 = vor.u32 %v6274_v56, %v5750_v8 }
 0x307   : > { %v2999_v29 = vpop.f32.mrf.mxu1  ;;  %v2662_v60 = vpop.f32.mrf.mxu2 }
 0x308   : > { %v4039_v18 = vmax.f32 %v3783_v53, 0.0  ;;  %v4422_v38 = vpack.c.bf16 %v4166_v33, %v4166_v33  ;;  %v3312_v21 = vadd.f32 %v7754_v47, %v2662_v60 }
 0x309   : > { %v2345_v63 = vpop.f32.mrf.mxu0 }
 0x30a   : > { %5967 = vmatmul.msk.bf16.gmra.mxu1 %vm1754_vm2, %v5243_v43  ;;  %v4295_v41 = vpack.c.bf16 %v4039_v18, %v4039_v18  ;;  %v2995_v44 = vadd.f32 %v2994_v10, %v2345_v63  ;;  %6032 = vmatmul.msk.bf16.gmra.mxu3 %vm1754_vm2, %v5763_v58  ;;  %4679 = vst.msk [vmem:[%s6589_s29 + $0x328] sm:$0xf] %vm4476_vm3, %v4422_v38  ;;  %v6149_v63 = vld [vmem:[%s6452_s7 + $0x314] sm:$0xf] }
 0x30b   : > { %v3651_v4 = vmul.f32 %v7660_v14, %v3312_v21 }
 0x30c   : > { %4552 = vst.msk [vmem:[%s6589_s29 + $0x12c] sm:$0xf] %vm4476_vm3, %v4295_v41  ;;  %v3524_v26 = vmul.f32 %v7660_v14, %v2995_v44  ;;  %2384 = vmatmul.bf16.gmra.mxu0 %v5231_v19  ;;  %2704 = vmatmul.bf16.gmra.mxu2 %v5743_v5  ;;  %v5256_v5 = vld [vmem:[%s6452_s7 + $0x318] sm:$0xf0]  ;;  %v6279_v44 = vld [vmem:[%s6452_s7 + $0x724] sm:$0xf] }
 0x30d   : > { %v3911_v47 = vadd.f32 %v7669_v59, %v3651_v4  ;;  %v7833_v9 = vpop.f32.mrf.mxu3  ;;  %v5776_v4 = vld [vmem:[%s6452_s7 + $0x728] sm:$0xf0] }
 0x30e   : > { %v3784_v10 = vadd.f32 %v7669_v59, %v3524_v26 }
 0x30f   : > { %v3001_v50 = vpop.f32.mrf.mxu1  ;;  %v4167_v31 = vmax.f32 %v3911_v47, 0.0  ;;  %v2665_v52 = vpop.f32.mrf.mxu2 }
 0x310   : > { %v4040_v15 = vmax.f32 %v3784_v10, 0.0  ;;  %v3315_v36 = vadd.f32 %v7769_v49, %v2665_v52  ;;  %v5251_v49 = vor.u32 %v6147_v12, %v5248_v23  ;;  %v5246_v10 = vld [vmem:[%s6452_s7 + $0x300] sm:$0xf] }
 0x311   : > { %v4423_v37 = vpack.c.bf16 %v4167_v31, %v4167_v31  ;;  %v2347_v0 = vpop.f32.mrf.mxu0  ;;  %v6148_v31 = vld [vmem:[%s6452_s7 + $0x304] sm:$0xf0] }
 0x312   : > { %v4296_v57 = vpack.c.bf16 %v4040_v15, %v4040_v15  ;;  %v2997_v40 = vadd.f32 %v2996_v51, %v2347_v0  ;;  %v3652_v55 = vmul.f32 %v7660_v14, %v3315_v36  ;;  %v6276_v36 = vld [vmem:[%s6452_s7 + $0x704] sm:$0xf0]  ;;  %v5779_v0 = vor.u32 %v6279_v44, %v5776_v4 }
 0x313   : > { %4680 = vst.msk [vmem:[%s6589_s29 + $0x32c] sm:$0xf] %vm4476_vm3, %v4423_v37  ;;  %v5758_v37 = vld [vmem:[%s6452_s7 + $0x700] sm:$0xf]  ;;  %v5247_v23 = vor.u32 %v6148_v31, %v5246_v10 }
 0x314   : > { %4553 = vst.msk [vmem:[%s6589_s29 + $0x130] sm:$0xf] %vm4476_vm3, %v4296_v57  ;;  %v3525_v27 = vmul.f32 %v7660_v14, %v2997_v40  ;;  %v3912_v2 = vadd.f32 %v7669_v59, %v3652_v55 }
 0x315   : > { %v7850_v51 = vpop.f32.mrf.mxu3 }
 0x316   : > { %v3785_v42 = vadd.f32 %v7669_v59, %v3525_v27  ;;  %v4168_v39 = vmax.f32 %v3912_v2, 0.0  ;;  %v5759_v27 = vor.u32 %v6276_v36, %v5758_v37 }
 0x317   : > { %v3004_v34 = vpop.f32.mrf.mxu1  ;;  %v2667_v46 = vpop.f32.mrf.mxu2 }
 0x318   : > { %v4041_v22 = vmax.f32 %v3785_v42, 0.0  ;;  %v4424_v61 = vpack.c.bf16 %v4168_v39, %v4168_v39  ;;  %v3317_v28 = vadd.f32 %v7786_v25, %v2667_v46 }
 0x319   : > { %v2350_v20 = vpop.f32.mrf.mxu0 }
 0x31a   : > { %5968 = vmatmul.msk.bf16.gmra.mxu1 %vm1754_vm2, %v5251_v49  ;;  %v4297_v30 = vpack.c.bf16 %v4041_v22, %v4041_v22  ;;  %v3000_v43 = vadd.f32 %v2999_v29, %v2350_v20  ;;  %6033 = vmatmul.msk.bf16.gmra.mxu3 %vm1754_vm2, %v5771_v54  ;;  %4681 = vst.msk [vmem:[%s6589_s29 + $0x330] sm:$0xf] %vm4476_vm3, %v4424_v61  ;;  %v6151_v20 = vld [vmem:[%s6452_s7 + $0x324] sm:$0xf] }
 0x31b   : > { %v3653_v24 = vmul.f32 %v7660_v14, %v3317_v28 }
 0x31c   : > { %4554 = vst.msk [vmem:[%s6589_s29 + $0x134] sm:$0xf] %vm4476_vm3, %v4297_v30  ;;  %v3526_v6 = vmul.f32 %v7660_v14, %v3000_v43  ;;  %2389 = vmatmul.bf16.gmra.mxu0 %v5239_v17  ;;  %2709 = vmatmul.bf16.gmra.mxu2 %v5751_v1  ;;  %v5264_v1 = vld [vmem:[%s6452_s7 + $0x328] sm:$0xf0]  ;;  %v6281_v43 = vld [vmem:[%s6452_s7 + $0x734] sm:$0xf] }
 0x31d   : > { %v3913_v25 = vadd.f32 %v7669_v59, %v3653_v24  ;;  %v7865_v53 = vpop.f32.mrf.mxu3  ;;  %v5784_v24 = vld [vmem:[%s6452_s7 + $0x738] sm:$0xf0] }
 0x31e   : > { %v3786_v29 = vadd.f32 %v7669_v59, %v3526_v6 }
 0x31f   : > { %v3006_v13 = vpop.f32.mrf.mxu1  ;;  %v4169_v11 = vmax.f32 %v3913_v25, 0.0  ;;  %v2670_v33 = vpop.f32.mrf.mxu2 }
 0x320   : > { %v4042_v58 = vmax.f32 %v3786_v29, 0.0  ;;  %v3320_v60 = vadd.f32 %v7801_v48, %v2670_v33  ;;  %v5259_v48 = vor.u32 %v6149_v63, %v5256_v5  ;;  %v5254_v29 = vld [vmem:[%s6452_s7 + $0x310] sm:$0xf] }
 0x321   : > { %v4425_v18 = vpack.c.bf16 %v4169_v11, %v4169_v11  ;;  %v2352_v19 = vpop.f32.mrf.mxu0  ;;  %v6150_v11 = vld [vmem:[%s6452_s7 + $0x314] sm:$0xf0] }
 0x322   : > { %v4298_v38 = vpack.c.bf16 %v4042_v58, %v4042_v58  ;;  %v3002_v21 = vadd.f32 %v3001_v50, %v2352_v19  ;;  %v3654_v41 = vmul.f32 %v7660_v14, %v3320_v60  ;;  %v6278_v60 = vld [vmem:[%s6452_s7 + $0x714] sm:$0xf0]  ;;  %v5787_v19 = vor.u32 %v6281_v43, %v5784_v24 }
 0x323   : > { %4682 = vst.msk [vmem:[%s6589_s29 + $0x334] sm:$0xf] %vm4476_vm3, %v4425_v18  ;;  %v5766_v18 = vld [vmem:[%s6452_s7 + $0x710] sm:$0xf]  ;;  %v5255_v5 = vor.u32 %v6150_v11, %v5254_v29 }
 0x324   : > { %4555 = vst.msk [vmem:[%s6589_s29 + $0x138] sm:$0xf] %vm4476_vm3, %v4298_v38  ;;  %v3527_v26 = vmul.f32 %v7660_v14, %v3002_v21  ;;  %v3914_v47 = vadd.f32 %v7669_v59, %v3654_v41 }
 0x325   : > { %v7882_v50 = vpop.f32.mrf.mxu3 }
 0x326   : > { %v3787_v15 = vadd.f32 %v7669_v59, %v3527_v26  ;;  %v4170_v57 = vmax.f32 %v3914_v47, 0.0  ;;  %v5767_v26 = vor.u32 %v6278_v60, %v5766_v18 }
 0x327   : > { %v3009_v52 = vpop.f32.mrf.mxu1  ;;  %v2672_v12 = vpop.f32.mrf.mxu2 }
 0x328   : > { %v4043_v40 = vmax.f32 %v3787_v15, 0.0  ;;  %v4426_v55 = vpack.c.bf16 %v4170_v57, %v4170_v57  ;;  %v3322_v45 = vadd.f32 %v7818_v7, %v2672_v12 }
 0x329   : > { %v2355_v62 = vpop.f32.mrf.mxu0 }
 0x32a   : > { %5969 = vmatmul.msk.bf16.gmra.mxu1 %vm1754_vm2, %v5259_v48  ;;  %v4299_v2 = vpack.c.bf16 %v4043_v40, %v4043_v40  ;;  %v3005_v49 = vadd.f32 %v3004_v34, %v2355_v62  ;;  %6034 = vmatmul.msk.bf16.gmra.mxu3 %vm1754_vm2, %v5779_v0  ;;  %4683 = vst.msk [vmem:[%s6589_s29 + $0x338] sm:$0xf] %vm4476_vm3, %v4426_v55  ;;  %v6153_v62 = vld [vmem:[%s6452_s7 + $0x334] sm:$0xf] }
 0x32b   : > { %v3655_v3 = vmul.f32 %v7660_v14, %v3322_v45 }
 0x32c   : > { %4556 = vst.msk [vmem:[%s6589_s29 + $0x13c] sm:$0xf] %vm4476_vm3, %v4299_v2  ;;  %v3528_v32 = vmul.f32 %v7660_v14, %v3005_v49  ;;  %2394 = vmatmul.bf16.gmra.mxu0 %v5247_v23  ;;  %2714 = vmatmul.bf16.gmra.mxu2 %v5759_v27  ;;  %v5272_v27 = vld [vmem:[%s6452_s7 + $0x338] sm:$0xf0]  ;;  %v6283_v49 = vld [vmem:[%s6452_s7 + $0x744] sm:$0xf] }
 0x32d   : > { %v3915_v7 = vadd.f32 %v7669_v59, %v3655_v3  ;;  %v7897_v42 = vpop.f32.mrf.mxu3  ;;  %v5792_v3 = vld [vmem:[%s6452_s7 + $0x748] sm:$0xf0] }
 0x32e   : > { %v3788_v34 = vadd.f32 %v7669_v59, %v3528_v32 }
 0x32f   : > { %v3011_v8 = vpop.f32.mrf.mxu1  ;;  %v4171_v56 = vmax.f32 %v3915_v7, 0.0  ;;  %v2675_v39 = vpop.f32.mrf.mxu2 }
 0x330   : > { %v4044_v54 = vmax.f32 %v3788_v34, 0.0  ;;  %v3325_v46 = vadd.f32 %v7833_v9, %v2675_v39  ;;  %v5267_v9 = vor.u32 %v6151_v20, %v5264_v1  ;;  %v5262_v34 = vld [vmem:[%s6452_s7 + $0x320] sm:$0xf] }
 0x331   : > { %v4427_v22 = vpack.c.bf16 %v4171_v56, %v4171_v56  ;;  %v2357_v17 = vpop.f32.mrf.mxu0  ;;  %v6152_v56 = vld [vmem:[%s6452_s7 + $0x324] sm:$0xf0] }
 0x332   : > { %v4300_v61 = vpack.c.bf16 %v4044_v54, %v4044_v54  ;;  %v3007_v28 = vadd.f32 %v3006_v13, %v2357_v17  ;;  %v3656_v30 = vmul.f32 %v7660_v14, %v3325_v46  ;;  %v6280_v46 = vld [vmem:[%s6452_s7 + $0x724] sm:$0xf0]  ;;  %v5795_v17 = vor.u32 %v6283_v49, %v5792_v3 }
 0x333   : > { %4684 = vst.msk [vmem:[%s6589_s29 + $0x33c] sm:$0xf] %vm4476_vm3, %v4427_v22  ;;  %v5774_v22 = vld [vmem:[%s6452_s7 + $0x720] sm:$0xf]  ;;  %v5263_v1 = vor.u32 %v6152_v56, %v5262_v34 }
 0x334   : > { %4557 = vst.msk [vmem:[%s6589_s29 + $0x140] sm:$0xf] %vm4476_vm3, %v4300_v61  ;;  %v3529_v6 = vmul.f32 %v7660_v14, %v3007_v28  ;;  %v3916_v25 = vadd.f32 %v7669_v59, %v3656_v30 }
 0x335   : > { %v7914_v13 = vpop.f32.mrf.mxu3 }
 0x336   : > { %v3789_v58 = vadd.f32 %v7669_v59, %v3529_v6  ;;  %v4172_v38 = vmax.f32 %v3916_v25, 0.0  ;;  %v5775_v6 = vor.u32 %v6280_v46, %v5774_v22 }
 0x337   : > { %v3014_v33 = vpop.f32.mrf.mxu1  ;;  %v2677_v63 = vpop.f32.mrf.mxu2 }
 0x338   : > { %v4045_v21 = vmax.f32 %v3789_v58, 0.0  ;;  %v4428_v41 = vpack.c.bf16 %v4172_v38, %v4172_v38  ;;  %v3327_v44 = vadd.f32 %v7850_v51, %v2677_v63 }
 0x339   : > { %v2360_v4 = vpop.f32.mrf.mxu0 }
 0x33a   : > { %5970 = vmatmul.msk.bf16.gmra.mxu1 %vm1754_vm2, %v5267_v9  ;;  %v4301_v47 = vpack.c.bf16 %v4045_v21, %v4045_v21  ;;  %v3010_v48 = vadd.f32 %v3009_v52, %v2360_v4  ;;  %6035 = vmatmul.msk.bf16.gmra.mxu3 %vm1754_vm2, %v5787_v19  ;;  %4685 = vst.msk [vmem:[%s6589_s29 + $0x340] sm:$0xf] %vm4476_vm3, %v4428_v41  ;;  %v6155_v4 = vld [vmem:[%s6452_s7 + $0x344] sm:$0xf] }
 0x33b   : > { %v3657_v10 = vmul.f32 %v7660_v14, %v3327_v44 }
 0x33c   : > { %4558 = vst.msk [vmem:[%s6589_s29 + $0x144] sm:$0xf] %vm4476_vm3, %v4301_v47  ;;  %v3530_v31 = vmul.f32 %v7660_v14, %v3010_v48  ;;  %2399 = vmatmul.bf16.gmra.mxu0 %v5255_v5  ;;  %2719 = vmatmul.bf16.gmra.mxu2 %v5767_v26  ;;  %v5280_v26 = vld [vmem:[%s6452_s7 + $0x348] sm:$0xf0]  ;;  %v6285_v48 = vld [vmem:[%s6452_s7 + $0x754] sm:$0xf] }
 0x33d   : > { %v3917_v51 = vadd.f32 %v7669_v59, %v3657_v10  ;;  %v7929_v15 = vpop.f32.mrf.mxu3  ;;  %v5800_v10 = vld [vmem:[%s6452_s7 + $0x758] sm:$0xf0] }
 0x33e   : > { %v3790_v52 = vadd.f32 %v7669_v59, %v3530_v31 }
 0x33f   : > { %v3016_v37 = vpop.f32.mrf.mxu1  ;;  %v4173_v36 = vmax.f32 %v3917_v51, 0.0  ;;  %v2680_v57 = vpop.f32.mrf.mxu2 }
 0x340   : > { %v4046_v0 = vmax.f32 %v3790_v52, 0.0  ;;  %v3330_v12 = vadd.f32 %v7865_v53, %v2680_v57  ;;  %v5275_v53 = vor.u32 %v6153_v62, %v5272_v27  ;;  %v5270_v52 = vld [vmem:[%s6452_s7 + $0x330] sm:$0xf] }
 0x341   : > { %v4429_v40 = vpack.c.bf16 %v4173_v36, %v4173_v36  ;;  %v2362_v23 = vpop.f32.mrf.mxu0  ;;  %v6154_v36 = vld [vmem:[%s6452_s7 + $0x334] sm:$0xf0] }
 0x342   : > { %v4302_v55 = vpack.c.bf16 %v4046_v0, %v4046_v0  ;;  %v3012_v45 = vadd.f32 %v3011_v8, %v2362_v23  ;;  %v3658_v2 = vmul.f32 %v7660_v14, %v3330_v12  ;;  %v6282_v12 = vld [vmem:[%s6452_s7 + $0x734] sm:$0xf0]  ;;  %v5803_v23 = vor.u32 %v6285_v48, %v5800_v10 }
 0x343   : > { %4686 = vst.msk [vmem:[%s6589_s29 + $0x344] sm:$0xf] %vm4476_vm3, %v4429_v40  ;;  %v5782_v40 = vld [vmem:[%s6452_s7 + $0x730] sm:$0xf]  ;;  %v5271_v27 = vor.u32 %v6154_v36, %v5270_v52  ;;  %v8034_v52 = vld [vmem:[%s8562_s3] ss:$0 sm:$0xff] }
 0x344   : > { %4559 = vst.msk [vmem:[%s6589_s29 + $0x148] sm:$0xf] %vm4476_vm3, %v4302_v55  ;;  %v3531_v32 = vmul.f32 %v7660_v14, %v3012_v45  ;;  %v3918_v7 = vadd.f32 %v7669_v59, %v3658_v2 }
 0x345   : > { %v7946_v8 = vpop.f32.mrf.mxu3 }
 0x346   : > { %v3791_v54 = vadd.f32 %v7669_v59, %v3531_v32  ;;  %v4174_v61 = vmax.f32 %v3918_v7, 0.0  ;;  %v5783_v32 = vor.u32 %v6282_v12, %v5782_v40 }
 0x347   : > { %v3019_v39 = vpop.f32.mrf.mxu1  ;;  %v2682_v20 = vpop.f32.mrf.mxu2 }
 0x348   : > { %v4047_v28 = vmax.f32 %v3791_v54, 0.0  ;;  %v4430_v30 = vpack.c.bf16 %v4174_v61, %v4174_v61  ;;  %v3332_v43 = vadd.f32 %v7882_v50, %v2682_v20 }
 0x349   : > { %v2365_v24 = vpop.f32.mrf.mxu0 }
 0x34a   : > { %5971 = vmatmul.msk.bf16.gmra.mxu1 %vm1754_vm2, %v5275_v53  ;;  %v4303_v25 = vpack.c.bf16 %v4047_v28, %v4047_v28  ;;  %v3015_v9 = vadd.f32 %v3014_v33, %v2365_v24  ;;  %6036 = vmatmul.msk.bf16.gmra.mxu3 %vm1754_vm2, %v5795_v17  ;;  %4687 = vst.msk [vmem:[%s6589_s29 + $0x348] sm:$0xf] %vm4476_vm3, %v4430_v30  ;;  %v6157_v24 = vld [vmem:[%s6452_s7 + $0x354] sm:$0xf] }
 0x34b   : > { %v3659_v29 = vmul.f32 %v7660_v14, %v3332_v43 }
 0x34c   : > { %4560 = vst.msk [vmem:[%s6589_s29 + $0x14c] sm:$0xf] %vm4476_vm3, %v4303_v25  ;;  %v3532_v11 = vmul.f32 %v7660_v14, %v3015_v9  ;;  %2404 = vmatmul.bf16.gmra.mxu0 %v5263_v1  ;;  %2724 = vmatmul.bf16.gmra.mxu2 %v5775_v6  ;;  %v5288_v6 = vld [vmem:[%s6452_s7 + $0x358] sm:$0xf0]  ;;  %v6287_v9 = vld [vmem:[%s6452_s7 + $0x764] sm:$0xf] }
 0x34d   : > { %v3919_v50 = vadd.f32 %v7669_v59, %v3659_v29  ;;  %v7961_v58 = vpop.f32.mrf.mxu3  ;;  %v5808_v29 = vld [vmem:[%s6452_s7 + $0x768] sm:$0xf0] }
 0x34e   : > { %v3792_v33 = vadd.f32 %v7669_v59, %v3532_v11 }
 0x34f   : > { %v3021_v18 = vpop.f32.mrf.mxu1  ;;  %v4175_v60 = vmax.f32 %v3919_v50, 0.0  ;;  %v2685_v38 = vpop.f32.mrf.mxu2 }
 0x350   : > { %v4048_v19 = vmax.f32 %v3792_v33, 0.0  ;;  %v3335_v63 = vadd.f32 %v7897_v42, %v2685_v38  ;;  %v5283_v42 = vor.u32 %v6155_v4, %v5280_v26  ;;  %v5278_v33 = vld [vmem:[%s6452_s7 + $0x340] sm:$0xf] }
 0x351   : > { %v4431_v21 = vpack.c.bf16 %v4175_v60, %v4175_v60  ;;  %v2367_v5 = vpop.f32.mrf.mxu0  ;;  %v6156_v60 = vld [vmem:[%s6452_s7 + $0x344] sm:$0xf0] }
 0x352   : > { %v4304_v41 = vpack.c.bf16 %v4048_v19, %v4048_v19  ;;  %v3017_v44 = vadd.f32 %v3016_v37, %v2367_v5  ;;  %v3660_v47 = vmul.f32 %v7660_v14, %v3335_v63  ;;  %v6284_v63 = vld [vmem:[%s6452_s7 + $0x744] sm:$0xf0]  ;;  %v5811_v5 = vor.u32 %v6287_v9, %v5808_v29 }
 0x353   : > { %4688 = vst.msk [vmem:[%s6589_s29 + $0x34c] sm:$0xf] %vm4476_vm3, %v4431_v21  ;;  %v5790_v21 = vld [vmem:[%s6452_s7 + $0x740] sm:$0xf] }
 0x354   : > { %4561 = vst.msk [vmem:[%s6589_s29 + $0x150] sm:$0xf] %vm4476_vm3, %v4304_v41  ;;  %v3533_v31 = vmul.f32 %v7660_v14, %v3017_v44  ;;  %v3920_v51 = vadd.f32 %v7669_v59, %v3660_v47  ;;  %v5791_v10 = vor.u32 %v6284_v63, %v5790_v21 }
 0x355   : > { %v7978_v37 = vpop.f32.mrf.mxu3 }
 0x356   : > { %v3793_v0 = vadd.f32 %v7669_v59, %v3533_v31  ;;  %v4176_v55 = vmax.f32 %v3920_v51, 0.0  ;;  %v8025_v51 = vld [vmem:[%s8561_s2] ss:$0 sm:$0xff] }
 0x357   : > { %v3024_v57 = vpop.f32.mrf.mxu1  ;;  %v2687_v62 = vpop.f32.mrf.mxu2 }
 0x358   : > { %v4049_v45 = vmax.f32 %v3793_v0, 0.0  ;;  %v4432_v2 = vpack.c.bf16 %v4176_v55, %v4176_v55  ;;  %v3337_v49 = vadd.f32 %v7914_v13, %v2687_v62 }
 0x359   : > { %v2370_v3 = vpop.f32.mrf.mxu0 }
 0x35a   : > { %5972 = vmatmul.msk.bf16.gmra.mxu1 %vm1754_vm2, %v5283_v42  ;;  %v4305_v7 = vpack.c.bf16 %v4049_v45, %v4049_v45  ;;  %v3020_v53 = vadd.f32 %v3019_v39, %v2370_v3  ;;  %6037 = vmatmul.msk.bf16.gmra.mxu3 %vm1754_vm2, %v5803_v23  ;;  %4689 = vst.msk [vmem:[%s6589_s29 + $0x350] sm:$0xf] %vm4476_vm3, %v4432_v2  ;;  %v6159_v3 = vld [vmem:[%s6452_s7 + $0x364] sm:$0xf] }
 0x35b   : > { %v3661_v34 = vmul.f32 %v7660_v14, %v3337_v49 }
 0x35c   : > { %4562 = vst.msk [vmem:[%s6589_s29 + $0x154] sm:$0xf] %vm4476_vm3, %v4305_v7  ;;  %v3534_v56 = vmul.f32 %v7660_v14, %v3020_v53  ;;  %2409 = vmatmul.bf16.gmra.mxu0 %v5271_v27  ;;  %2729 = vmatmul.bf16.gmra.mxu2 %v5783_v32  ;;  %v5296_v32 = vld [vmem:[%s6452_s7 + $0x368] sm:$0xf0]  ;;  %v6289_v53 = vld [vmem:[%s6452_s7 + $0x774] sm:$0xf] }
 0x35d   : > { %v3921_v13 = vadd.f32 %v7669_v59, %v3661_v34  ;;  %v7993_v54 = vpop.f32.mrf.mxu3  ;;  %v5816_v34 = vld [vmem:[%s6452_s7 + $0x778] sm:$0xf0] }
 0x35e   : > { %v3794_v39 = vadd.f32 %v7669_v59, %v3534_v56 }
 0x35f   : > { %v3026_v22 = vpop.f32.mrf.mxu1  ;;  %v4177_v46 = vmax.f32 %v3921_v13, 0.0  ;;  %v2690_v61 = vpop.f32.mrf.mxu2 }
 0x360   : > { %v4050_v17 = vmax.f32 %v3794_v39, 0.0  ;;  %v3340_v20 = vadd.f32 %v7929_v15, %v2690_v61  ;;  %v5291_v15 = vor.u32 %v6157_v24, %v5288_v6  ;;  %v5286_v39 = vld [vmem:[%s6452_s7 + $0x350] sm:$0xf] }
 0x361   : > { %v4433_v28 = vpack.c.bf16 %v4177_v46, %v4177_v46  ;;  %v2372_v1 = vpop.f32.mrf.mxu0  ;;  %v6158_v46 = vld [vmem:[%s6452_s7 + $0x354] sm:$0xf0] }
 0x362   : > { %v4306_v30 = vpack.c.bf16 %v4050_v17, %v4050_v17  ;;  %v3022_v43 = vadd.f32 %v3021_v18, %v2372_v1  ;;  %v3662_v25 = vmul.f32 %v7660_v14, %v3340_v20  ;;  %v6286_v20 = vld [vmem:[%s6452_s7 + $0x754] sm:$0xf0]  ;;  %v5819_v1 = vor.u32 %v6289_v53, %v5816_v34 }
 0x363   : > { %4690 = vst.msk [vmem:[%s6589_s29 + $0x354] sm:$0xf] %vm4476_vm3, %v4433_v28  ;;  %v5798_v28 = vld [vmem:[%s6452_s7 + $0x750] sm:$0xf]  ;;  %v5287_v6 = vor.u32 %v6158_v46, %v5286_v39 }
 0x364   : > { %4563 = vst.msk [vmem:[%s6589_s29 + $0x158] sm:$0xf] %vm4476_vm3, %v4306_v30  ;;  %v3535_v11 = vmul.f32 %v7660_v14, %v3022_v43  ;;  %v3922_v50 = vadd.f32 %v7669_v59, %v3662_v25  ;;  %v5279_v14 = vor.u32 %v6156_v60, %v5278_v33 }
 0x365   : > { %v8010_v18 = vpop.f32.mrf.mxu3 }
 0x366   : > { %v3795_v19 = vadd.f32 %v7669_v59, %v3535_v11  ;;  %v4178_v41 = vmax.f32 %v3922_v50, 0.0  ;;  %v5799_v11 = vor.u32 %v6286_v20, %v5798_v28 }
 0x367   : > { %v8013_v38 = vpop.f32.mrf.mxu1  ;;  %v2692_v4 = vpop.f32.mrf.mxu2 }
 0x368   : > { %v4051_v44 = vmax.f32 %v3795_v19, 0.0  ;;  %v4434_v26 = vpack.c.bf16 %v4178_v41, %v4178_v41  ;;  %v3342_v47 = vadd.f32 %v7946_v8, %v2692_v4 }
 0x369   : > { %v2375_v48 = vpop.f32.mrf.mxu0 }
 0x36a   : > { %5973 = vmatmul.msk.bf16.gmra.mxu1 %vm1754_vm2, %v5291_v15  ;;  %v4307_v31 = vpack.c.bf16 %v4051_v44, %v4051_v44  ;;  %v3025_v59 = vadd.f32 %v3024_v57, %v2375_v48  ;;  %6038 = vmatmul.msk.bf16.gmra.mxu3 %vm1754_vm2, %v5811_v5  ;;  %4691 = vst.msk [vmem:[%s6589_s29 + $0x358] sm:$0xf] %vm4476_vm3, %v4434_v26  ;;  %v6161_v48 = vld [vmem:[%s6452_s7 + $0x374] sm:$0xf] }
 0x36b   : > { %v3663_v42 = vmul.f32 %v8025_v51, %v3342_v47 }
 0x36c   : > { %4564 = vst.msk [vmem:[%s6589_s29 + $0x15c] sm:$0xf] %vm4476_vm3, %v4307_v31  ;;  %v3536_v8 = vmul.f32 %v8025_v51, %v3025_v59  ;;  %2414 = vmatmul.bf16.gmra.mxu0 %v5279_v14  ;;  %2734 = vmatmul.bf16.gmra.mxu2 %v5791_v10  ;;  %v5304_v10 = vld [vmem:[%s6452_s7 + $0x378] sm:$0xf0]  ;;  %v6291_v59 = vld [vmem:[%s6452_s7 + $0x784] sm:$0xf] }
 0x36d   : > { %v3923_v36 = vadd.f32 %v8034_v52, %v3663_v42  ;;  %v8037_v0 = vpop.f32.mrf.mxu3  ;;  %v5824_v42 = vld [vmem:[%s6452_s7 + $0x788] sm:$0xf0] }
 0x36e   : > { %v3796_v57 = vadd.f32 %v8034_v52, %v3536_v8 }
 0x36f   : > { %v3031_v40 = vpop.f32.mrf.mxu1  ;;  %v4179_v12 = vmax.f32 %v3923_v36, 0.0  ;;  %v2695_v55 = vpop.f32.mrf.mxu2 }
 0x370   : > { %v4052_v23 = vmax.f32 %v3796_v57, 0.0  ;;  %v3345_v62 = vadd.f32 %v7961_v58, %v2695_v55  ;;  %v5299_v58 = vor.u32 %v6159_v3, %v5296_v32  ;;  %v5294_v57 = vld [vmem:[%s6452_s7 + $0x360] sm:$0xf] }
 0x371   : > { %v4435_v45 = vpack.c.bf16 %v4179_v12, %v4179_v12  ;;  %v2377_v27 = vpop.f32.mrf.mxu0  ;;  %v6160_v12 = vld [vmem:[%s6452_s7 + $0x364] sm:$0xf0] }
 0x372   : > { %v4308_v2 = vpack.c.bf16 %v4052_v23, %v4052_v23  ;;  %v3027_v49 = vadd.f32 %v3026_v22, %v2377_v27  ;;  %v3664_v7 = vmul.f32 %v8025_v51, %v3345_v62  ;;  %v6288_v62 = vld [vmem:[%s6452_s7 + $0x764] sm:$0xf0]  ;;  %v5827_v27 = vor.u32 %v6291_v59, %v5824_v42 }
 0x373   : > { %4692 = vst.msk [vmem:[%s6589_s29 + $0x35c] sm:$0xf] %vm4476_vm3, %v4435_v45  ;;  %v5806_v45 = vld [vmem:[%s6452_s7 + $0x760] sm:$0xf]  ;;  %v5295_v32 = vor.u32 %v6160_v12, %v5294_v57 }
 0x374   : > { %4565 = vst.msk [vmem:[%s6589_s29 + $0x160] sm:$0xf] %vm4476_vm3, %v4308_v2  ;;  %v3537_v56 = vmul.f32 %v8025_v51, %v3027_v49  ;;  %v3924_v13 = vadd.f32 %v8034_v52, %v3664_v7 }
 0x375   : > { %v8054_v22 = vpop.f32.mrf.mxu3 }
 0x376   : > { %v3797_v17 = vadd.f32 %v8034_v52, %v3537_v56  ;;  %v4180_v30 = vmax.f32 %v3924_v13, 0.0  ;;  %v5807_v56 = vor.u32 %v6288_v62, %v5806_v45 }
 0x377   : > { %v3034_v61 = vpop.f32.mrf.mxu1  ;;  %v2697_v24 = vpop.f32.mrf.mxu2 }
 0x378   : > { %v4053_v43 = vmax.f32 %v3797_v17, 0.0  ;;  %v4436_v25 = vpack.c.bf16 %v4180_v30, %v4180_v30  ;;  %v3347_v9 = vadd.f32 %v7978_v37, %v2697_v24 }
 0x379   : > { %v2380_v29 = vpop.f32.mrf.mxu0 }
 0x37a   : > { %5974 = vmatmul.msk.bf16.gmra.mxu1 %vm1754_vm2, %v5299_v58  ;;  %v4309_v50 = vpack.c.bf16 %v4053_v43, %v4053_v43  ;;  %v3030_v15 = vadd.f32 %v8013_v38, %v2380_v29  ;;  %6039 = vmatmul.msk.bf16.gmra.mxu3 %vm1754_vm2, %v5819_v1  ;;  %4693 = vst.msk [vmem:[%s6589_s29 + $0x360] sm:$0xf] %vm4476_vm3, %v4436_v25  ;;  %v6163_v29 = vld [vmem:[%s6452_s7 + $0x384] sm:$0xf] }
 0x37b   : > { %v3665_v33 = vmul.f32 %v8025_v51, %v3347_v9 }
 0x37c   : > { %4566 = vst.msk [vmem:[%s6589_s29 + $0x164] sm:$0xf] %vm4476_vm3, %v4309_v50  ;;  %v3538_v60 = vmul.f32 %v8025_v51, %v3030_v15  ;;  %2419 = vmatmul.bf16.gmra.mxu0 %v5287_v6  ;;  %2739 = vmatmul.bf16.gmra.mxu2 %v5799_v11  ;;  %v5312_v11 = vld [vmem:[%s6452_s7 + $0x388] sm:$0xf0]  ;;  %v6293_v15 = vld [vmem:[%s6452_s7 + $0x794] sm:$0xf] }
 0x37d   : > { %v3925_v37 = vadd.f32 %v8034_v52, %v3665_v33  ;;  %v8070_v19 = vpop.f32.mrf.mxu3  ;;  %v5832_v33 = vld [vmem:[%s6452_s7 + $0x798] sm:$0xf0] }
 0x37e   : > { %v3798_v38 = vadd.f32 %v8034_v52, %v3538_v60 }
 0x37f   : > { %v3036_v21 = vpop.f32.mrf.mxu1  ;;  %v4181_v63 = vmax.f32 %v3925_v37, 0.0  ;;  %v2700_v41 = vpop.f32.mrf.mxu2 }
 0x380   : > { %v4054_v5 = vmax.f32 %v3798_v38, 0.0  ;;  %v3350_v4 = vadd.f32 %v7993_v54, %v2700_v41  ;;  %v5307_v54 = vor.u32 %v6161_v48, %v5304_v10  ;;  %v5302_v38 = vld [vmem:[%s6452_s7 + $0x370] sm:$0xf] }
 0x381   : > { %v4437_v44 = vpack.c.bf16 %v4181_v63, %v4181_v63  ;;  %v2382_v14 = vpop.f32.mrf.mxu0  ;;  %v6162_v63 = vld [vmem:[%s6452_s7 + $0x374] sm:$0xf0] }
 0x382   : > { %v4310_v26 = vpack.c.bf16 %v4054_v5, %v4054_v5  ;;  %v3032_v47 = vadd.f32 %v3031_v40, %v2382_v14  ;;  %v3666_v31 = vmul.f32 %v8025_v51, %v3350_v4  ;;  %v6290_v4 = vld [vmem:[%s6452_s7 + $0x774] sm:$0xf0]  ;;  %v5835_v14 = vor.u32 %v6293_v15, %v5832_v33 }
 0x383   : > { %4694 = vst.msk [vmem:[%s6589_s29 + $0x364] sm:$0xf] %vm4476_vm3, %v4437_v44  ;;  %v5814_v44 = vld [vmem:[%s6452_s7 + $0x770] sm:$0xf]  ;;  %v5303_v10 = vor.u32 %v6162_v63, %v5302_v38 }
 0x384   : > { %4567 = vst.msk [vmem:[%s6589_s29 + $0x168] sm:$0xf] %vm4476_vm3, %v4310_v26  ;;  %v3539_v8 = vmul.f32 %v8025_v51, %v3032_v47  ;;  %v3926_v36 = vadd.f32 %v8034_v52, %v3666_v31 }
 0x385   : > { %v8087_v40 = vpop.f32.mrf.mxu3 }
 0x386   : > { %v3799_v23 = vadd.f32 %v8034_v52, %v3539_v8  ;;  %v4182_v2 = vmax.f32 %v3926_v36, 0.0  ;;  %v5815_v8 = vor.u32 %v6290_v4, %v5814_v44 }
 0x387   : > { %v3039_v55 = vpop.f32.mrf.mxu1  ;;  %v2702_v3 = vpop.f32.mrf.mxu2 }
 0x388   : > { %v4055_v49 = vmax.f32 %v3799_v23, 0.0  ;;  %v4438_v7 = vpack.c.bf16 %v4182_v2, %v4182_v2  ;;  %v3352_v53 = vadd.f32 %v8010_v18, %v2702_v3 }
 0x389   : > { %v2385_v34 = vpop.f32.mrf.mxu0 }
 0x38a   : > { %5975 = vmatmul.msk.bf16.gmra.mxu1 %vm1754_vm2, %v5307_v54  ;;  %v4311_v13 = vpack.c.bf16 %v4055_v49, %v4055_v49  ;;  %v3035_v58 = vadd.f32 %v3034_v61, %v2385_v34  ;;  %6040 = vmatmul.msk.bf16.gmra.mxu3 %vm1754_vm2, %v5827_v27  ;;  %4695 = vst.msk [vmem:[%s6589_s29 + $0x368] sm:$0xf] %vm4476_vm3, %v4438_v7  ;;  %v6165_v34 = vld [vmem:[%s6452_s7 + $0x394] sm:$0xf] }
 0x38b   : > { %v3667_v39 = vmul.f32 %v8025_v51, %v3352_v53 }
 0x38c   : > { %4568 = vst.msk [vmem:[%s6589_s29 + $0x16c] sm:$0xf] %vm4476_vm3, %v4311_v13  ;;  %v3540_v46 = vmul.f32 %v8025_v51, %v3035_v58  ;;  %2424 = vmatmul.bf16.gmra.mxu0 %v5295_v32  ;;  %2744 = vmatmul.bf16.gmra.mxu2 %v5807_v56  ;;  %v5320_v56 = vld [vmem:[%s6452_s7 + $0x398] sm:$0xf0]  ;;  %v6295_v58 = vld [vmem:[%s6452_s7 + $0x7a4] sm:$0xf] }
 0x38d   : > { %v3927_v18 = vadd.f32 %v8034_v52, %v3667_v39  ;;  %v8102_v17 = vpop.f32.mrf.mxu3  ;;  %v5840_v39 = vld [vmem:[%s6452_s7 + $0x7a8] sm:$0xf0] }
 0x38e   : > { %v3800_v61 = vadd.f32 %v8034_v52, %v3540_v46 }
 0x38f   : > { %v3041_v28 = vpop.f32.mrf.mxu1  ;;  %v4183_v20 = vmax.f32 %v3927_v18, 0.0  ;;  %v2705_v30 = vpop.f32.mrf.mxu2 }
 0x390   : > { %v4056_v1 = vmax.f32 %v3800_v61, 0.0  ;;  %v3355_v24 = vadd.f32 %v8037_v0, %v2705_v30  ;;  %v5315_v0 = vor.u32 %v6163_v29, %v5312_v11  ;;  %v5310_v61 = vld [vmem:[%s6452_s7 + $0x380] sm:$0xf] }
 0x391   : > { %v4439_v43 = vpack.c.bf16 %v4183_v20, %v4183_v20  ;;  %v2387_v6 = vpop.f32.mrf.mxu0  ;;  %v6164_v20 = vld [vmem:[%s6452_s7 + $0x384] sm:$0xf0] }
 0x392   : > { %v4312_v25 = vpack.c.bf16 %v4056_v1, %v4056_v1  ;;  %v3037_v9 = vadd.f32 %v3036_v21, %v2387_v6  ;;  %v3668_v50 = vmul.f32 %v8025_v51, %v3355_v24  ;;  %v6292_v24 = vld [vmem:[%s6452_s7 + $0x784] sm:$0xf0]  ;;  %v5843_v6 = vor.u32 %v6295_v58, %v5840_v39 }
 0x393   : > { %4696 = vst.msk [vmem:[%s6589_s29 + $0x36c] sm:$0xf] %vm4476_vm3, %v4439_v43  ;;  %v5822_v43 = vld [vmem:[%s6452_s7 + $0x780] sm:$0xf]  ;;  %v5311_v11 = vor.u32 %v6164_v20, %v5310_v61 }
 0x394   : > { %4569 = vst.msk [vmem:[%s6589_s29 + $0x170] sm:$0xf] %vm4476_vm3, %v4312_v25  ;;  %v3541_v60 = vmul.f32 %v8025_v51, %v3037_v9  ;;  %v3928_v37 = vadd.f32 %v8034_v52, %v3668_v50 }
 0x395   : > { %v8119_v21 = vpop.f32.mrf.mxu3 }
 0x396   : > { %v3801_v5 = vadd.f32 %v8034_v52, %v3541_v60  ;;  %v4184_v26 = vmax.f32 %v3928_v37, 0.0  ;;  %v5823_v60 = vor.u32 %v6292_v24, %v5822_v43 }
 0x397   : > { %v3044_v41 = vpop.f32.mrf.mxu1  ;;  %v2707_v48 = vpop.f32.mrf.mxu2 }
 0x398   : > { %v4057_v47 = vmax.f32 %v3801_v5, 0.0  ;;  %v4440_v31 = vpack.c.bf16 %v4184_v26, %v4184_v26  ;;  %v3357_v59 = vadd.f32 %v8054_v22, %v2707_v48 }
 0x399   : > { %v2390_v42 = vpop.f32.mrf.mxu0 }
 0x39a   : > { %5976 = vmatmul.msk.bf16.gmra.mxu1 %vm1754_vm2, %v5315_v0  ;;  %v4313_v36 = vpack.c.bf16 %v4057_v47, %v4057_v47  ;;  %v3040_v54 = vadd.f32 %v3039_v55, %v2390_v42  ;;  %6041 = vmatmul.msk.bf16.gmra.mxu3 %vm1754_vm2, %v5835_v14  ;;  %4697 = vst.msk [vmem:[%s6589_s29 + $0x370] sm:$0xf] %vm4476_vm3, %v4440_v31  ;;  %v6167_v42 = vld [vmem:[%s6452_s7 + $0x3a4] sm:$0xf] }
 0x39b   : > { %v3669_v57 = vmul.f32 %v8025_v51, %v3357_v59 }
 0x39c   : > { %4570 = vst.msk [vmem:[%s6589_s29 + $0x174] sm:$0xf] %vm4476_vm3, %v4313_v36  ;;  %v3542_v12 = vmul.f32 %v8025_v51, %v3040_v54  ;;  %2429 = vmatmul.bf16.gmra.mxu0 %v5303_v10  ;;  %2749 = vmatmul.bf16.gmra.mxu2 %v5815_v8  ;;  %v5328_v8 = vld [vmem:[%s6452_s7 + $0x3a8] sm:$0xf0]  ;;  %v6297_v54 = vld [vmem:[%s6452_s7 + $0x7b4] sm:$0xf] }
 0x39d   : > { %v3929_v22 = vadd.f32 %v8034_v52, %v3669_v57  ;;  %v8134_v23 = vpop.f32.mrf.mxu3  ;;  %v5848_v57 = vld [vmem:[%s6452_s7 + $0x7b8] sm:$0xf0] }
 0x39e   : > { %v3802_v55 = vadd.f32 %v8034_v52, %v3542_v12 }
 0x39f   : > { %v3046_v45 = vpop.f32.mrf.mxu1  ;;  %v4185_v62 = vmax.f32 %v3929_v22, 0.0  ;;  %v2710_v2 = vpop.f32.mrf.mxu2 }
 0x3a0   : > { %v4058_v27 = vmax.f32 %v3802_v55, 0.0  ;;  %v3360_v3 = vadd.f32 %v8070_v19, %v2710_v2  ;;  %v5323_v19 = vor.u32 %v6165_v34, %v5320_v56  ;;  %v5318_v55 = vld [vmem:[%s6452_s7 + $0x390] sm:$0xf] }
 0x3a1   : > { %v4441_v49 = vpack.c.bf16 %v4185_v62, %v4185_v62  ;;  %v2392_v32 = vpop.f32.mrf.mxu0  ;;  %v6166_v62 = vld [vmem:[%s6452_s7 + $0x394] sm:$0xf0] }
 0x3a2   : > { %v4314_v7 = vpack.c.bf16 %v4058_v27, %v4058_v27  ;;  %v3042_v53 = vadd.f32 %v3041_v28, %v2392_v32  ;;  %v3670_v13 = vmul.f32 %v8025_v51, %v3360_v3  ;;  %v6294_v3 = vld [vmem:[%s6452_s7 + $0x794] sm:$0xf0]  ;;  %v5851_v32 = vor.u32 %v6297_v54, %v5848_v57 }
 0x3a3   : > { %4698 = vst.msk [vmem:[%s6589_s29 + $0x374] sm:$0xf] %vm4476_vm3, %v4441_v49  ;;  %v5830_v49 = vld [vmem:[%s6452_s7 + $0x790] sm:$0xf]  ;;  %v5319_v56 = vor.u32 %v6166_v62, %v5318_v55 }
 0x3a4   : > { %4571 = vst.msk [vmem:[%s6589_s29 + $0x178] sm:$0xf] %vm4476_vm3, %v4314_v7  ;;  %v3543_v46 = vmul.f32 %v8025_v51, %v3042_v53  ;;  %v3930_v18 = vadd.f32 %v8034_v52, %v3670_v13 }
 0x3a5   : > { %v8151_v28 = vpop.f32.mrf.mxu3 }
 0x3a6   : > { %v3803_v1 = vadd.f32 %v8034_v52, %v3543_v46  ;;  %v4186_v25 = vmax.f32 %v3930_v18, 0.0  ;;  %v5831_v46 = vor.u32 %v6294_v3, %v5830_v49 }
 0x3a7   : > { %v3049_v30 = vpop.f32.mrf.mxu1  ;;  %v2712_v29 = vpop.f32.mrf.mxu2 }
 0x3a8   : > { %v4059_v9 = vmax.f32 %v3803_v1, 0.0  ;;  %v4442_v50 = vpack.c.bf16 %v4186_v25, %v4186_v25  ;;  %v3362_v15 = vadd.f32 %v8087_v40, %v2712_v29 }
 0x3a9   : > { %v2395_v33 = vpop.f32.mrf.mxu0 }
 0x3aa   : > { %5977 = vmatmul.msk.bf16.gmra.mxu1 %vm1754_vm2, %v5323_v19  ;;  %v4315_v37 = vpack.c.bf16 %v4059_v9, %v4059_v9  ;;  %v3045_v0 = vadd.f32 %v3044_v41, %v2395_v33  ;;  %6042 = vmatmul.msk.bf16.gmra.mxu3 %vm1754_vm2, %v5843_v6  ;;  %4699 = vst.msk [vmem:[%s6589_s29 + $0x378] sm:$0xf] %vm4476_vm3, %v4442_v50  ;;  %v6169_v33 = vld [vmem:[%s6452_s7 + $0x3b4] sm:$0xf] }
 0x3ab   : > { %v3671_v38 = vmul.f32 %v8025_v51, %v3362_v15 }
 0x3ac   : > { %4572 = vst.msk [vmem:[%s6589_s29 + $0x17c] sm:$0xf] %vm4476_vm3, %v4315_v37  ;;  %v3544_v63 = vmul.f32 %v8025_v51, %v3045_v0  ;;  %2434 = vmatmul.bf16.gmra.mxu0 %v5311_v11  ;;  %2754 = vmatmul.bf16.gmra.mxu2 %v5823_v60  ;;  %v5336_v60 = vld [vmem:[%s6452_s7 + $0x3b8] sm:$0xf0]  ;;  %v6299_v0 = vld [vmem:[%s6452_s7 + $0x7c4] sm:$0xf] }
 0x3ad   : > { %v3931_v40 = vadd.f32 %v8034_v52, %v3671_v38  ;;  %v8166_v5 = vpop.f32.mrf.mxu3  ;;  %v5856_v38 = vld [vmem:[%s6452_s7 + $0x7c8] sm:$0xf0] }
 0x3ae   : > { %v3804_v41 = vadd.f32 %v8034_v52, %v3544_v63 }
 0x3af   : > { %v3051_v44 = vpop.f32.mrf.mxu1  ;;  %v4187_v4 = vmax.f32 %v3931_v40, 0.0  ;;  %v2715_v26 = vpop.f32.mrf.mxu2 }
 0x3b0   : > { %v4060_v14 = vmax.f32 %v3804_v41, 0.0  ;;  %v3365_v48 = vadd.f32 %v8102_v17, %v2715_v26  ;;  %v5331_v17 = vor.u32 %v6167_v42, %v5328_v8  ;;  %v5326_v41 = vld [vmem:[%s6452_s7 + $0x3a0] sm:$0xf] }
 0x3b1   : > { %v4443_v47 = vpack.c.bf16 %v4187_v4, %v4187_v4  ;;  %v2397_v10 = vpop.f32.mrf.mxu0  ;;  %v6168_v4 = vld [vmem:[%s6452_s7 + $0x3a4] sm:$0xf0] }
 0x3b2   : > { %v4316_v31 = vpack.c.bf16 %v4060_v14, %v4060_v14  ;;  %v3047_v59 = vadd.f32 %v3046_v45, %v2397_v10  ;;  %v3672_v36 = vmul.f32 %v8025_v51, %v3365_v48  ;;  %v6296_v48 = vld [vmem:[%s6452_s7 + $0x7a4] sm:$0xf0]  ;;  %v5859_v10 = vor.u32 %v6299_v0, %v5856_v38 }
 0x3b3   : > { %4700 = vst.msk [vmem:[%s6589_s29 + $0x37c] sm:$0xf] %vm4476_vm3, %v4443_v47  ;;  %v5838_v47 = vld [vmem:[%s6452_s7 + $0x7a0] sm:$0xf]  ;;  %v5327_v8 = vor.u32 %v6168_v4, %v5326_v41 }
 0x3b4   : > { %4573 = vst.msk [vmem:[%s6589_s29 + $0x180] sm:$0xf] %vm4476_vm3, %v4316_v31  ;;  %v3545_v12 = vmul.f32 %v8025_v51, %v3047_v59  ;;  %v3932_v22 = vadd.f32 %v8034_v52, %v3672_v36 }
 0x3b5   : > { %v8183_v45 = vpop.f32.mrf.mxu3 }
 0x3b6   : > { %v3805_v27 = vadd.f32 %v8034_v52, %v3545_v12  ;;  %v4188_v7 = vmax.f32 %v3932_v22, 0.0  ;;  %v5839_v12 = vor.u32 %v6296_v48, %v5838_v47 }
 0x3b7   : > { %v3054_v2 = vpop.f32.mrf.mxu1  ;;  %v2717_v34 = vpop.f32.mrf.mxu2 }
 0x3b8   : > { %v4061_v53 = vmax.f32 %v3805_v27, 0.0  ;;  %v4444_v13 = vpack.c.bf16 %v4188_v7, %v4188_v7  ;;  %v3367_v58 = vadd.f32 %v8119_v21, %v2717_v34 }
 0x3b9   : > { %v2400_v39 = vpop.f32.mrf.mxu0 }
 0x3ba   : > { %5978 = vmatmul.msk.bf16.gmra.mxu1 %vm1754_vm2, %v5331_v17  ;;  %v4317_v18 = vpack.c.bf16 %v4061_v53, %v4061_v53  ;;  %v3050_v19 = vadd.f32 %v3049_v30, %v2400_v39  ;;  %6043 = vmatmul.msk.bf16.gmra.mxu3 %vm1754_vm2, %v5851_v32  ;;  %4701 = vst.msk [vmem:[%s6589_s29 + $0x380] sm:$0xf] %vm4476_vm3, %v4444_v13  ;;  %v6171_v39 = vld [vmem:[%s6452_s7 + $0x3c4] sm:$0xf] }
 0x3bb   : > { %v3673_v61 = vmul.f32 %v8025_v51, %v3367_v58 }
 0x3bc   : > { %4574 = vst.msk [vmem:[%s6589_s29 + $0x184] sm:$0xf] %vm4476_vm3, %v4317_v18  ;;  %v3546_v20 = vmul.f32 %v8025_v51, %v3050_v19  ;;  %2439 = vmatmul.bf16.gmra.mxu0 %v5319_v56  ;;  %2759 = vmatmul.bf16.gmra.mxu2 %v5831_v46  ;;  %v5344_v46 = vld [vmem:[%s6452_s7 + $0x3c8] sm:$0xf0]  ;;  %v6301_v19 = vld [vmem:[%s6452_s7 + $0x7d4] sm:$0xf] }
 0x3bd   : > { %v3933_v21 = vadd.f32 %v8034_v52, %v3673_v61  ;;  %v8198_v1 = vpop.f32.mrf.mxu3  ;;  %v5864_v61 = vld [vmem:[%s6452_s7 + $0x7d8] sm:$0xf0] }
 0x3be   : > { %v3806_v30 = vadd.f32 %v8034_v52, %v3546_v20 }
 0x3bf   : > { %v3056_v43 = vpop.f32.mrf.mxu1  ;;  %v4189_v24 = vmax.f32 %v3933_v21, 0.0  ;;  %v2720_v25 = vpop.f32.mrf.mxu2 }
 0x3c0   : > { %v4062_v6 = vmax.f32 %v3806_v30, 0.0  ;;  %v3370_v29 = vadd.f32 %v8134_v23, %v2720_v25  ;;  %v5339_v23 = vor.u32 %v6169_v33, %v5336_v60  ;;  %v5334_v30 = vld [vmem:[%s6452_s7 + $0x3b0] sm:$0xf] }
 0x3c1   : > { %v4445_v9 = vpack.c.bf16 %v4189_v24, %v4189_v24  ;;  %v2402_v11 = vpop.f32.mrf.mxu0  ;;  %v6170_v24 = vld [vmem:[%s6452_s7 + $0x3b4] sm:$0xf0] }
 0x3c2   : > { %v4318_v50 = vpack.c.bf16 %v4062_v6, %v4062_v6  ;;  %v3052_v15 = vadd.f32 %v3051_v44, %v2402_v11  ;;  %v3674_v37 = vmul.f32 %v8025_v51, %v3370_v29  ;;  %v6298_v29 = vld [vmem:[%s6452_s7 + $0x7b4] sm:$0xf0]  ;;  %v5867_v11 = vor.u32 %v6301_v19, %v5864_v61 }
 0x3c3   : > { %4702 = vst.msk [vmem:[%s6589_s29 + $0x384] sm:$0xf] %vm4476_vm3, %v4445_v9  ;;  %v5846_v9 = vld [vmem:[%s6452_s7 + $0x7b0] sm:$0xf]  ;;  %v5335_v60 = vor.u32 %v6170_v24, %v5334_v30 }
 0x3c4   : > { %4575 = vst.msk [vmem:[%s6589_s29 + $0x188] sm:$0xf] %vm4476_vm3, %v4318_v50  ;;  %v3547_v63 = vmul.f32 %v8025_v51, %v3052_v15  ;;  %v3934_v40 = vadd.f32 %v8034_v52, %v3674_v37 }
 0x3c5   : > { %v8215_v44 = vpop.f32.mrf.mxu3 }
 0x3c6   : > { %v3807_v14 = vadd.f32 %v8034_v52, %v3547_v63  ;;  %v4190_v31 = vmax.f32 %v3934_v40, 0.0  ;;  %v5847_v63 = vor.u32 %v6298_v29, %v5846_v9 }
 0x3c7   : > { %v3059_v26 = vpop.f32.mrf.mxu1  ;;  %v2722_v42 = vpop.f32.mrf.mxu2 }
 0x3c8   : > { %v4063_v59 = vmax.f32 %v3807_v14, 0.0  ;;  %v4446_v36 = vpack.c.bf16 %v4190_v31, %v4190_v31  ;;  %v3372_v54 = vadd.f32 %v8151_v28, %v2722_v42 }
 0x3c9   : > { %v2405_v57 = vpop.f32.mrf.mxu0 }
 0x3ca   : > { %5979 = vmatmul.msk.bf16.gmra.mxu1 %vm1754_vm2, %v5339_v23  ;;  %v4319_v22 = vpack.c.bf16 %v4063_v59, %v4063_v59  ;;  %v3055_v17 = vadd.f32 %v3054_v2, %v2405_v57  ;;  %6044 = vmatmul.msk.bf16.gmra.mxu3 %vm1754_vm2, %v5859_v10  ;;  %4703 = vst.msk [vmem:[%s6589_s29 + $0x388] sm:$0xf] %vm4476_vm3, %v4446_v36  ;;  %v6173_v57 = vld [vmem:[%s6452_s7 + $0x3d4] sm:$0xf] }
 0x3cb   : > { %v3675_v55 = vmul.f32 %v8025_v51, %v3372_v54 }
 0x3cc   : > { %4576 = vst.msk [vmem:[%s6589_s29 + $0x18c] sm:$0xf] %vm4476_vm3, %v4319_v22  ;;  %v3548_v62 = vmul.f32 %v8025_v51, %v3055_v17  ;;  %2444 = vmatmul.bf16.gmra.mxu0 %v5327_v8  ;;  %2764 = vmatmul.bf16.gmra.mxu2 %v5839_v12  ;;  %v5352_v12 = vld [vmem:[%s6452_s7 + $0x3d8] sm:$0xf0]  ;;  %v6303_v17 = vld [vmem:[%s6452_s7 + $0x7e4] sm:$0xf] }
 0x3cd   : > { %v3935_v28 = vadd.f32 %v8034_v52, %v3675_v55  ;;  %v8230_v27 = vpop.f32.mrf.mxu3  ;;  %v5872_v55 = vld [vmem:[%s6452_s7 + $0x7e8] sm:$0xf0] }
 0x3ce   : > { %v3808_v2 = vadd.f32 %v8034_v52, %v3548_v62 }
 0x3cf   : > { %v3061_v49 = vpop.f32.mrf.mxu1  ;;  %v4191_v3 = vmax.f32 %v3935_v28, 0.0  ;;  %v2725_v7 = vpop.f32.mrf.mxu2 }
 0x3d0   : > { %v4064_v32 = vmax.f32 %v3808_v2, 0.0  ;;  %v3375_v34 = vadd.f32 %v8166_v5, %v2725_v7  ;;  %v5347_v5 = vor.u32 %v6171_v39, %v5344_v46  ;;  %v5342_v2 = vld [vmem:[%s6452_s7 + $0x3c0] sm:$0xf] }
 0x3d1   : > { %v4447_v53 = vpack.c.bf16 %v4191_v3, %v4191_v3  ;;  %v2407_v56 = vpop.f32.mrf.mxu0  ;;  %v6172_v3 = vld [vmem:[%s6452_s7 + $0x3c4] sm:$0xf0] }
 0x3d2   : > { %v4320_v13 = vpack.c.bf16 %v4064_v32, %v4064_v32  ;;  %v3057_v58 = vadd.f32 %v3056_v43, %v2407_v56  ;;  %v3676_v18 = vmul.f32 %v8025_v51, %v3375_v34  ;;  %v6300_v34 = vld [vmem:[%s6452_s7 + $0x7c4] sm:$0xf0]  ;;  %v5875_v56 = vor.u32 %v6303_v17, %v5872_v55 }
 0x3d3   : > { %4704 = vst.msk [vmem:[%s6589_s29 + $0x38c] sm:$0xf] %vm4476_vm3, %v4447_v53  ;;  %v5854_v53 = vld [vmem:[%s6452_s7 + $0x7c0] sm:$0xf]  ;;  %v5343_v46 = vor.u32 %v6172_v3, %v5342_v2 }
 0x3d4   : > { %4577 = vst.msk [vmem:[%s6589_s29 + $0x190] sm:$0xf] %vm4476_vm3, %v4320_v13  ;;  %v3549_v20 = vmul.f32 %v8025_v51, %v3057_v58  ;;  %v3936_v21 = vadd.f32 %v8034_v52, %v3676_v18 }
 0x3d5   : > { %v8247_v43 = vpop.f32.mrf.mxu3 }
 0x3d6   : > { %v3809_v6 = vadd.f32 %v8034_v52, %v3549_v20  ;;  %v4192_v50 = vmax.f32 %v3936_v21, 0.0  ;;  %v5855_v20 = vor.u32 %v6300_v34, %v5854_v53 }
 0x3d7   : > { %v3064_v25 = vpop.f32.mrf.mxu1  ;;  %v2727_v33 = vpop.f32.mrf.mxu2 }
 0x3d8   : > { %v4065_v15 = vmax.f32 %v3809_v6, 0.0  ;;  %v4448_v37 = vpack.c.bf16 %v4192_v50, %v4192_v50  ;;  %v3377_v0 = vadd.f32 %v8183_v45, %v2727_v33 }
 0x3d9   : > { %v2410_v38 = vpop.f32.mrf.mxu0 }
 0x3da   : > { %5980 = vmatmul.msk.bf16.gmra.mxu1 %vm1754_vm2, %v5347_v5  ;;  %v4321_v40 = vpack.c.bf16 %v4065_v15, %v4065_v15  ;;  %v3060_v23 = vadd.f32 %v3059_v26, %v2410_v38  ;;  %6045 = vmatmul.msk.bf16.gmra.mxu3 %vm1754_vm2, %v5867_v11  ;;  %4705 = vst.msk [vmem:[%s6589_s29 + $0x390] sm:$0xf] %vm4476_vm3, %v4448_v37  ;;  %v6175_v38 = vld [vmem:[%s6452_s7 + $0x3e4] sm:$0xf] }
 0x3db   : > { %v3677_v41 = vmul.f32 %v8025_v51, %v3377_v0 }
 0x3dc   : > { %4578 = vst.msk [vmem:[%s6589_s29 + $0x194] sm:$0xf] %vm4476_vm3, %v4321_v40  ;;  %v3550_v4 = vmul.f32 %v8025_v51, %v3060_v23  ;;  %2449 = vmatmul.bf16.gmra.mxu0 %v5335_v60  ;;  %2769 = vmatmul.bf16.gmra.mxu2 %v5847_v63  ;;  %v5360_v63 = vld [vmem:[%s6452_s7 + $0x3e8] sm:$0xf0]  ;;  %v6305_v23 = vld [vmem:[%s6452_s7 + $0x7f4] sm:$0xf] }
 0x3dd   : > { %v3937_v45 = vadd.f32 %v8034_v52, %v3677_v41  ;;  %v8262_v14 = vpop.f32.mrf.mxu3  ;;  %v5880_v41 = vld [vmem:[%s6452_s7 + $0x7f8] sm:$0xf0] }
 0x3de   : > { %v3810_v26 = vadd.f32 %v8034_v52, %v3550_v4 }
 0x3df   : > { %v3066_v47 = vpop.f32.mrf.mxu1  ;;  %v4193_v48 = vmax.f32 %v3937_v45, 0.0  ;;  %v2730_v31 = vpop.f32.mrf.mxu2 }
 0x3e0   : > { %v4066_v10 = vmax.f32 %v3810_v26, 0.0  ;;  %v3380_v42 = vadd.f32 %v8198_v1, %v2730_v31  ;;  %v5355_v1 = vor.u32 %v6173_v57, %v5352_v12  ;;  %v5350_v26 = vld [vmem:[%s6452_s7 + $0x3d0] sm:$0xf] }
 0x3e1   : > { %v4449_v59 = vpack.c.bf16 %v4193_v48, %v4193_v48  ;;  %v2412_v8 = vpop.f32.mrf.mxu0  ;;  %v6174_v48 = vld [vmem:[%s6452_s7 + $0x3d4] sm:$0xf0] }
 0x3e2   : > { %v4322_v36 = vpack.c.bf16 %v4066_v10, %v4066_v10  ;;  %v3062_v54 = vadd.f32 %v3061_v49, %v2412_v8  ;;  %v3678_v22 = vmul.f32 %v8025_v51, %v3380_v42  ;;  %v6302_v42 = vld [vmem:[%s6452_s7 + $0x7d4] sm:$0xf0]  ;;  %v5883_v8 = vor.u32 %v6305_v23, %v5880_v41 }
 0x3e3   : > { %4706 = vst.msk [vmem:[%s6589_s29 + $0x394] sm:$0xf] %vm4476_vm3, %v4449_v59  ;;  %v5862_v59 = vld [vmem:[%s6452_s7 + $0x7d0] sm:$0xf]  ;;  %v5351_v12 = vor.u32 %v6174_v48, %v5350_v26 }
 0x3e4   : > { %4579 = vst.msk [vmem:[%s6589_s29 + $0x198] sm:$0xf] %vm4476_vm3, %v4322_v36  ;;  %v3551_v62 = vmul.f32 %v8025_v51, %v3062_v54  ;;  %v3938_v28 = vadd.f32 %v8034_v52, %v3678_v22 }
 0x3e5   : > { %v8279_v49 = vpop.f32.mrf.mxu3 }
 0x3e6   : > { %v3811_v32 = vadd.f32 %v8034_v52, %v3551_v62  ;;  %v4194_v13 = vmax.f32 %v3938_v28, 0.0  ;;  %v5863_v62 = vor.u32 %v6302_v42, %v5862_v59 }
 0x3e7   : > { %v3069_v7 = vpop.f32.mrf.mxu1  ;;  %v2732_v39 = vpop.f32.mrf.mxu2 }
 0x3e8   : > { %v4067_v58 = vmax.f32 %v3811_v32, 0.0  ;;  %v4450_v18 = vpack.c.bf16 %v4194_v13, %v4194_v13  ;;  %v3382_v19 = vadd.f32 %v8215_v44, %v2732_v39 }
 0x3e9   : > { %v2415_v61 = vpop.f32.mrf.mxu0 }
 0x3ea   : > { %5981 = vmatmul.msk.bf16.gmra.mxu1 %vm1754_vm2, %v5355_v1  ;;  %v4323_v21 = vpack.c.bf16 %v4067_v58, %v4067_v58  ;;  %v3065_v5 = vadd.f32 %v3064_v25, %v2415_v61  ;;  %6046 = vmatmul.msk.bf16.gmra.mxu3 %vm1754_vm2, %v5875_v56  ;;  %4707 = vst.msk [vmem:[%s6589_s29 + $0x398] sm:$0xf] %vm4476_vm3, %v4450_v18  ;;  %v6177_v61 = vld [vmem:[%s6452_s7 + $0x3f4] sm:$0xf] }
 0x3eb   : > { %v3679_v30 = vmul.f32 %v8025_v51, %v3382_v19 }
 0x3ec   : > { %4580 = vst.msk [vmem:[%s6589_s29 + $0x19c] sm:$0xf] %vm4476_vm3, %v4323_v21  ;;  %v3552_v24 = vmul.f32 %v8025_v51, %v3065_v5  ;;  %2454 = vmatmul.bf16.gmra.mxu0 %v5343_v46  ;;  %2774 = vmatmul.bf16.gmra.mxu2 %v5855_v20  ;;  %v5368_v20 = vld [vmem:[%s6452_s7 + $0x3f8] sm:$0xf0] }
 0x3ed   : > { %v3939_v44 = vadd.f32 %v8034_v52, %v3679_v30  ;;  %v8294_v6 = vpop.f32.mrf.mxu3 }
 0x3ee   : > { %v3812_v25 = vadd.f32 %v8034_v52, %v3552_v24  ;;  %v5371_v24 = vor.u32 %v6177_v61, %v5368_v20 }
 0x3ef   : > { %v3071_v9 = vpop.f32.mrf.mxu1  ;;  %v4195_v29 = vmax.f32 %v3939_v44, 0.0  ;;  %v2735_v50 = vpop.f32.mrf.mxu2  ;;  %v5358_v44 = vld [vmem:[%s6452_s7 + $0x3e0] sm:$0xf] }
 0x3f0   : > { %v4068_v11 = vmax.f32 %v3812_v25, 0.0  ;;  %v3385_v33 = vadd.f32 %v8230_v27, %v2735_v50  ;;  %v5363_v27 = vor.u32 %v6175_v38, %v5360_v63 }
 0x3f1   : > { %v4451_v15 = vpack.c.bf16 %v4195_v29, %v4195_v29  ;;  %v2417_v60 = vpop.f32.mrf.mxu0 }
 0x3f2   : > { %v4324_v37 = vpack.c.bf16 %v4068_v11, %v4068_v11  ;;  %v3067_v0 = vadd.f32 %v3066_v47, %v2417_v60  ;;  %v3680_v40 = vmul.f32 %v8025_v51, %v3385_v33  ;;  %v6304_v11 = vld [vmem:[%s6452_s7 + $0x7e4] sm:$0xf0] }
 0x3f3   : > { %4708 = vst.msk [vmem:[%s6589_s29 + $0x39c] sm:$0xf] %vm4476_vm3, %v4451_v15 }
 0x3f4   : > { %4581 = vst.msk [vmem:[%s6589_s29 + $0x1a0] sm:$0xf] %vm4476_vm3, %v4324_v37  ;;  %v3553_v4 = vmul.f32 %v8025_v51, %v3067_v0  ;;  %v3940_v45 = vadd.f32 %v8034_v52, %v3680_v40 }
 0x3f5   : > { %v8311_v47 = vpop.f32.mrf.mxu3 }
 0x3f6   : > { %v3813_v10 = vadd.f32 %v8034_v52, %v3553_v4  ;;  %v4196_v36 = vmax.f32 %v3940_v45, 0.0 }
 0x3f7   : > { %v3074_v31 = vpop.f32.mrf.mxu1  ;;  %v2737_v57 = vpop.f32.mrf.mxu2 }
 0x3f8   : > { %v4069_v54 = vmax.f32 %v3813_v10, 0.0  ;;  %v4452_v22 = vpack.c.bf16 %v4196_v36, %v4196_v36  ;;  %v3387_v17 = vadd.f32 %v8247_v43, %v2737_v57  ;;  %v6179_v57 = vld [vmem:[%s6452_s7 + $0x404] sm:$0xf] }
 0x3f9   : > { %v2420_v55 = vpop.f32.mrf.mxu0 }
 0x3fa   : > { %5982 = vmatmul.msk.bf16.gmra.mxu1 %vm1754_vm2, %v5363_v27  ;;  %v4325_v28 = vpack.c.bf16 %v4069_v54, %v4069_v54  ;;  %v3070_v1 = vadd.f32 %v3069_v7, %v2420_v55  ;;  %6047 = vmatmul.msk.bf16.gmra.mxu3 %vm1754_vm2, %v5883_v8  ;;  %4709 = vst.msk [vmem:[%s6589_s29 + $0x3a0] sm:$0xf] %vm4476_vm3, %v4452_v22 }
 0x3fb   : > { %v3681_v2 = vmul.f32 %v8025_v51, %v3387_v17 }
 0x3fc   : > { %4582 = vst.msk [vmem:[%s6589_s29 + $0x1a4] sm:$0xf] %vm4476_vm3, %v4325_v28  ;;  %v3554_v3 = vmul.f32 %v8025_v51, %v3070_v1  ;;  %2459 = vmatmul.bf16.gmra.mxu0 %v5351_v12  ;;  %2779 = vmatmul.bf16.gmra.mxu2 %v5863_v62  ;;  %v5376_v12 = vld [vmem:[%s6452_s7 + $0x408] sm:$0xf0]  ;;  %v5366_v28 = vld [vmem:[%s6452_s7 + $0x3f0] sm:$0xf] }
 0x3fd   : > { %v3941_v43 = vadd.f32 %v8034_v52, %v3681_v2  ;;  %v8327_v53 = vpop.f32.mrf.mxu3  ;;  %v6178_v1 = vld [vmem:[%s6452_s7 + $0x3f4] sm:$0xf0] }
 0x3fe   : > { %v3814_v32 = vadd.f32 %v8034_v52, %v3554_v3 }
 0x3ff   : > { %v3076_v7 = vpop.f32.mrf.mxu1  ;;  %v4197_v34 = vmax.f32 %v3941_v43, 0.0  ;;  %v2740_v13 = vpop.f32.mrf.mxu2  ;;  %v5878_v43 = vld [vmem:[%s6452_s7 + $0x7f0] sm:$0xf] }
 0x400   : > { %v4070_v56 = vmax.f32 %v3814_v32, 0.0  ;;  %v3390_v39 = vadd.f32 %v8262_v14, %v2740_v13  ;;  %v6176_v14 = vld [vmem:[%s6452_s7 + $0x3e4] sm:$0xf0]  ;;  %v6306_v32 = vld [vmem:[%s6452_s7 + $0x7f4] sm:$0xf0]  ;;  %v5367_v13 = vor.u32 %v6178_v1, %v5366_v28 }
 0x401   : > { %v4453_v58 = vpack.c.bf16 %v4197_v34, %v4197_v34  ;;  %v2422_v46 = vpop.f32.mrf.mxu0  ;;  %v5359_v60 = vor.u32 %v6176_v14, %v5358_v44 }
 0x402   : > { %v4326_v18 = vpack.c.bf16 %v4070_v56, %v4070_v56  ;;  %v3072_v19 = vadd.f32 %v3071_v9, %v2422_v46  ;;  %v3682_v21 = vmul.f32 %v8025_v51, %v3390_v39  ;;  %v5870_v9 = vld [vmem:[%s6452_s7 + $0x7e0] sm:$0xf]  ;;  %v5879_v46 = vor.u32 %v6306_v32, %v5878_v43 }
 0x403   : > { %4710 = vst.msk [vmem:[%s6589_s29 + $0x3a4] sm:$0xf] %vm4476_vm3, %v4453_v58  ;;  %v5871_v40 = vor.u32 %v6304_v11, %v5870_v9 }
 0x404   : > { %4583 = vst.msk [vmem:[%s6589_s29 + $0x1a8] sm:$0xf] %vm4476_vm3, %v4326_v18  ;;  %v3555_v5 = vmul.f32 %v8025_v51, %v3072_v19  ;;  %v3942_v30 = vadd.f32 %v8034_v52, %v3682_v21  ;;  %v8389_v21 = vld [vmem:[%s8562_s3] ss:$0 sm:$0xff] }
 0x405   : > { %v8344_v37 = vpop.f32.mrf.mxu3 }
 0x406   : > { %v3815_v25 = vadd.f32 %v8034_v52, %v3555_v5  ;;  %v4198_v50 = vmax.f32 %v3942_v30, 0.0 }
 0x407   : > { %v3079_v29 = vpop.f32.mrf.mxu1  ;;  %v2742_v33 = vpop.f32.mrf.mxu2 }
 0x408   : > { %v4071_v15 = vmax.f32 %v3815_v25, 0.0  ;;  %v4454_v0 = vpack.c.bf16 %v4198_v50, %v4198_v50  ;;  %v3392_v38 = vadd.f32 %v8279_v49, %v2742_v33 }
 0x409   : > { %v2425_v63 = vpop.f32.mrf.mxu0 }
 0x40a   : > { %5983 = vmatmul.msk.bf16.gmra.mxu1 %vm1754_vm2, %v5371_v24  ;;  %v4327_v23 = vpack.c.bf16 %v4071_v15, %v4071_v15  ;;  %v3075_v41 = vadd.f32 %v3074_v31, %v2425_v63  ;;  %4711 = vst.msk [vmem:[%s6589_s29 + $0x3a8] sm:$0xf] %vm4476_vm3, %v4454_v0  ;;  %v3683_v4 = vmul.f32 %v8025_v51, %v3392_v38 }
 0x40c   : > { %4584 = vst.msk [vmem:[%s6589_s29 + $0x1ac] sm:$0xf] %vm4476_vm3, %v4327_v23  ;;  %v3556_v45 = vmul.f32 %v8025_v51, %v3075_v41  ;;  %2464 = vmatmul.bf16.gmra.mxu0 %v5359_v60  ;;  %v3943_v49 = vadd.f32 %v8034_v52, %v3683_v4  ;;  %2784 = vmatmul.bf16.gmra.mxu2 %v5871_v40 }
 0x40d   : > { %v8359_v22 = vpop.f32.mrf.mxu3 }
 0x40e   : > { %v3816_v27 = vadd.f32 %v8034_v52, %v3556_v45  ;;  %v4199_v48 = vmax.f32 %v3943_v49, 0.0 }
 0x40f   : > { %v3081_v26 = vpop.f32.mrf.mxu1  ;;  %v2745_v31 = vpop.f32.mrf.mxu2 }
 0x410   : > { %v4072_v10 = vmax.f32 %v3816_v27, 0.0  ;;  %v4455_v59 = vpack.c.bf16 %v4199_v48, %v4199_v48  ;;  %v3395_v42 = vadd.f32 %v8294_v6, %v2745_v31  ;;  %v5379_v6 = vor.u32 %v6179_v57, %v5376_v12 }
 0x411   : > { %v2427_v8 = vpop.f32.mrf.mxu0 }
 0x412   : > { %v4328_v36 = vpack.c.bf16 %v4072_v10, %v4072_v10  ;;  %v3077_v54 = vadd.f32 %v3076_v7, %v2427_v8  ;;  %4712 = vst.msk [vmem:[%s6589_s29 + $0x3ac] sm:$0xf] %vm4476_vm3, %v4455_v59  ;;  %v3684_v17 = vmul.f32 %v8025_v51, %v3395_v42 }
 0x414   : > { %4585 = vst.msk [vmem:[%s6589_s29 + $0x1b0] sm:$0xf] %vm4476_vm3, %v4328_v36  ;;  %v3557_v55 = vmul.f32 %v8025_v51, %v3077_v54  ;;  %v3944_v62 = vadd.f32 %v8034_v52, %v3684_v17 }
 0x416   : > { %v3817_v2 = vadd.f32 %v8034_v52, %v3557_v55  ;;  %v4200_v7 = vmax.f32 %v3944_v62, 0.0  ;;  %v8380_v52 = vld [vmem:[%s8561_s2] ss:$0 sm:$0xff] }
 0x417   : > { %v3084_v3 = vpop.f32.mrf.mxu1  ;;  %v2747_v56 = vpop.f32.mrf.mxu2 }
 0x418   : > { %v4073_v34 = vmax.f32 %v3817_v2, 0.0  ;;  %v4456_v58 = vpack.c.bf16 %v4200_v7, %v4200_v7  ;;  %v3397_v39 = vadd.f32 %v8311_v47, %v2747_v56  ;;  %v3406_v47 = vpop.f32.mrf.mxu3 }
 0x419   : > { %v2430_v51 = vpop.f32.mrf.mxu0 }
 0x41a   : > { %5984 = vmatmul.msk.bf16.gmra.mxu1 %vm1754_vm2, %v5379_v6  ;;  %v4329_v18 = vpack.c.bf16 %v4073_v34, %v4073_v34  ;;  %v3080_v19 = vadd.f32 %v3079_v29, %v2430_v51  ;;  %4713 = vst.msk [vmem:[%s6589_s29 + $0x3b0] sm:$0xf] %vm4476_vm3, %v4456_v58  ;;  %v3685_v61 = vmul.f32 %v8380_v52, %v3397_v39 }
 0x41c   : > { %4586 = vst.msk [vmem:[%s6589_s29 + $0x1b4] sm:$0xf] %vm4476_vm3, %v4329_v18  ;;  %v3558_v20 = vmul.f32 %v8380_v52, %v3080_v19  ;;  %2469 = vmatmul.bf16.gmra.mxu0 %v5367_v13  ;;  %v3945_v5 = vadd.f32 %v8389_v21, %v3685_v61  ;;  %2789 = vmatmul.bf16.gmra.mxu2 %v5879_v46 }
 0x41e   : > { %v3818_v30 = vadd.f32 %v8389_v21, %v3558_v20  ;;  %v4201_v44 = vmax.f32 %v3945_v5, 0.0 }
 0x41f   : > { %v3086_v24 = vpop.f32.mrf.mxu1  ;;  %v2750_v25 = vpop.f32.mrf.mxu2 }
 0x420   : > { %v4074_v14 = vmax.f32 %v3818_v30, 0.0  ;;  %v4457_v29 = vpack.c.bf16 %v4201_v44, %v4201_v44  ;;  %v3400_v9 = vadd.f32 %v8327_v53, %v2750_v25  ;;  %v3409_v40 = vpop.f32.mrf.mxu3 }
 0x421   : > { %v2432_v11 = vpop.f32.mrf.mxu0 }
 0x422   : > { %v4330_v50 = vpack.c.bf16 %v4074_v14, %v4074_v14  ;;  %v3082_v15 = vadd.f32 %v3081_v26, %v2432_v11  ;;  %4714 = vst.msk [vmem:[%s6589_s29 + $0x3b4] sm:$0xf] %vm4476_vm3, %v4457_v29  ;;  %v3686_v33 = vmul.f32 %v8380_v52, %v3400_v9 }
 0x424   : > { %4587 = vst.msk [vmem:[%s6589_s29 + $0x1b8] sm:$0xf] %vm4476_vm3, %v4330_v50  ;;  %v3559_v60 = vmul.f32 %v8380_v52, %v3082_v15  ;;  %v3946_v0 = vadd.f32 %v8389_v21, %v3686_v33 }
 0x426   : > { %v3819_v38 = vadd.f32 %v8389_v21, %v3559_v60  ;;  %v4202_v53 = vmax.f32 %v3946_v0, 0.0 }
 0x427   : > { %v3089_v63 = vpop.f32.mrf.mxu1  ;;  %v2752_v41 = vpop.f32.mrf.mxu2 }
 0x428   : > { %v4075_v23 = vmax.f32 %v3819_v38, 0.0  ;;  %v4458_v4 = vpack.c.bf16 %v4202_v53, %v4202_v53  ;;  %v3402_v45 = vadd.f32 %v8344_v37, %v2752_v41  ;;  %v3411_v54 = vpop.f32.mrf.mxu3 }
 0x429   : > { %v2435_v49 = vpop.f32.mrf.mxu0 }
 0x42a   : > { %v4331_v27 = vpack.c.bf16 %v4075_v23, %v4075_v23  ;;  %v3085_v26 = vadd.f32 %v3084_v3, %v2435_v49  ;;  %4715 = vst.msk [vmem:[%s6589_s29 + $0x3b8] sm:$0xf] %vm4476_vm3, %v4458_v4  ;;  %v3687_v48 = vmul.f32 %v8380_v52, %v3402_v45 }
 0x42c   : > { %4588 = vst.msk [vmem:[%s6589_s29 + $0x1bc] sm:$0xf] %vm4476_vm3, %v4331_v27  ;;  %v3560_v10 = vmul.f32 %v8380_v52, %v3085_v26  ;;  %v3947_v31 = vadd.f32 %v8389_v21, %v3687_v48 }
 0x42e   : > { %v3820_v59 = vadd.f32 %v8389_v21, %v3560_v10  ;;  %v4203_v8 = vmax.f32 %v3947_v31, 0.0 }
 0x42f   : > { %v3091_v42 = vpop.f32.mrf.mxu1  ;;  %v2755_v36 = vpop.f32.mrf.mxu2 }
 0x430   : > { %v4076_v37 = vmax.f32 %v3820_v59, 0.0  ;;  %v4459_v57 = vpack.c.bf16 %v4203_v8, %v4203_v8  ;;  %v3405_v12 = vadd.f32 %v8359_v22, %v2755_v36  ;;  %v3414_v39 = vpop.f32.mrf.mxu3 }
 0x431   : > { %v2437_v17 = vpop.f32.mrf.mxu0 }
 0x432   : > { %v4332_v55 = vpack.c.bf16 %v4076_v37, %v4076_v37  ;;  %v3087_v62 = vadd.f32 %v3086_v24, %v2437_v17  ;;  %4716 = vst.msk [vmem:[%s6589_s29 + $0x3bc] sm:$0xf] %vm4476_vm3, %v4459_v57  ;;  %v3688_v6 = vmul.f32 %v8380_v52, %v3405_v12 }
 0x434   : > { %4589 = vst.msk [vmem:[%s6589_s29 + $0x1c0] sm:$0xf] %vm4476_vm3, %v4332_v55  ;;  %v3561_v28 = vmul.f32 %v8380_v52, %v3087_v62  ;;  %v3948_v1 = vadd.f32 %v8389_v21, %v3688_v6 }
 0x436   : > { %v3821_v2 = vadd.f32 %v8389_v21, %v3561_v28  ;;  %v4204_v43 = vmax.f32 %v3948_v1, 0.0 }
 0x437   : > { %v3094_v3 = vpop.f32.mrf.mxu1  ;;  %v2757_v32 = vpop.f32.mrf.mxu2 }
 0x438   : > { %v4077_v22 = vmax.f32 %v3821_v2, 0.0  ;;  %v4460_v7 = vpack.c.bf16 %v4204_v43, %v4204_v43  ;;  %v3407_v34 = vadd.f32 %v3406_v47, %v2757_v32  ;;  %v3416_v11 = vpop.f32.mrf.mxu3 }
 0x439   : > { %v2440_v56 = vpop.f32.mrf.mxu0 }
 0x43a   : > { %v4333_v13 = vpack.c.bf16 %v4077_v22, %v4077_v22  ;;  %v3090_v58 = vadd.f32 %v3089_v63, %v2440_v56  ;;  %4717 = vst.msk [vmem:[%s6589_s29 + $0x3c0] sm:$0xf] %vm4476_vm3, %v4460_v7  ;;  %v3689_v51 = vmul.f32 %v8380_v52, %v3407_v34 }
 0x43c   : > { %4590 = vst.msk [vmem:[%s6589_s29 + $0x1c4] sm:$0xf] %vm4476_vm3, %v4333_v13  ;;  %v3562_v46 = vmul.f32 %v8380_v52, %v3090_v58  ;;  %v3949_v18 = vadd.f32 %v8389_v21, %v3689_v51 }
 0x43e   : > { %v3822_v19 = vadd.f32 %v8389_v21, %v3562_v46  ;;  %v4205_v20 = vmax.f32 %v3949_v18, 0.0 }
 0x43f   : > { %v3096_v61 = vpop.f32.mrf.mxu1  ;;  %v2760_v5 = vpop.f32.mrf.mxu2 }
 0x440   : > { %v4078_v47 = vmax.f32 %v3822_v19, 0.0  ;;  %v4461_v30 = vpack.c.bf16 %v4205_v20, %v4205_v20  ;;  %v3410_v24 = vadd.f32 %v3409_v40, %v2760_v5  ;;  %v3419_v48 = vpop.f32.mrf.mxu3 }
 0x441   : > { %v2442_v44 = vpop.f32.mrf.mxu0 }
 0x442   : > { %v4334_v14 = vpack.c.bf16 %v4078_v47, %v4078_v47  ;;  %v3092_v25 = vadd.f32 %v3091_v42, %v2442_v44  ;;  %4718 = vst.msk [vmem:[%s6589_s29 + $0x3c4] sm:$0xf] %vm4476_vm3, %v4461_v30  ;;  %v3690_v29 = vmul.f32 %v8380_v52, %v3410_v24 }
 0x444   : > { %4591 = vst.msk [vmem:[%s6589_s29 + $0x1c8] sm:$0xf] %vm4476_vm3, %v4334_v14  ;;  %v3563_v9 = vmul.f32 %v8380_v52, %v3092_v25  ;;  %v3950_v50 = vadd.f32 %v8389_v21, %v3690_v29 }
 0x446   : > { %v3823_v15 = vadd.f32 %v8389_v21, %v3563_v9  ;;  %v4206_v60 = vmax.f32 %v3950_v50, 0.0 }
 0x447   : > { %v3099_v33 = vpop.f32.mrf.mxu1  ;;  %v2762_v38 = vpop.f32.mrf.mxu2 }
 0x448   : > { %v4079_v0 = vmax.f32 %v3823_v15, 0.0  ;;  %v4462_v63 = vpack.c.bf16 %v4206_v60, %v4206_v60  ;;  %v3412_v40 = vadd.f32 %v3411_v54, %v2762_v38  ;;  %v3421_v2 = vpop.f32.mrf.mxu3 }
 0x449   : > { %v2445_v53 = vpop.f32.mrf.mxu0 }
 0x44a   : > { %v4335_v23 = vpack.c.bf16 %v4079_v0, %v4079_v0  ;;  %v3095_v41 = vadd.f32 %v3094_v3, %v2445_v53  ;;  %4719 = vst.msk [vmem:[%s6589_s29 + $0x3c8] sm:$0xf] %vm4476_vm3, %v4462_v63  ;;  %v3691_v4 = vmul.f32 %v8380_v52, %v3412_v40 }
 0x44c   : > { %4592 = vst.msk [vmem:[%s6589_s29 + $0x1cc] sm:$0xf] %vm4476_vm3, %v4335_v23  ;;  %v3564_v45 = vmul.f32 %v8380_v52, %v3095_v41  ;;  %v3951_v49 = vadd.f32 %v8389_v21, %v3691_v4 }
 0x44e   : > { %v3824_v27 = vadd.f32 %v8389_v21, %v3564_v45  ;;  %v4207_v10 = vmax.f32 %v3951_v49, 0.0 }
 0x44f   : > { %v3101_v26 = vpop.f32.mrf.mxu1  ;;  %v2765_v59 = vpop.f32.mrf.mxu2 }
 0x450   : > { %v4080_v31 = vmax.f32 %v3824_v27, 0.0  ;;  %v4463_v42 = vpack.c.bf16 %v4207_v10, %v4207_v10  ;;  %v3415_v8 = vadd.f32 %v3414_v39, %v2765_v59  ;;  %v3424_v30 = vpop.f32.mrf.mxu3 }
 0x451   : > { %v2447_v37 = vpop.f32.mrf.mxu0 }
 0x452   : > { %v4336_v36 = vpack.c.bf16 %v4080_v31, %v4080_v31  ;;  %v3097_v54 = vadd.f32 %v3096_v61, %v2447_v37  ;;  %4720 = vst.msk [vmem:[%s6589_s29 + $0x3cc] sm:$0xf] %vm4476_vm3, %v4463_v42  ;;  %v3692_v57 = vmul.f32 %v8380_v52, %v3415_v8 }
 0x454   : > { %4593 = vst.msk [vmem:[%s6589_s29 + $0x1d0] sm:$0xf] %vm4476_vm3, %v4336_v36  ;;  %v3565_v12 = vmul.f32 %v8380_v52, %v3097_v54  ;;  %v3952_v17 = vadd.f32 %v8389_v21, %v3692_v57 }
 0x456   : > { %v3825_v55 = vadd.f32 %v8389_v21, %v3565_v12  ;;  %v4208_v6 = vmax.f32 %v3952_v17, 0.0 }
 0x457   : > { %v3104_v62 = vpop.f32.mrf.mxu1  ;;  %v2767_v1 = vpop.f32.mrf.mxu2 }
 0x458   : > { %v4081_v28 = vmax.f32 %v3825_v55, 0.0  ;;  %v4464_v3 = vpack.c.bf16 %v4208_v6, %v4208_v6  ;;  %v3417_v43 = vadd.f32 %v3416_v11, %v2767_v1  ;;  %v3426_v53 = vpop.f32.mrf.mxu3 }
 0x459   : > { %v2450_v22 = vpop.f32.mrf.mxu0 }
 0x45a   : > { %v4337_v32 = vpack.c.bf16 %v4081_v28, %v4081_v28  ;;  %v3100_v7 = vadd.f32 %v3099_v33, %v2450_v22  ;;  %4721 = vst.msk [vmem:[%s6589_s29 + $0x3d0] sm:$0xf] %vm4476_vm3, %v4464_v3  ;;  %v3693_v34 = vmul.f32 %v8380_v52, %v3417_v43 }
 0x45c   : > { %4594 = vst.msk [vmem:[%s6589_s29 + $0x1d4] sm:$0xf] %vm4476_vm3, %v4337_v32  ;;  %v3566_v56 = vmul.f32 %v8380_v52, %v3100_v7  ;;  %v3953_v13 = vadd.f32 %v8389_v21, %v3693_v34 }
 0x45e   : > { %v3826_v58 = vadd.f32 %v8389_v21, %v3566_v56  ;;  %v4209_v51 = vmax.f32 %v3953_v13, 0.0 }
 0x45f   : > { %v3106_v39 = vpop.f32.mrf.mxu1  ;;  %v2770_v18 = vpop.f32.mrf.mxu2 }
 0x460   : > { %v4082_v46 = vmax.f32 %v3826_v58, 0.0  ;;  %v4465_v19 = vpack.c.bf16 %v4209_v51, %v4209_v51  ;;  %v3420_v61 = vadd.f32 %v3419_v48, %v2770_v18  ;;  %v3429_v57 = vpop.f32.mrf.mxu3 }
 0x461   : > { %v2452_v20 = vpop.f32.mrf.mxu0 }
 0x462   : > { %v4338_v47 = vpack.c.bf16 %v4082_v46, %v4082_v46  ;;  %v3102_v5 = vadd.f32 %v3101_v26, %v2452_v20  ;;  %4722 = vst.msk [vmem:[%s6589_s29 + $0x3d4] sm:$0xf] %vm4476_vm3, %v4465_v19  ;;  %v3694_v24 = vmul.f32 %v8380_v52, %v3420_v61 }
 0x464   : > { %4595 = vst.msk [vmem:[%s6589_s29 + $0x1d8] sm:$0xf] %vm4476_vm3, %v4338_v47  ;;  %v3567_v44 = vmul.f32 %v8380_v52, %v3102_v5  ;;  %v3954_v14 = vadd.f32 %v8389_v21, %v3694_v24 }
 0x466   : > { %v3827_v25 = vadd.f32 %v8389_v21, %v3567_v44  ;;  %v4210_v9 = vmax.f32 %v3954_v14, 0.0 }
 0x467   : > { %v3109_v29 = vpop.f32.mrf.mxu1  ;;  %v2772_v50 = vpop.f32.mrf.mxu2 }
 0x468   : > { %v4083_v11 = vmax.f32 %v3827_v25, 0.0  ;;  %v4466_v15 = vpack.c.bf16 %v4210_v9, %v4210_v9  ;;  %v3422_v33 = vadd.f32 %v3421_v2, %v2772_v50  ;;  %v3431_v58 = vpop.f32.mrf.mxu3 }
 0x469   : > { %v2455_v60 = vpop.f32.mrf.mxu0 }
 0x46a   : > { %v4339_v0 = vpack.c.bf16 %v4083_v11, %v4083_v11  ;;  %v3105_v38 = vadd.f32 %v3104_v62, %v2455_v60  ;;  %4723 = vst.msk [vmem:[%s6589_s29 + $0x3d8] sm:$0xf] %vm4476_vm3, %v4466_v15  ;;  %v3695_v63 = vmul.f32 %v8380_v52, %v3422_v33 }
 0x46c   : > { %4596 = vst.msk [vmem:[%s6589_s29 + $0x1dc] sm:$0xf] %vm4476_vm3, %v4339_v0  ;;  %v3568_v40 = vmul.f32 %v8380_v52, %v3105_v38  ;;  %v3955_v23 = vadd.f32 %v8389_v21, %v3695_v63 }
 0x46e   : > { %v3828_v41 = vadd.f32 %v8389_v21, %v3568_v40  ;;  %v4211_v45 = vmax.f32 %v3955_v23, 0.0 }
 0x46f   : > { %v3111_v4 = vpop.f32.mrf.mxu1  ;;  %v2775_v27 = vpop.f32.mrf.mxu2 }
 0x470   : > { %v4084_v49 = vmax.f32 %v3828_v41, 0.0  ;;  %v4467_v26 = vpack.c.bf16 %v4211_v45, %v4211_v45  ;;  %v3425_v48 = vadd.f32 %v3424_v30, %v2775_v27  ;;  %v3434_v50 = vpop.f32.mrf.mxu3 }
 0x471   : > { %v2457_v10 = vpop.f32.mrf.mxu0 }
 0x472   : > { %v4340_v31 = vpack.c.bf16 %v4084_v49, %v4084_v49  ;;  %v3107_v59 = vadd.f32 %v3106_v39, %v2457_v10  ;;  %4724 = vst.msk [vmem:[%s6589_s29 + $0x3dc] sm:$0xf] %vm4476_vm3, %v4467_v26  ;;  %v3696_v42 = vmul.f32 %v8380_v52, %v3425_v48 }
 0x474   : > { %4597 = vst.msk [vmem:[%s6589_s29 + $0x1e0] sm:$0xf] %vm4476_vm3, %v4340_v31  ;;  %v3569_v8 = vmul.f32 %v8380_v52, %v3107_v59  ;;  %v3956_v37 = vadd.f32 %v8389_v21, %v3696_v42 }
 0x476   : > { %v3829_v36 = vadd.f32 %v8389_v21, %v3569_v8  ;;  %v4212_v12 = vmax.f32 %v3956_v37, 0.0 }
 0x477   : > { %v3114_v54 = vpop.f32.mrf.mxu1  ;;  %v2777_v55 = vpop.f32.mrf.mxu2 }
 0x478   : > { %v4085_v17 = vmax.f32 %v3829_v36, 0.0  ;;  %v4468_v62 = vpack.c.bf16 %v4212_v12, %v4212_v12  ;;  %v3427_v6 = vadd.f32 %v3426_v53, %v2777_v55  ;;  %v3436_v48 = vpop.f32.mrf.mxu3 }
 0x479   : > { %v2460_v28 = vpop.f32.mrf.mxu0 }
 0x47a   : > { %v4341_v1 = vpack.c.bf16 %v4085_v17, %v4085_v17  ;;  %v3110_v2 = vadd.f32 %v3109_v29, %v2460_v28  ;;  %4725 = vst.msk [vmem:[%s6589_s29 + $0x3e0] sm:$0xf] %vm4476_vm3, %v4468_v62  ;;  %v3697_v3 = vmul.f32 %v8380_v52, %v3427_v6 }
 0x47c   : > { %4598 = vst.msk [vmem:[%s6589_s29 + $0x1e4] sm:$0xf] %vm4476_vm3, %v4341_v1  ;;  %v3570_v43 = vmul.f32 %v8380_v52, %v3110_v2  ;;  %v3957_v22 = vadd.f32 %v8389_v21, %v3697_v3 }
 0x47e   : > { %v3830_v32 = vadd.f32 %v8389_v21, %v3570_v43  ;;  %v4213_v34 = vmax.f32 %v3957_v22, 0.0 }
 0x47f   : > { %v3116_v7 = vpop.f32.mrf.mxu1  ;;  %v2780_v13 = vpop.f32.mrf.mxu2 }
 0x480   : > { %v4086_v56 = vmax.f32 %v3830_v32, 0.0  ;;  %v4469_v39 = vpack.c.bf16 %v4213_v34, %v4213_v34  ;;  %v3430_v51 = vadd.f32 %v3429_v57, %v2780_v13  ;;  %v3439_v43 = vpop.f32.mrf.mxu3 }
 0x481   : > { %v2462_v46 = vpop.f32.mrf.mxu0 }
 0x482   : > { %v4342_v18 = vpack.c.bf16 %v4086_v56, %v4086_v56  ;;  %v3112_v19 = vadd.f32 %v3111_v4, %v2462_v46  ;;  %4726 = vst.msk [vmem:[%s6589_s29 + $0x3e4] sm:$0xf] %vm4476_vm3, %v4469_v39  ;;  %v3698_v61 = vmul.f32 %v8380_v52, %v3430_v51 }
 0x484   : > { %4599 = vst.msk [vmem:[%s6589_s29 + $0x1e8] sm:$0xf] %vm4476_vm3, %v4342_v18  ;;  %v3571_v20 = vmul.f32 %v8380_v52, %v3112_v19  ;;  %v3958_v47 = vadd.f32 %v8389_v21, %v3698_v61 }
 0x486   : > { %v3831_v5 = vadd.f32 %v8389_v21, %v3571_v20  ;;  %v4214_v24 = vmax.f32 %v3958_v47, 0.0 }
 0x487   : > { %v3119_v30 = vpop.f32.mrf.mxu1  ;;  %v2782_v14 = vpop.f32.mrf.mxu2 }
 0x488   : > { %v4087_v44 = vmax.f32 %v3831_v5, 0.0  ;;  %v4470_v25 = vpack.c.bf16 %v4214_v24, %v4214_v24  ;;  %v3432_v29 = vadd.f32 %v3431_v58, %v2782_v14 }
 0x489   : > { %v2465_v9 = vpop.f32.mrf.mxu0 }
 0x48a   : > { %v4343_v11 = vpack.c.bf16 %v4087_v44, %v4087_v44  ;;  %v3115_v15 = vadd.f32 %v3114_v54, %v2465_v9  ;;  %4727 = vst.msk [vmem:[%s6589_s29 + $0x3e8] sm:$0xf] %vm4476_vm3, %v4470_v25  ;;  %v3699_v33 = vmul.f32 %v8380_v52, %v3432_v29  ;;  %v3441_v25 = vpop.f32.mrf.mxu3 }
 0x48c   : > { %4600 = vst.msk [vmem:[%s6589_s29 + $0x1ec] sm:$0xf] %vm4476_vm3, %v4343_v11  ;;  %v3572_v60 = vmul.f32 %v8380_v52, %v3115_v15  ;;  %v3959_v0 = vadd.f32 %v8389_v21, %v3699_v33 }
 0x48e   : > { %v3832_v38 = vadd.f32 %v8389_v21, %v3572_v60  ;;  %v4215_v40 = vmax.f32 %v3959_v0, 0.0 }
 0x48f   : > { %v3121_v63 = vpop.f32.mrf.mxu1  ;;  %v2785_v23 = vpop.f32.mrf.mxu2 }
 0x490   : > { %v4088_v53 = vmax.f32 %v3832_v38, 0.0  ;;  %v4471_v41 = vpack.c.bf16 %v4215_v40, %v4215_v40  ;;  %v3435_v4 = vadd.f32 %v3434_v50, %v2785_v23 }
 0x491   : > { %v2467_v45 = vpop.f32.mrf.mxu0 }
 0x492   : > { %v4344_v49 = vpack.c.bf16 %v4088_v53, %v4088_v53  ;;  %v3117_v27 = vadd.f32 %v3116_v7, %v2467_v45  ;;  %4728 = vst.msk [vmem:[%s6589_s29 + $0x3ec] sm:$0xf] %vm4476_vm3, %v4471_v41  ;;  %v3700_v26 = vmul.f32 %v8380_v52, %v3435_v4 }
 0x494   : > { %4601 = vst.msk [vmem:[%s6589_s29 + $0x1f0] sm:$0xf] %vm4476_vm3, %v4344_v49  ;;  %v3573_v10 = vmul.f32 %v8380_v52, %v3117_v27  ;;  %v3960_v31 = vadd.f32 %v8389_v21, %v3700_v26 }
 0x496   : > { %v3833_v59 = vadd.f32 %v8389_v21, %v3573_v10  ;;  %v4216_v8 = vmax.f32 %v3960_v31, 0.0 }
 0x497   : > { %v3124_v42 = vpop.f32.mrf.mxu1  ;;  %v2787_v54 = vpop.f32.mrf.mxu2 }
 0x498   : > { %v3125_v37 = vadd.f32 %v3124_v42, %v6584_v16  ;;  %v4089_v36 = vmax.f32 %v3833_v59, 0.0  ;;  %v4472_v57 = vpack.c.bf16 %v4216_v8, %v4216_v8  ;;  %v3437_v17 = vadd.f32 %v3436_v48, %v2787_v54 }
 0x499   : > { %v2470_v55 = vpop.f32.mrf.mxu0 }
 0x49a   : > { %v3576_v12 = vmul.f32 %v8380_v52, %v3125_v37  ;;  %v4345_v62 = vpack.c.bf16 %v4089_v36, %v4089_v36  ;;  %v3120_v6 = vadd.f32 %v3119_v30, %v2470_v55  ;;  %4729 = vst.msk [vmem:[%s6589_s29 + $0x3f0] sm:$0xf] %vm4476_vm3, %v4472_v57  ;;  %v3701_v1 = vmul.f32 %v8380_v52, %v3437_v17 }
 0x49c   : > { %v3836_v28 = vadd.f32 %v8389_v21, %v3576_v12  ;;  %4602 = vst.msk [vmem:[%s6589_s29 + $0x1f4] sm:$0xf] %vm4476_vm3, %v4345_v62  ;;  %v3574_v16 = vmul.f32 %v8380_v52, %v3120_v6  ;;  %v3961_v3 = vadd.f32 %v8389_v21, %v3701_v1 }
 0x49e   : > { %v4092_v2 = vmax.f32 %v3836_v28, 0.0  ;;  %v3834_v22 = vadd.f32 %v8389_v21, %v3574_v16  ;;  %v4217_v34 = vmax.f32 %v3961_v3, 0.0 }
 0x49f   : > { %v3126_v32 = vpop.f32.mrf.mxu1  ;;  %v2790_v58 = vpop.f32.mrf.mxu2 }
 0x4a0   : > { %v4348_v7 = vpack.c.bf16 %v4092_v2, %v4092_v2  ;;  %v3127_v56 = vadd.f32 %v3126_v32, %v6605_v35  ;;  %v4090_v13 = vmax.f32 %v3834_v22, 0.0  ;;  %v4473_v39 = vpack.c.bf16 %v4217_v34, %v4217_v34 }
 0x4a1   : > { %v3440_v46 = vadd.f32 %v3439_v43, %v2790_v58  ;;  %v2472_v18 = vpop.f32.mrf.mxu0 }
 0x4a2   : > { %4605 = vst.msk [vmem:[%s6589_s29 + $0x200] sm:$0xf] %vm4476_vm3, %v4348_v7  ;;  %v3577_v51 = vmul.f32 %v8380_v52, %v3127_v56  ;;  %v4346_v19 = vpack.c.bf16 %v4090_v13, %v4090_v13  ;;  %v3122_v61 = vadd.f32 %v3121_v63, %v2472_v18 }
 0x4a3   : > { %4730 = vst.msk [vmem:[%s6589_s29 + $0x3f4] sm:$0xf] %vm4476_vm3, %v4473_v39  ;;  %v3702_v47 = vmul.f32 %v8380_v52, %v3440_v46 }
 0x4a4   : > { %v3837_v20 = vadd.f32 %v8389_v21, %v3577_v51  ;;  %4603 = vst.msk [vmem:[%s6589_s29 + $0x1f8] sm:$0xf] %vm4476_vm3, %v4346_v19  ;;  %v3575_v35 = vmul.f32 %v8380_v52, %v3122_v61 }
 0x4a5   : > { %v3962_v30 = vadd.f32 %v8389_v21, %v3702_v47 }
 0x4a6   : > { %v4093_v5 = vmax.f32 %v3837_v20, 0.0  ;;  %v3835_v24 = vadd.f32 %v8389_v21, %v3575_v35 }
 0x4a7   : > { %v4218_v14 = vmax.f32 %v3962_v30, 0.0  ;;  %v2792_v9 = vpop.f32.mrf.mxu2 }
 0x4a8   : > { %v4349_v44 = vpack.c.bf16 %v4093_v5, %v4093_v5  ;;  %v4091_v29 = vmax.f32 %v3835_v24, 0.0  ;;  %v3442_v50 = vadd.f32 %v3441_v25, %v2792_v9 }
 0x4a9   : > { %v4474_v11 = vpack.c.bf16 %v4218_v14, %v4218_v14 }
 0x4aa   : > { %4606 = vst.msk [vmem:[%s6589_s29 + $0x204] sm:$0xf] %vm4476_vm3, %v4349_v44  ;;  %v4347_v15 = vpack.c.bf16 %v4091_v29, %v4091_v29  ;;  %v3703_v33 = vmul.f32 %v8380_v52, %v3442_v50 }
 0x4ab   : > { %4731 = vst.msk [vmem:[%s6589_s29 + $0x3f8] sm:$0xf] %vm4476_vm3, %v4474_v11 }
 0x4ac   : > { %4604 = vst.msk [vmem:[%s6589_s29 + $0x1fc] sm:$0xf] %vm4476_vm3, %v4347_v15  ;;  %v3963_v60 = vadd.f32 %v8389_v21, %v3703_v33 }
 0x4ae   : > { %v4219_v0 = vmax.f32 %v3963_v60, 0.0 }
 0x4b0   : > { %v4475_v38 = vpack.c.bf16 %v4219_v0, %v4219_v0 }
 0x4b2   : > { %4732 = vst.msk [vmem:[%s6589_s29 + $0x3fc] sm:$0xf] %vm4476_vm3, %v4475_v38 }
 0x4b3 PF: > { %s14_s17 = sadd.s32 1, %s6385_s17   ;;  %s8564_s15 = smov %s6381_s16 }
 0x4b4   : > { %p11_p5 = scmp.ge.s32.totalorder %s14_s17, 14   ;;  %s8565_s16 = smov %s8567_s18 }
 0x4b6   :  { %13 = sbr.rel (!%p11_p5) target bundleno = 2 (0x2), region = 75 }

</bundles_post_ra>
